<compile_context>
chip_gen: v7x
topology: tpu7x:2x2x1
jax: 0.10.0
libtpu: 0.0.40
codegen_flags: <defaults>
</compile_context>

<pallas_src>
import numpy as np
import jax
import jax.numpy as jnp
from jax.experimental import pallas as pl
from jax.experimental.pallas import tpu as pltpu

# Static geometry implied by the module (Linear(32*7*8, 100) => input (24, 28)).
H_IN, W_IN = 24, 28          # input image
C1, C2 = 16, 32              # conv1 / conv2 output channels
K = 5                        # conv kernel size (padding 2)
H1, W1 = 13, 15              # spatial dims after conv1 + pool1
H2, W2 = 7, 8                # spatial dims after conv2 + pool2
N_HID, N_OUT = 100, 2

B_TILE = 8                   # images per grid step (keeps gather matrices small)
R1 = H_IN * B_TILE           # 192 rows of conv1/pool1-horizontal output per step
R2 = H1 * B_TILE             # 104 rows of conv2 input/output per step

_BF16 = jnp.bfloat16
_F32 = jnp.float32


# ---------------------------------------------------------------------------
# Fused Pallas kernel: one grid step == B_TILE images, everything VMEM/vreg
# resident; only x5 and the (B_TILE, 2) logits touch HBM per step.
# ---------------------------------------------------------------------------
def _cnn6_kernel(x5_ref, m1e_ref, m1o_ref, b1e_ref, b1o_ref,
                 q1t_ref, q1b_ref, m2e_ref, m2o_ref, b2e_ref, b2o_ref,
                 p2t_ref, p2b_ref, wm_ref, bm_ref, wo_ref, bo_ref, out_ref):
    # ---- conv1 + bias + ReLU, horizontal pool1 folded into weights ----------
    x5 = x5_ref[...]                                                  # (192, 140) bf16
    e1 = jnp.maximum(jnp.dot(x5, m1e_ref[...], preferred_element_type=_F32)
                     + b1e_ref[...], 0.0)                             # (192, 240)
    q1 = jnp.maximum(jnp.dot(x5, m1o_ref[...], preferred_element_type=_F32)
                     + b1o_ref[...], 0.0)
    pr1 = jnp.maximum(e1, q1).astype(_BF16)                           # (192, 240)

    # ---- vertical pool1 + conv2 ky-tap gather (block-diag 0/1 matmuls) ------
    # Row layout of xsh: ky*R2 + b*H1 + r  ->  x2_img_b[r + ky - 2] (0 = pad).
    xsh = jnp.maximum(
        jnp.dot(q1t_ref[...], pr1, preferred_element_type=_F32),
        jnp.dot(q1b_ref[...], pr1, preferred_element_type=_F32)).astype(_BF16)  # (520, 240)

    # ---- conv2 + bias + ReLU, horizontal pool2 folded into weights ----------
    acc_e = None
    acc_o = None
    for ky in range(K):                                               # 5 aligned row slabs
        lhs = xsh[ky * R2:(ky + 1) * R2, :]                           # (104, 240) bf16
        te = jnp.dot(lhs, m2e_ref[ky], preferred_element_type=_F32)   # (104, 256)
        to = jnp.dot(lhs, m2o_ref[ky], preferred_element_type=_F32)
        acc_e = te if acc_e is None else acc_e + te
        acc_o = to if acc_o is None else acc_o + to
    e2 = jnp.maximum(acc_e + b2e_ref[...], 0.0)
    q2 = jnp.maximum(acc_o + b2o_ref[...], 0.0)
    pr2 = jnp.maximum(e2, q2).astype(_BF16)                           # (104, 256)

    # ---- vertical pool2, emitted ho-major: row = ho*B_TILE + b --------------
    x3 = jnp.maximum(
        jnp.dot(p2t_ref[...], pr2, preferred_element_type=_F32),
        jnp.dot(p2b_ref[...], pr2, preferred_element_type=_F32)).astype(_BF16)  # (56, 256)

    # ---- mlp1 (NCHW flatten folded into wm packing) + ReLU ------------------
    macc = None
    for ho in range(H2):                                              # 7 aligned B-row slabs
        t = jnp.dot(x3[ho * B_TILE:(ho + 1) * B_TILE, :], wm_ref[ho],
                    preferred_element_type=_F32)                      # (8, 100)
        macc = t if macc is None else macc + t
    hidden = jnp.maximum(macc + bm_ref[...], 0.0)                     # (8, 100) f32

    # ---- out layer ----------------------------------------------------------
    out = jnp.dot(hidden, wo_ref[...], preferred_element_type=_F32) + bo_ref[...]
    out_ref[...] = out.astype(out_ref.dtype)


def cnn6_forward(x, kp):
    """x: (B, 24, 28) f32; kp: packed parameters (see pack_params)."""
    B = x.shape[0]
    Bp = ((B + B_TILE - 1) // B_TILE) * B_TILE
    # Pad batch to a multiple of B_TILE and H by 2 (W/ky padding is folded into
    # the Toeplitz weights); build the 5-tap lane-concatenated conv1 input.
    xh = jnp.pad(x.astype(_F32), ((0, Bp - B), (2, 2), (0, 0)))        # (Bp, 28, 28)
    x5 = jnp.concatenate([xh[:, ky:ky + H_IN, :] for ky in range(K)], axis=-1)
    x5 = x5.astype(_BF16).reshape(Bp * H_IN, K * W_IN)                 # (Bp*24, 140)

    c2 = lambda i: (0, 0)
    c3 = lambda i: (0, 0, 0)
    out = pl.pallas_call(
        _cnn6_kernel,
        out_shape=jax.ShapeDtypeStruct((Bp, N_OUT), _F32),
        grid=(Bp // B_TILE,),
        in_specs=[
            pl.BlockSpec((B_TILE * H_IN, K * W_IN), lambda i: (i, 0)),  # x5 (moving)
            pl.BlockSpec((K * W_IN, W1 * C1), c2),                      # m1e
            pl.BlockSpec((K * W_IN, W1 * C1), c2),                      # m1o
            pl.BlockSpec((1, W1 * C1), c2),                             # b1e
            pl.BlockSpec((1, W1 * C1), c2),                             # b1o
            pl.BlockSpec((K * R2, R1), c2),                             # q1t
            pl.BlockSpec((K * R2, R1), c2),                             # q1b
            pl.BlockSpec((K, W1 * C1, W2 * C2), c3),                    # m2e
            pl.BlockSpec((K, W1 * C1, W2 * C2), c3),                    # m2o
            pl.BlockSpec((1, W2 * C2), c2),                             # b2e
            pl.BlockSpec((1, W2 * C2), c2),                             # b2o
            pl.BlockSpec((H2 * B_TILE, R2), c2),                        # p2t
            pl.BlockSpec((H2 * B_TILE, R2), c2),                        # p2b
            pl.BlockSpec((H2, W2 * C2, N_HID), c3),                     # mlp1 weight
            pl.BlockSpec((1, N_HID), c2),                               # mlp1 bias
            pl.BlockSpec((N_HID, N_OUT), c2),                           # out weight
            pl.BlockSpec((1, N_OUT), c2),                               # out bias
        ],
        out_specs=pl.BlockSpec((B_TILE, N_OUT), lambda i: (i, 0)),
        compiler_params=pltpu.CompilerParams(
            dimension_semantics=("parallel",),
            vmem_limit_bytes=32 * 1024 * 1024),
    )(x5, kp["m1e"], kp["m1o"], kp["b1e"], kp["b1o"], kp["q1t"], kp["q1b"],
      kp["m2e"], kp["m2o"], kp["b2e"], kp["b2o"], kp["p2t"], kp["p2b"],
      kp["wm"], kp["bm"], kp["wo"], kp["bo"])
    return out[:B]


# ---------------------------------------------------------------------------
# Parameters (PyTorch layouts) and one-time host-side packing.
# ---------------------------------------------------------------------------
def init_torch_params(key):
    ks = jax.random.split(key, 8)

    def uinit(k, shape, fan_in):
        bound = 1.0 / np.sqrt(fan_in)
        return jax.random.uniform(k, shape, _F32, -bound, bound)

    return {
        "w1": uinit(ks[0], (C1, 1, K, K), 1 * K * K),            # Conv2d OIHW
        "b1": uinit(ks[1], (C1,), 1 * K * K),
        "w2": uinit(ks[2], (C2, C1, K, K), C1 * K * K),
        "b2": uinit(ks[3], (C2,), C1 * K * K),
        "wm": uinit(ks[4], (N_HID, C2 * H2 * W2), C2 * H2 * W2),  # Linear (out, in)
        "bm": uinit(ks[5], (N_HID,), C2 * H2 * W2),
        "wo": uinit(ks[6], (N_OUT, N_HID), N_HID),
        "bo": uinit(ks[7], (N_OUT,), N_HID),
    }


def pack_params(p):
    """Pack PyTorch-layout weights into the kernel's matmul-friendly layouts."""
    w1 = np.asarray(p["w1"], np.float32)
    b1 = np.asarray(p["b1"], np.float32)
    w2 = np.asarray(p["w2"], np.float32)
    b2 = np.asarray(p["b2"], np.float32)
    wm = np.asarray(p["wm"], np.float32)
    bm = np.asarray(p["bm"], np.float32)
    wo = np.asarray(p["wo"], np.float32)
    bo = np.asarray(p["bo"], np.float32)

    # conv1 block-Toeplitz stacked over ky: (K*W_IN, W_IN*C1); W pad folded in.
    m1 = np.zeros((K, W_IN, W_IN, C1), np.float32)
    for w in range(W_IN):
        for kx in range(K):
            wi = w + kx - 2
            if 0 <= wi < W_IN:
                m1[:, wi, w, :] = w1[:, 0, :, kx].T                  # (K, C1)
    m1 = m1.reshape(K * W_IN, W_IN * C1)                             # row = ky*W_IN + wi

    # conv2 block-Toeplitz per ky: (K, W1*C1, W1*C2).
    m2 = np.zeros((K, W1, C1, W1, C2), np.float32)
    for w in range(W1):
        for kx in range(K):
            wi = w + kx - 2
            if 0 <= wi < W1:
                m2[:, wi, :, w, :] = np.transpose(w2[:, :, :, kx], (2, 1, 0))
    m2 = m2.reshape(K, W1 * C1, W1 * C2)

    # 0/1 selections for the horizontal half of the 2x2 pools (cols 2*wo, 2*wo-1;
    # out-of-range -> zero column == pool padding, exact because it follows ReLU
    # and the bias goes through the same selection).
    def pool_select(w_in, w_out, c):
        se = np.zeros((w_in, c, w_out, c), np.float32)
        so = np.zeros((w_in, c, w_out, c), np.float32)
        eye = np.eye(c, dtype=np.float32)
        for woi in range(w_out):
            if 2 * woi < w_in:
                se[2 * woi, :, woi, :] = eye
            if 2 * woi - 1 >= 0:
                so[2 * woi - 1, :, woi, :] = eye
        return (se.reshape(w_in * c, w_out * c),
                so.reshape(w_in * c, w_out * c))

    s1e, s1o = pool_select(W_IN, W1, C1)        # (448, 240)
    s2e, s2o = pool_select(W1, W2, C2)          # (480, 256)

    m1e, m1o = m1 @ s1e, m1 @ s1o                                    # (140, 240)
    b1t = np.tile(b1, W_IN)[None, :]                                 # (1, 448)
    b1e, b1o = b1t @ s1e, b1t @ s1o                                  # (1, 240)
    m2e = np.einsum("kij,jn->kin", m2, s2e)                          # (5, 240, 256)
    m2o = np.einsum("kij,jn->kin", m2, s2o)
    b2t = np.tile(b2, W1)[None, :]                                   # (1, 480)
    b2e, b2o = b2t @ s2e, b2t @ s2o                                  # (1, 256)

    # Block-diagonal row-gather matrices (depend only on geometry + B_TILE).
    # q1*: vertical pool1 + conv2 ky-shift; output row = ky*R2 + b*H1 + r gives
    #      x2_img_b[r + ky - 2] where x2[h] = max(pr1[2h-1], pr1[2h]) (0 = pad).
    q1t = np.zeros((K * R2, R1), np.float32)
    q1b = np.zeros((K * R2, R1), np.float32)
    for ky in range(K):
        for b in range(B_TILE):
            for r in range(H1):
                h = r + ky - 2
                if 0 <= h < H1:
                    o = ky * R2 + b * H1 + r
                    if 2 * h - 1 >= 0:
                        q1t[o, b * H_IN + 2 * h - 1] = 1.0
                    if 2 * h < H_IN:
                        q1b[o, b * H_IN + 2 * h] = 1.0

    # p2*: vertical pool2, emitted ho-major (row = ho*B_TILE + b) so mlp1 can
    #      consume contiguous, sublane-aligned B_TILE-row slabs.
    p2t = np.zeros((H2 * B_TILE, R2), np.float32)
    p2b = np.zeros((H2 * B_TILE, R2), np.float32)
    for ho in range(H2):
        for b in range(B_TILE):
            o = ho * B_TILE + b
            if 2 * ho - 1 >= 0:
                p2t[o, b * H1 + 2 * ho - 1] = 1.0
            if 2 * ho < H1:
                p2b[o, b * H1 + 2 * ho] = 1.0

    # mlp1 weight pre-permuted from PyTorch's (C, H, W) flatten order to the
    # kernel's (ho; wo*C2 + c) layout -> no runtime flatten / transpose.
    wm_blk = np.transpose(wm.reshape(N_HID, C2, H2, W2), (2, 3, 1, 0))
    wm_blk = wm_blk.reshape(H2, W2 * C2, N_HID)

    return {
        "m1e": jnp.asarray(m1e, _BF16), "m1o": jnp.asarray(m1o, _BF16),
        "b1e": jnp.asarray(b1e, _F32), "b1o": jnp.asarray(b1o, _F32),
        "q1t": jnp.asarray(q1t, _BF16), "q1b": jnp.asarray(q1b, _BF16),
        "m2e": jnp.asarray(m2e, _BF16), "m2o": jnp.asarray(m2o, _BF16),
        "b2e": jnp.asarray(b2e, _F32), "b2o": jnp.asarray(b2o, _F32),
        "p2t": jnp.asarray(p2t, _BF16), "p2b": jnp.asarray(p2b, _BF16),
        "wm": jnp.asarray(wm_blk, _BF16),
        "bm": jnp.asarray(bm[None, :], _F32),
        "wo": jnp.asarray(wo.T, _F32),
        "bo": jnp.asarray(bo[None, :], _F32),
    }


# ---------------------------------------------------------------------------
# Pure-JAX reference (mirrors CNN6.forward exactly, f32).
# ---------------------------------------------------------------------------
def cnn6_reference(x, p):
    dn = ("NCHW", "OIHW", "NCHW")
    y = x[:, None, :, :].astype(_F32)
    y = jax.lax.conv_general_dilated(y, p["w1"], (1, 1), [(2, 2), (2, 2)],
                                     dimension_numbers=dn)
    y = jax.nn.relu(y + p["b1"][None, :, None, None])
    y = jax.lax.reduce_window(y, -jnp.inf, jax.lax.max, (1, 1, 2, 2),
                              (1, 1, 2, 2), [(0, 0), (0, 0), (1, 1), (1, 1)])
    y = jax.lax.conv_general_dilated(y, p["w2"], (1, 1), [(2, 2), (2, 2)],
                                     dimension_numbers=dn)
    y = jax.nn.relu(y + p["b2"][None, :, None, None])
    y = jax.lax.reduce_window(y, -jnp.inf, jax.lax.max, (1, 1, 2, 2),
                              (1, 1, 2, 2), [(0, 0), (0, 0), (1, 1), (1, 1)])
    y = y.reshape(x.shape[0], -1)                      # contiguous NCHW flatten
    y = jax.nn.relu(y @ p["wm"].T + p["bm"])
    return y @ p["wo"].T + p["bo"]


if __name__ == "__main__":
    key = jax.random.PRNGKey(0)
    kx, kparam = jax.random.split(key)
    # (B, 24, 28): the spatial size implied by Linear(32*7*8, 100).
    x = jax.random.normal(kx, (2, H_IN, W_IN), dtype=_F32)
    torch_params = init_torch_params(kparam)
    packed = pack_params(torch_params)                 # one-time host packing

    fwd = jax.jit(cnn6_forward)
    out = jax.block_until_ready(fwd(x, packed))
    assert out.shape == (2, N_OUT) and out.dtype == _F32

    ref = jax.block_until_ready(cnn6_reference(x, torch_params))
    np.testing.assert_allclose(np.asarray(out), np.asarray(ref),
                               rtol=5e-2, atol=5e-2)   # bf16 matmul tolerance
    print("KERNEL_OK")
</pallas_src>

<mosaic_0001>
module attributes {stable_mosaic.version = 11 : i64} {
  func.func @_cnn6_kernel(%arg0: i32, %arg1: memref<192x140xbf16, #tpu.memory_space<vmem>>, %arg2: memref<140x240xbf16, #tpu.memory_space<vmem>>, %arg3: memref<140x240xbf16, #tpu.memory_space<vmem>>, %arg4: memref<1x240xf32, #tpu.memory_space<vmem>>, %arg5: memref<1x240xf32, #tpu.memory_space<vmem>>, %arg6: memref<520x192xbf16, #tpu.memory_space<vmem>>, %arg7: memref<520x192xbf16, #tpu.memory_space<vmem>>, %arg8: memref<5x240x256xbf16, #tpu.memory_space<vmem>>, %arg9: memref<5x240x256xbf16, #tpu.memory_space<vmem>>, %arg10: memref<1x256xf32, #tpu.memory_space<vmem>>, %arg11: memref<1x256xf32, #tpu.memory_space<vmem>>, %arg12: memref<56x104xbf16, #tpu.memory_space<vmem>>, %arg13: memref<56x104xbf16, #tpu.memory_space<vmem>>, %arg14: memref<7x256x100xbf16, #tpu.memory_space<vmem>>, %arg15: memref<1x100xf32, #tpu.memory_space<vmem>>, %arg16: memref<100x2xf32, #tpu.memory_space<vmem>>, %arg17: memref<1x2xf32, #tpu.memory_space<vmem>>, %arg18: memref<8x2xf32, #tpu.memory_space<vmem>>) attributes {dimension_semantics = [#tpu.dimension_semantics<parallel>], iteration_bounds = array<i64: 1>, scalar_prefetch = 0 : i64, scratch_operands = 0 : i64, tpu.core_type = #tpu.core_type<tc>, window_params = [{transform_indices = @transform_0, window_bounds = array<i64: 192, 140>}, {pipeline_mode = #tpu.pipeline_mode<synchronous>, transform_indices = @transform_1, window_bounds = array<i64: 140, 240>}, {pipeline_mode = #tpu.pipeline_mode<synchronous>, transform_indices = @transform_2, window_bounds = array<i64: 140, 240>}, {pipeline_mode = #tpu.pipeline_mode<synchronous>, transform_indices = @transform_3, window_bounds = array<i64: 1, 240>}, {pipeline_mode = #tpu.pipeline_mode<synchronous>, transform_indices = @transform_4, window_bounds = array<i64: 1, 240>}, {pipeline_mode = #tpu.pipeline_mode<synchronous>, transform_indices = @transform_5, window_bounds = array<i64: 520, 192>}, {pipeline_mode = #tpu.pipeline_mode<synchronous>, transform_indices = @transform_6, window_bounds = array<i64: 520, 192>}, {pipeline_mode = #tpu.pipeline_mode<synchronous>, transform_indices = @transform_7, window_bounds = array<i64: 5, 240, 256>}, {pipeline_mode = #tpu.pipeline_mode<synchronous>, transform_indices = @transform_8, window_bounds = array<i64: 5, 240, 256>}, {pipeline_mode = #tpu.pipeline_mode<synchronous>, transform_indices = @transform_9, window_bounds = array<i64: 1, 256>}, {pipeline_mode = #tpu.pipeline_mode<synchronous>, transform_indices = @transform_10, window_bounds = array<i64: 1, 256>}, {pipeline_mode = #tpu.pipeline_mode<synchronous>, transform_indices = @transform_11, window_bounds = array<i64: 56, 104>}, {pipeline_mode = #tpu.pipeline_mode<synchronous>, transform_indices = @transform_12, window_bounds = array<i64: 56, 104>}, {pipeline_mode = #tpu.pipeline_mode<synchronous>, transform_indices = @transform_13, window_bounds = array<i64: 7, 256, 100>}, {pipeline_mode = #tpu.pipeline_mode<synchronous>, transform_indices = @transform_14, window_bounds = array<i64: 1, 100>}, {pipeline_mode = #tpu.pipeline_mode<synchronous>, transform_indices = @transform_15, window_bounds = array<i64: 100, 2>}, {pipeline_mode = #tpu.pipeline_mode<synchronous>, transform_indices = @transform_16, window_bounds = array<i64: 1, 2>}, {transform_indices = @transform_17, window_bounds = array<i64: 8, 2>}]} {
    %c0 = arith.constant 0 : index
    %c0_0 = arith.constant 0 : index
    %0 = vector.load %arg1[%c0, %c0_0] : memref<192x140xbf16, #tpu.memory_space<vmem>>, vector<192x140xbf16>
    %c0_1 = arith.constant 0 : index
    %c0_2 = arith.constant 0 : index
    %1 = vector.load %arg2[%c0_1, %c0_2] : memref<140x240xbf16, #tpu.memory_space<vmem>>, vector<140x240xbf16>
    %cst = arith.constant dense<0.000000e+00> : vector<192x240xf32>
    %2 = tpu.matmul %0, %1, %cst {dimension_numbers = #tpu.dot_dimension_numbers<[1], [0], [0], [1], [0, 0, 1, 1], [], []>} : vector<192x140xbf16>, vector<140x240xbf16>, vector<192x240xf32> -> vector<192x240xf32>
    %c0_3 = arith.constant 0 : index
    %c0_4 = arith.constant 0 : index
    %3 = vector.load %arg4[%c0_3, %c0_4] : memref<1x240xf32, #tpu.memory_space<vmem>>, vector<1x240xf32>
    %4 = vector.broadcast %3 : vector<1x240xf32> to vector<192x240xf32>
    %5 = arith.addf %2, %4 : vector<192x240xf32>
    %cst_5 = arith.constant 0.000000e+00 : f32
    %6 = vector.broadcast %cst_5 : f32 to vector<192x240xf32>
    %7 = arith.maximumf %5, %6 : vector<192x240xf32>
    %c0_6 = arith.constant 0 : index
    %c0_7 = arith.constant 0 : index
    %8 = vector.load %arg3[%c0_6, %c0_7] : memref<140x240xbf16, #tpu.memory_space<vmem>>, vector<140x240xbf16>
    %cst_8 = arith.constant dense<0.000000e+00> : vector<192x240xf32>
    %9 = tpu.matmul %0, %8, %cst_8 {dimension_numbers = #tpu.dot_dimension_numbers<[1], [0], [0], [1], [0, 0, 1, 1], [], []>} : vector<192x140xbf16>, vector<140x240xbf16>, vector<192x240xf32> -> vector<192x240xf32>
    %c0_9 = arith.constant 0 : index
    %c0_10 = arith.constant 0 : index
    %10 = vector.load %arg5[%c0_9, %c0_10] : memref<1x240xf32, #tpu.memory_space<vmem>>, vector<1x240xf32>
    %11 = vector.broadcast %10 : vector<1x240xf32> to vector<192x240xf32>
    %12 = arith.addf %9, %11 : vector<192x240xf32>
    %cst_11 = arith.constant 0.000000e+00 : f32
    %13 = vector.broadcast %cst_11 : f32 to vector<192x240xf32>
    %14 = arith.maximumf %12, %13 : vector<192x240xf32>
    %15 = arith.maximumf %7, %14 : vector<192x240xf32>
    %16 = arith.truncf %15 : vector<192x240xf32> to vector<192x240xbf16>
    %c0_12 = arith.constant 0 : index
    %c0_13 = arith.constant 0 : index
    %17 = vector.load %arg6[%c0_12, %c0_13] : memref<520x192xbf16, #tpu.memory_space<vmem>>, vector<520x192xbf16>
    %cst_14 = arith.constant dense<0.000000e+00> : vector<520x240xf32>
    %18 = tpu.matmul %17, %16, %cst_14 {dimension_numbers = #tpu.dot_dimension_numbers<[1], [0], [0], [1], [0, 0, 1, 1], [], []>} : vector<520x192xbf16>, vector<192x240xbf16>, vector<520x240xf32> -> vector<520x240xf32>
    %c0_15 = arith.constant 0 : index
    %c0_16 = arith.constant 0 : index
    %19 = vector.load %arg7[%c0_15, %c0_16] : memref<520x192xbf16, #tpu.memory_space<vmem>>, vector<520x192xbf16>
    %cst_17 = arith.constant dense<0.000000e+00> : vector<520x240xf32>
    %20 = tpu.matmul %19, %16, %cst_17 {dimension_numbers = #tpu.dot_dimension_numbers<[1], [0], [0], [1], [0, 0, 1, 1], [], []>} : vector<520x192xbf16>, vector<192x240xbf16>, vector<520x240xf32> -> vector<520x240xf32>
    %21 = arith.maximumf %18, %20 : vector<520x240xf32>
    %22 = arith.truncf %21 : vector<520x240xf32> to vector<520x240xbf16>
    %23 = vector.extract_strided_slice %22 {offsets = [0, 0], sizes = [104, 240], strides = [1, 1]} : vector<520x240xbf16> to vector<104x240xbf16>
    %c0_18 = arith.constant 0 : index
    %c0_19 = arith.constant 0 : index
    %c0_20 = arith.constant 0 : index
    %24 = vector.load %arg8[%c0_18, %c0_19, %c0_20] : memref<5x240x256xbf16, #tpu.memory_space<vmem>>, vector<1x240x256xbf16>
    %25 = vector.shape_cast %24 : vector<1x240x256xbf16> to vector<240x256xbf16>
    %cst_21 = arith.constant dense<0.000000e+00> : vector<104x256xf32>
    %26 = tpu.matmul %23, %25, %cst_21 {dimension_numbers = #tpu.dot_dimension_numbers<[1], [0], [0], [1], [0, 0, 1, 1], [], []>} : vector<104x240xbf16>, vector<240x256xbf16>, vector<104x256xf32> -> vector<104x256xf32>
    %c0_22 = arith.constant 0 : index
    %c0_23 = arith.constant 0 : index
    %c0_24 = arith.constant 0 : index
    %27 = vector.load %arg9[%c0_22, %c0_23, %c0_24] : memref<5x240x256xbf16, #tpu.memory_space<vmem>>, vector<1x240x256xbf16>
    %28 = vector.shape_cast %27 : vector<1x240x256xbf16> to vector<240x256xbf16>
    %cst_25 = arith.constant dense<0.000000e+00> : vector<104x256xf32>
    %29 = tpu.matmul %23, %28, %cst_25 {dimension_numbers = #tpu.dot_dimension_numbers<[1], [0], [0], [1], [0, 0, 1, 1], [], []>} : vector<104x240xbf16>, vector<240x256xbf16>, vector<104x256xf32> -> vector<104x256xf32>
    %30 = vector.extract_strided_slice %22 {offsets = [104, 0], sizes = [104, 240], strides = [1, 1]} : vector<520x240xbf16> to vector<104x240xbf16>
    %c1 = arith.constant 1 : index
    %c0_26 = arith.constant 0 : index
    %c0_27 = arith.constant 0 : index
    %31 = vector.load %arg8[%c1, %c0_26, %c0_27] : memref<5x240x256xbf16, #tpu.memory_space<vmem>>, vector<1x240x256xbf16>
    %32 = vector.shape_cast %31 : vector<1x240x256xbf16> to vector<240x256xbf16>
    %cst_28 = arith.constant dense<0.000000e+00> : vector<104x256xf32>
    %33 = tpu.matmul %30, %32, %cst_28 {dimension_numbers = #tpu.dot_dimension_numbers<[1], [0], [0], [1], [0, 0, 1, 1], [], []>} : vector<104x240xbf16>, vector<240x256xbf16>, vector<104x256xf32> -> vector<104x256xf32>
    %c1_29 = arith.constant 1 : index
    %c0_30 = arith.constant 0 : index
    %c0_31 = arith.constant 0 : index
    %34 = vector.load %arg9[%c1_29, %c0_30, %c0_31] : memref<5x240x256xbf16, #tpu.memory_space<vmem>>, vector<1x240x256xbf16>
    %35 = vector.shape_cast %34 : vector<1x240x256xbf16> to vector<240x256xbf16>
    %cst_32 = arith.constant dense<0.000000e+00> : vector<104x256xf32>
    %36 = tpu.matmul %30, %35, %cst_32 {dimension_numbers = #tpu.dot_dimension_numbers<[1], [0], [0], [1], [0, 0, 1, 1], [], []>} : vector<104x240xbf16>, vector<240x256xbf16>, vector<104x256xf32> -> vector<104x256xf32>
    %37 = arith.addf %26, %33 : vector<104x256xf32>
    %38 = arith.addf %29, %36 : vector<104x256xf32>
    %39 = vector.extract_strided_slice %22 {offsets = [208, 0], sizes = [104, 240], strides = [1, 1]} : vector<520x240xbf16> to vector<104x240xbf16>
    %c2 = arith.constant 2 : index
    %c0_33 = arith.constant 0 : index
    %c0_34 = arith.constant 0 : index
    %40 = vector.load %arg8[%c2, %c0_33, %c0_34] : memref<5x240x256xbf16, #tpu.memory_space<vmem>>, vector<1x240x256xbf16>
    %41 = vector.shape_cast %40 : vector<1x240x256xbf16> to vector<240x256xbf16>
    %cst_35 = arith.constant dense<0.000000e+00> : vector<104x256xf32>
    %42 = tpu.matmul %39, %41, %cst_35 {dimension_numbers = #tpu.dot_dimension_numbers<[1], [0], [0], [1], [0, 0, 1, 1], [], []>} : vector<104x240xbf16>, vector<240x256xbf16>, vector<104x256xf32> -> vector<104x256xf32>
    %c2_36 = arith.constant 2 : index
    %c0_37 = arith.constant 0 : index
    %c0_38 = arith.constant 0 : index
    %43 = vector.load %arg9[%c2_36, %c0_37, %c0_38] : memref<5x240x256xbf16, #tpu.memory_space<vmem>>, vector<1x240x256xbf16>
    %44 = vector.shape_cast %43 : vector<1x240x256xbf16> to vector<240x256xbf16>
    %cst_39 = arith.constant dense<0.000000e+00> : vector<104x256xf32>
    %45 = tpu.matmul %39, %44, %cst_39 {dimension_numbers = #tpu.dot_dimension_numbers<[1], [0], [0], [1], [0, 0, 1, 1], [], []>} : vector<104x240xbf16>, vector<240x256xbf16>, vector<104x256xf32> -> vector<104x256xf32>
    %46 = arith.addf %37, %42 : vector<104x256xf32>
    %47 = arith.addf %38, %45 : vector<104x256xf32>
    %48 = vector.extract_strided_slice %22 {offsets = [312, 0], sizes = [104, 240], strides = [1, 1]} : vector<520x240xbf16> to vector<104x240xbf16>
    %c3 = arith.constant 3 : index
    %c0_40 = arith.constant 0 : index
    %c0_41 = arith.constant 0 : index
    %49 = vector.load %arg8[%c3, %c0_40, %c0_41] : memref<5x240x256xbf16, #tpu.memory_space<vmem>>, vector<1x240x256xbf16>
    %50 = vector.shape_cast %49 : vector<1x240x256xbf16> to vector<240x256xbf16>
    %cst_42 = arith.constant dense<0.000000e+00> : vector<104x256xf32>
    %51 = tpu.matmul %48, %50, %cst_42 {dimension_numbers = #tpu.dot_dimension_numbers<[1], [0], [0], [1], [0, 0, 1, 1], [], []>} : vector<104x240xbf16>, vector<240x256xbf16>, vector<104x256xf32> -> vector<104x256xf32>
    %c3_43 = arith.constant 3 : index
    %c0_44 = arith.constant 0 : index
    %c0_45 = arith.constant 0 : index
    %52 = vector.load %arg9[%c3_43, %c0_44, %c0_45] : memref<5x240x256xbf16, #tpu.memory_space<vmem>>, vector<1x240x256xbf16>
    %53 = vector.shape_cast %52 : vector<1x240x256xbf16> to vector<240x256xbf16>
    %cst_46 = arith.constant dense<0.000000e+00> : vector<104x256xf32>
    %54 = tpu.matmul %48, %53, %cst_46 {dimension_numbers = #tpu.dot_dimension_numbers<[1], [0], [0], [1], [0, 0, 1, 1], [], []>} : vector<104x240xbf16>, vector<240x256xbf16>, vector<104x256xf32> -> vector<104x256xf32>
    %55 = arith.addf %46, %51 : vector<104x256xf32>
    %56 = arith.addf %47, %54 : vector<104x256xf32>
    %57 = vector.extract_strided_slice %22 {offsets = [416, 0], sizes = [104, 240], strides = [1, 1]} : vector<520x240xbf16> to vector<104x240xbf16>
    %c4 = arith.constant 4 : index
    %c0_47 = arith.constant 0 : index
    %c0_48 = arith.constant 0 : index
    %58 = vector.load %arg8[%c4, %c0_47, %c0_48] : memref<5x240x256xbf16, #tpu.memory_space<vmem>>, vector<1x240x256xbf16>
    %59 = vector.shape_cast %58 : vector<1x240x256xbf16> to vector<240x256xbf16>
    %cst_49 = arith.constant dense<0.000000e+00> : vector<104x256xf32>
    %60 = tpu.matmul %57, %59, %cst_49 {dimension_numbers = #tpu.dot_dimension_numbers<[1], [0], [0], [1], [0, 0, 1, 1], [], []>} : vector<104x240xbf16>, vector<240x256xbf16>, vector<104x256xf32> -> vector<104x256xf32>
    %c4_50 = arith.constant 4 : index
    %c0_51 = arith.constant 0 : index
    %c0_52 = arith.constant 0 : index
    %61 = vector.load %arg9[%c4_50, %c0_51, %c0_52] : memref<5x240x256xbf16, #tpu.memory_space<vmem>>, vector<1x240x256xbf16>
    %62 = vector.shape_cast %61 : vector<1x240x256xbf16> to vector<240x256xbf16>
    %cst_53 = arith.constant dense<0.000000e+00> : vector<104x256xf32>
    %63 = tpu.matmul %57, %62, %cst_53 {dimension_numbers = #tpu.dot_dimension_numbers<[1], [0], [0], [1], [0, 0, 1, 1], [], []>} : vector<104x240xbf16>, vector<240x256xbf16>, vector<104x256xf32> -> vector<104x256xf32>
    %64 = arith.addf %55, %60 : vector<104x256xf32>
    %65 = arith.addf %56, %63 : vector<104x256xf32>
    %c0_54 = arith.constant 0 : index
    %c0_55 = arith.constant 0 : index
    %66 = vector.load %arg10[%c0_54, %c0_55] : memref<1x256xf32, #tpu.memory_space<vmem>>, vector<1x256xf32>
    %67 = vector.broadcast %66 : vector<1x256xf32> to vector<104x256xf32>
    %68 = arith.addf %64, %67 : vector<104x256xf32>
    %cst_56 = arith.constant 0.000000e+00 : f32
    %69 = vector.broadcast %cst_56 : f32 to vector<104x256xf32>
    %70 = arith.maximumf %68, %69 : vector<104x256xf32>
    %c0_57 = arith.constant 0 : index
    %c0_58 = arith.constant 0 : index
    %71 = vector.load %arg11[%c0_57, %c0_58] : memref<1x256xf32, #tpu.memory_space<vmem>>, vector<1x256xf32>
    %72 = vector.broadcast %71 : vector<1x256xf32> to vector<104x256xf32>
    %73 = arith.addf %65, %72 : vector<104x256xf32>
    %cst_59 = arith.constant 0.000000e+00 : f32
    %74 = vector.broadcast %cst_59 : f32 to vector<104x256xf32>
    %75 = arith.maximumf %73, %74 : vector<104x256xf32>
    %76 = arith.maximumf %70, %75 : vector<104x256xf32>
    %77 = arith.truncf %76 : vector<104x256xf32> to vector<104x256xbf16>
    %c0_60 = arith.constant 0 : index
    %c0_61 = arith.constant 0 : index
    %78 = vector.load %arg12[%c0_60, %c0_61] : memref<56x104xbf16, #tpu.memory_space<vmem>>, vector<56x104xbf16>
    %cst_62 = arith.constant dense<0.000000e+00> : vector<56x256xf32>
    %79 = tpu.matmul %78, %77, %cst_62 {dimension_numbers = #tpu.dot_dimension_numbers<[1], [0], [0], [1], [0, 0, 1, 1], [], []>} : vector<56x104xbf16>, vector<104x256xbf16>, vector<56x256xf32> -> vector<56x256xf32>
    %c0_63 = arith.constant 0 : index
    %c0_64 = arith.constant 0 : index
    %80 = vector.load %arg13[%c0_63, %c0_64] : memref<56x104xbf16, #tpu.memory_space<vmem>>, vector<56x104xbf16>
    %cst_65 = arith.constant dense<0.000000e+00> : vector<56x256xf32>
    %81 = tpu.matmul %80, %77, %cst_65 {dimension_numbers = #tpu.dot_dimension_numbers<[1], [0], [0], [1], [0, 0, 1, 1], [], []>} : vector<56x104xbf16>, vector<104x256xbf16>, vector<56x256xf32> -> vector<56x256xf32>
    %82 = arith.maximumf %79, %81 : vector<56x256xf32>
    %83 = arith.truncf %82 : vector<56x256xf32> to vector<56x256xbf16>
    %84 = vector.extract_strided_slice %83 {offsets = [0, 0], sizes = [8, 256], strides = [1, 1]} : vector<56x256xbf16> to vector<8x256xbf16>
    %c0_66 = arith.constant 0 : index
    %c0_67 = arith.constant 0 : index
    %c0_68 = arith.constant 0 : index
    %85 = vector.load %arg14[%c0_66, %c0_67, %c0_68] : memref<7x256x100xbf16, #tpu.memory_space<vmem>>, vector<1x256x100xbf16>
    %86 = vector.shape_cast %85 : vector<1x256x100xbf16> to vector<256x100xbf16>
    %cst_69 = arith.constant dense<0.000000e+00> : vector<8x100xf32>
    %87 = tpu.matmul %84, %86, %cst_69 {dimension_numbers = #tpu.dot_dimension_numbers<[1], [0], [0], [1], [0, 0, 1, 1], [], []>} : vector<8x256xbf16>, vector<256x100xbf16>, vector<8x100xf32> -> vector<8x100xf32>
    %88 = vector.extract_strided_slice %83 {offsets = [8, 0], sizes = [8, 256], strides = [1, 1]} : vector<56x256xbf16> to vector<8x256xbf16>
    %c1_70 = arith.constant 1 : index
    %c0_71 = arith.constant 0 : index
    %c0_72 = arith.constant 0 : index
    %89 = vector.load %arg14[%c1_70, %c0_71, %c0_72] : memref<7x256x100xbf16, #tpu.memory_space<vmem>>, vector<1x256x100xbf16>
    %90 = vector.shape_cast %89 : vector<1x256x100xbf16> to vector<256x100xbf16>
    %cst_73 = arith.constant dense<0.000000e+00> : vector<8x100xf32>
    %91 = tpu.matmul %88, %90, %cst_73 {dimension_numbers = #tpu.dot_dimension_numbers<[1], [0], [0], [1], [0, 0, 1, 1], [], []>} : vector<8x256xbf16>, vector<256x100xbf16>, vector<8x100xf32> -> vector<8x100xf32>
    %92 = arith.addf %87, %91 : vector<8x100xf32>
    %93 = vector.extract_strided_slice %83 {offsets = [16, 0], sizes = [8, 256], strides = [1, 1]} : vector<56x256xbf16> to vector<8x256xbf16>
    %c2_74 = arith.constant 2 : index
    %c0_75 = arith.constant 0 : index
    %c0_76 = arith.constant 0 : index
    %94 = vector.load %arg14[%c2_74, %c0_75, %c0_76] : memref<7x256x100xbf16, #tpu.memory_space<vmem>>, vector<1x256x100xbf16>
    %95 = vector.shape_cast %94 : vector<1x256x100xbf16> to vector<256x100xbf16>
    %cst_77 = arith.constant dense<0.000000e+00> : vector<8x100xf32>
    %96 = tpu.matmul %93, %95, %cst_77 {dimension_numbers = #tpu.dot_dimension_numbers<[1], [0], [0], [1], [0, 0, 1, 1], [], []>} : vector<8x256xbf16>, vector<256x100xbf16>, vector<8x100xf32> -> vector<8x100xf32>
    %97 = arith.addf %92, %96 : vector<8x100xf32>
    %98 = vector.extract_strided_slice %83 {offsets = [24, 0], sizes = [8, 256], strides = [1, 1]} : vector<56x256xbf16> to vector<8x256xbf16>
    %c3_78 = arith.constant 3 : index
    %c0_79 = arith.constant 0 : index
    %c0_80 = arith.constant 0 : index
    %99 = vector.load %arg14[%c3_78, %c0_79, %c0_80] : memref<7x256x100xbf16, #tpu.memory_space<vmem>>, vector<1x256x100xbf16>
    %100 = vector.shape_cast %99 : vector<1x256x100xbf16> to vector<256x100xbf16>
    %cst_81 = arith.constant dense<0.000000e+00> : vector<8x100xf32>
    %101 = tpu.matmul %98, %100, %cst_81 {dimension_numbers = #tpu.dot_dimension_numbers<[1], [0], [0], [1], [0, 0, 1, 1], [], []>} : vector<8x256xbf16>, vector<256x100xbf16>, vector<8x100xf32> -> vector<8x100xf32>
    %102 = arith.addf %97, %101 : vector<8x100xf32>
    %103 = vector.extract_strided_slice %83 {offsets = [32, 0], sizes = [8, 256], strides = [1, 1]} : vector<56x256xbf16> to vector<8x256xbf16>
    %c4_82 = arith.constant 4 : index
    %c0_83 = arith.constant 0 : index
    %c0_84 = arith.constant 0 : index
    %104 = vector.load %arg14[%c4_82, %c0_83, %c0_84] : memref<7x256x100xbf16, #tpu.memory_space<vmem>>, vector<1x256x100xbf16>
    %105 = vector.shape_cast %104 : vector<1x256x100xbf16> to vector<256x100xbf16>
    %cst_85 = arith.constant dense<0.000000e+00> : vector<8x100xf32>
    %106 = tpu.matmul %103, %105, %cst_85 {dimension_numbers = #tpu.dot_dimension_numbers<[1], [0], [0], [1], [0, 0, 1, 1], [], []>} : vector<8x256xbf16>, vector<256x100xbf16>, vector<8x100xf32> -> vector<8x100xf32>
    %107 = arith.addf %102, %106 : vector<8x100xf32>
    %108 = vector.extract_strided_slice %83 {offsets = [40, 0], sizes = [8, 256], strides = [1, 1]} : vector<56x256xbf16> to vector<8x256xbf16>
    %c5 = arith.constant 5 : index
    %c0_86 = arith.constant 0 : index
    %c0_87 = arith.constant 0 : index
    %109 = vector.load %arg14[%c5, %c0_86, %c0_87] : memref<7x256x100xbf16, #tpu.memory_space<vmem>>, vector<1x256x100xbf16>
    %110 = vector.shape_cast %109 : vector<1x256x100xbf16> to vector<256x100xbf16>
    %cst_88 = arith.constant dense<0.000000e+00> : vector<8x100xf32>
    %111 = tpu.matmul %108, %110, %cst_88 {dimension_numbers = #tpu.dot_dimension_numbers<[1], [0], [0], [1], [0, 0, 1, 1], [], []>} : vector<8x256xbf16>, vector<256x100xbf16>, vector<8x100xf32> -> vector<8x100xf32>
    %112 = arith.addf %107, %111 : vector<8x100xf32>
    %113 = vector.extract_strided_slice %83 {offsets = [48, 0], sizes = [8, 256], strides = [1, 1]} : vector<56x256xbf16> to vector<8x256xbf16>
    %c6 = arith.constant 6 : index
    %c0_89 = arith.constant 0 : index
    %c0_90 = arith.constant 0 : index
    %114 = vector.load %arg14[%c6, %c0_89, %c0_90] : memref<7x256x100xbf16, #tpu.memory_space<vmem>>, vector<1x256x100xbf16>
    %115 = vector.shape_cast %114 : vector<1x256x100xbf16> to vector<256x100xbf16>
    %cst_91 = arith.constant dense<0.000000e+00> : vector<8x100xf32>
    %116 = tpu.matmul %113, %115, %cst_91 {dimension_numbers = #tpu.dot_dimension_numbers<[1], [0], [0], [1], [0, 0, 1, 1], [], []>} : vector<8x256xbf16>, vector<256x100xbf16>, vector<8x100xf32> -> vector<8x100xf32>
    %117 = arith.addf %112, %116 : vector<8x100xf32>
    %c0_92 = arith.constant 0 : index
    %c0_93 = arith.constant 0 : index
    %118 = vector.load %arg15[%c0_92, %c0_93] : memref<1x100xf32, #tpu.memory_space<vmem>>, vector<1x100xf32>
    %119 = vector.broadcast %118 : vector<1x100xf32> to vector<8x100xf32>
    %120 = arith.addf %117, %119 : vector<8x100xf32>
    %cst_94 = arith.constant 0.000000e+00 : f32
    %121 = vector.broadcast %cst_94 : f32 to vector<8x100xf32>
    %122 = arith.maximumf %120, %121 : vector<8x100xf32>
    %c0_95 = arith.constant 0 : index
    %c0_96 = arith.constant 0 : index
    %123 = vector.load %arg16[%c0_95, %c0_96] : memref<100x2xf32, #tpu.memory_space<vmem>>, vector<100x2xf32>
    %cst_97 = arith.constant dense<0.000000e+00> : vector<8x2xf32>
    %124 = tpu.matmul %122, %123, %cst_97 {dimension_numbers = #tpu.dot_dimension_numbers<[1], [0], [0], [1], [0, 0, 1, 1], [], []>} : vector<8x100xf32>, vector<100x2xf32>, vector<8x2xf32> -> vector<8x2xf32>
    %c0_98 = arith.constant 0 : index
    %c0_99 = arith.constant 0 : index
    %125 = vector.load %arg17[%c0_98, %c0_99] : memref<1x2xf32, #tpu.memory_space<vmem>>, vector<1x2xf32>
    %126 = vector.broadcast %125 : vector<1x2xf32> to vector<8x2xf32>
    %127 = arith.addf %124, %126 : vector<8x2xf32>
    %c0_100 = arith.constant 0 : index
    %c0_101 = arith.constant 0 : index
    %128 = vector.load %arg18[%c0_100, %c0_101] : memref<8x2xf32, #tpu.memory_space<vmem>>, vector<8x2xf32>
    tpu.vector_store %arg18[%c0_100, %c0_101], %127 {strides = array<i32>} : memref<8x2xf32, #tpu.memory_space<vmem>>, vector<8x2xf32>,
    return
  }
  func.func @transform_0(%arg0: i32) -> (i32, i32) {
    %c0_i32 = arith.constant 0 : i32
    %c0_i32_0 = arith.constant 0 : i32
    return %arg0, %c0_i32 : i32, i32
  }
  func.func @transform_1(%arg0: i32) -> (i32, i32) {
    %c0_i32 = arith.constant 0 : i32
    %c0_i32_0 = arith.constant 0 : i32
    %c0_i32_1 = arith.constant 0 : i32
    return %c0_i32, %c0_i32_0 : i32, i32
  }
  func.func @transform_2(%arg0: i32) -> (i32, i32) {
    %c0_i32 = arith.constant 0 : i32
    %c0_i32_0 = arith.constant 0 : i32
    %c0_i32_1 = arith.constant 0 : i32
    return %c0_i32, %c0_i32_0 : i32, i32
  }
  func.func @transform_3(%arg0: i32) -> (i32, i32) {
    %c0_i32 = arith.constant 0 : i32
    %c0_i32_0 = arith.constant 0 : i32
    %c0_i32_1 = arith.constant 0 : i32
    return %c0_i32, %c0_i32_0 : i32, i32
  }
  func.func @transform_4(%arg0: i32) -> (i32, i32) {
    %c0_i32 = arith.constant 0 : i32
    %c0_i32_0 = arith.constant 0 : i32
    %c0_i32_1 = arith.constant 0 : i32
    return %c0_i32, %c0_i32_0 : i32, i32
  }
  func.func @transform_5(%arg0: i32) -> (i32, i32) {
    %c0_i32 = arith.constant 0 : i32
    %c0_i32_0 = arith.constant 0 : i32
    %c0_i32_1 = arith.constant 0 : i32
    return %c0_i32, %c0_i32_0 : i32, i32
  }
  func.func @transform_6(%arg0: i32) -> (i32, i32) {
    %c0_i32 = arith.constant 0 : i32
    %c0_i32_0 = arith.constant 0 : i32
    %c0_i32_1 = arith.constant 0 : i32
    return %c0_i32, %c0_i32_0 : i32, i32
  }
  func.func @transform_7(%arg0: i32) -> (i32, i32, i32) {
    %c0_i32 = arith.constant 0 : i32
    %c0_i32_0 = arith.constant 0 : i32
    %c0_i32_1 = arith.constant 0 : i32
    %c0_i32_2 = arith.constant 0 : i32
    return %c0_i32, %c0_i32_0, %c0_i32_1 : i32, i32, i32
  }
  func.func @transform_8(%arg0: i32) -> (i32, i32, i32) {
    %c0_i32 = arith.constant 0 : i32
    %c0_i32_0 = arith.constant 0 : i32
    %c0_i32_1 = arith.constant 0 : i32
    %c0_i32_2 = arith.constant 0 : i32
    return %c0_i32, %c0_i32_0, %c0_i32_1 : i32, i32, i32
  }
  func.func @transform_9(%arg0: i32) -> (i32, i32) {
    %c0_i32 = arith.constant 0 : i32
    %c0_i32_0 = arith.constant 0 : i32
    %c0_i32_1 = arith.constant 0 : i32
    return %c0_i32, %c0_i32_0 : i32, i32
  }
  func.func @transform_10(%arg0: i32) -> (i32, i32) {
    %c0_i32 = arith.constant 0 : i32
    %c0_i32_0 = arith.constant 0 : i32
    %c0_i32_1 = arith.constant 0 : i32
    return %c0_i32, %c0_i32_0 : i32, i32
  }
  func.func @transform_11(%arg0: i32) -> (i32, i32) {
    %c0_i32 = arith.constant 0 : i32
    %c0_i32_0 = arith.constant 0 : i32
    %c0_i32_1 = arith.constant 0 : i32
    return %c0_i32, %c0_i32_0 : i32, i32
  }
  func.func @transform_12(%arg0: i32) -> (i32, i32) {
    %c0_i32 = arith.constant 0 : i32
    %c0_i32_0 = arith.constant 0 : i32
    %c0_i32_1 = arith.constant 0 : i32
    return %c0_i32, %c0_i32_0 : i32, i32
  }
  func.func @transform_13(%arg0: i32) -> (i32, i32, i32) {
    %c0_i32 = arith.constant 0 : i32
    %c0_i32_0 = arith.constant 0 : i32
    %c0_i32_1 = arith.constant 0 : i32
    %c0_i32_2 = arith.constant 0 : i32
    return %c0_i32, %c0_i32_0, %c0_i32_1 : i32, i32, i32
  }
  func.func @transform_14(%arg0: i32) -> (i32, i32) {
    %c0_i32 = arith.constant 0 : i32
    %c0_i32_0 = arith.constant 0 : i32
    %c0_i32_1 = arith.constant 0 : i32
    return %c0_i32, %c0_i32_0 : i32, i32
  }
  func.func @transform_15(%arg0: i32) -> (i32, i32) {
    %c0_i32 = arith.constant 0 : i32
    %c0_i32_0 = arith.constant 0 : i32
    %c0_i32_1 = arith.constant 0 : i32
    return %c0_i32, %c0_i32_0 : i32, i32
  }
  func.func @transform_16(%arg0: i32) -> (i32, i32) {
    %c0_i32 = arith.constant 0 : i32
    %c0_i32_0 = arith.constant 0 : i32
    %c0_i32_1 = arith.constant 0 : i32
    return %c0_i32, %c0_i32_0 : i32, i32
  }
  func.func @transform_17(%arg0: i32) -> (i32, i32) {
    %c0_i32 = arith.constant 0 : i32
    %c0_i32_0 = arith.constant 0 : i32
    return %arg0, %c0_i32 : i32, i32
  }
}

</mosaic_0001>

<bundles_post_ra>
// kernel: cnn6_forward.1
= control target key start
LH: loop header
LB: loop body
LE: loop exit
PB: predicated region body
PF: predicated region fallthrough
CT: control target
= control target key end

     0   :  { %vm307_vm0 = vcmask 97280   ;;  %vm344_vm1 = vcmask 1045504   ;;  %vm1308_vm2 = vcmask 523264   ;;  %vm2889_vm3 = vcmask 1043456   ;;  %s12802_s1 = inlined_call_operand.vmem [shape: bf16[140,240], index: 1, kind: input, shape index: {}]   ;;  %s12803_s2 = inlined_call_operand.vmem [shape: bf16[140,240], index: 2, kind: input, shape index: {}]   ;;  %s12804_s0 = inlined_call_operand.vmem [shape: bf16[192,140], index: 0, kind: input, shape index: {}]   ;;  %s12805_s5 = inlined_call_operand.vmem [shape: bf16[520,192], index: 5, kind: input, shape index: {}]   ;;  %s12806_s6 = inlined_call_operand.vmem [shape: bf16[520,192], index: 6, kind: input, shape index: {}]   ;;  %s12807_s3 = inlined_call_operand.vmem [shape: f32[1,240], index: 3, kind: input, shape index: {}]   ;;  %s12808_s4 = inlined_call_operand.vmem [shape: f32[1,240], index: 4, kind: input, shape index: {}]   ;;  %s12809_s7 = inlined_call_operand.vmem [shape: bf16[5,240,256], index: 7, kind: input, shape index: {}]   ;;  %s12810_s8 = inlined_call_operand.vmem [shape: bf16[5,240,256], index: 8, kind: input, shape index: {}]   ;;  %s12811_s11 = inlined_call_operand.vmem [shape: bf16[56,104], index: 11, kind: input, shape index: {}]   ;;  %s12812_s12 = inlined_call_operand.vmem [shape: bf16[56,104], index: 12, kind: input, shape index: {}]   ;;  %s12813_s13 = inlined_call_operand.vmem [shape: bf16[7,256,100], index: 13, kind: input, shape index: {}]   ;;  %s12814_s9 = inlined_call_operand.vmem [shape: f32[1,256], index: 9, kind: input, shape index: {}]   ;;  %s12815_s10 = inlined_call_operand.vmem [shape: f32[1,256], index: 10, kind: input, shape index: {}]   ;;  %s12816_s15 = inlined_call_operand.vmem [shape: f32[100,2], index: 15, kind: input, shape index: {}]   ;;  %s12817_s14 = inlined_call_operand.vmem [shape: f32[1,100], index: 14, kind: input, shape index: {}]   ;;  %s12818_s16 = inlined_call_operand.vmem [shape: f32[1,2], index: 16, kind: input, shape index: {}]   ;;  %s12819_s17 = inlined_call_operand.vmem [shape: f32[8,2], index: 17, kind: output, shape index: {}]  }
   0x1   :  { %12823 = sst [smem:[#allocation2_spill]] %s12802_s1  ;;  %v9377_v30 = vld [vmem:[%s12804_s0 + $0x4] ss:$8 sps:$4 sm:$0xff]   ;;  %v9375_v39 = vld [vmem:[%s12804_s0] ss:$8 sps:$4 sm:$0xff]   ;;  %vm3073_vm4 = vcmask 916480  }
   0x2   :  { %12824 = sst [smem:[#allocation3_spill]] %s12803_s2  ;;  %s12826_s26 = sld [smem:[#allocation2_spill]]  ;;  %7733 = vmatprep.mubr.msk.bf16.mxu0 %vm307_vm0, %v9377_v30  ;;  %7764 = vmatprep.mubr.msk.bf16.mxu1 %vm307_vm0, %v9377_v30  ;;  %v9378_v40 = vld [vmem:[%s12804_s0 + $0x14] ss:$8 sps:$4 sm:$0xff]   ;;  %v9380_v41 = vld [vmem:[%s12804_s0 + $0x10] ss:$8 sps:$4 sm:$0xff]  }
   0x3   :  { %12825 = sst [smem:[#allocation4_spill]] %s12812_s12  ;;  %s12827_s12 = sld [smem:[#allocation3_spill]]  ;;  %v9381_v42 = vld [vmem:[%s12804_s0 + $0x24] ss:$8 sps:$4 sm:$0xff]   ;;  %v9383_v43 = vld [vmem:[%s12804_s0 + $0x20] ss:$8 sps:$4 sm:$0xff]  }
   0x4   :  { %v9384_v44 = vld [vmem:[%s12804_s0 + $0x34] ss:$8 sps:$4 sm:$0xff]   ;;  %v9386_v45 = vld [vmem:[%s12804_s0 + $0x30] ss:$8 sps:$4 sm:$0xff]   ;;  %v9387_v46 = vld [vmem:[%s12804_s0 + $0x44] ss:$8 sps:$4 sm:$0xff]  }
   0x5   :  { %v9389_v47 = vld [vmem:[%s12804_s0 + $0x40] ss:$8 sps:$4 sm:$0xff]   ;;  %v9390_v48 = vld [vmem:[%s12804_s0 + $0x54] ss:$8 sps:$4 sm:$0xff]   ;;  %v9392_v49 = vld [vmem:[%s12804_s0 + $0x50] ss:$8 sps:$4 sm:$0xff]  }
   0x6   :  { %v9393_v50 = vld [vmem:[%s12804_s0 + $0x64] ss:$8 sps:$4 sm:$0xff]   ;;  %v9395_v51 = vld [vmem:[%s12804_s0 + $0x60] ss:$8 sps:$4 sm:$0xff]   ;;  %v9396_v52 = vld [vmem:[%s12804_s0 + $0x74] ss:$8 sps:$4 sm:$0xff]  }
   0x7   :  { %v9398_v53 = vld [vmem:[%s12804_s0 + $0x70] ss:$8 sps:$4 sm:$0xff]   ;;  %v9399_v54 = vld [vmem:[%s12804_s0 + $0x84] ss:$8 sps:$4 sm:$0xff]   ;;  %v9401_v55 = vld [vmem:[%s12804_s0 + $0x80] ss:$8 sps:$4 sm:$0xff]  }
   0x8   :  { %v9321_v0 = vld [vmem:[%s12826_s26 + $0x4] ss:$8 sps:$4 sm:$0xff]   ;;  %v9325_v2 = vld [vmem:[%s12826_s26] ss:$8 sps:$4 sm:$0xff]   ;;  %v9327_v4 = vld [vmem:[%s12826_s26 + $0x14] ss:$8 sps:$4 sm:$0xff]  }
   0x9   :  { %v9323_v1 = vld [vmem:[%s12827_s12 + $0x4] ss:$8 sps:$4 sm:$0xff]   ;;  %351 = vmatprep.subr.bf16.mxu0 %v9321_v0  ;;  %v9326_v3 = vld [vmem:[%s12827_s12] ss:$8 sps:$4 sm:$0xff]   ;;  %v9329_v5 = vld [vmem:[%s12827_s12 + $0x14] ss:$8 sps:$4 sm:$0xff]   ;;  %v101_v0 = vlaneseq }
   0xa   :  { %676 = vmatprep.subr.bf16.mxu1 %v9323_v1  ;;  %352 = vmatpush1.bf16.msra.mxu0 %v9325_v2  ;;  %v9331_v6 = vld [vmem:[%s12826_s26 + $0x10] ss:$8 sps:$4 sm:$0xff]   ;;  %v9333_v8 = vld [vmem:[%s12826_s26 + $0x24] ss:$8 sps:$4 sm:$0xff]   ;;  %v9337_v10 = vld [vmem:[%s12826_s26 + $0x20] ss:$8 sps:$4 sm:$0xff]  }
   0xb   :  { %677 = vmatpush1.bf16.msra.mxu1 %v9326_v3  ;;  %353 = vmatprep.subr.bf16.mxu0 %v9327_v4  ;;  %v9332_v7 = vld [vmem:[%s12827_s12 + $0x10] ss:$8 sps:$4 sm:$0xff]   ;;  %v9335_v9 = vld [vmem:[%s12827_s12 + $0x24] ss:$8 sps:$4 sm:$0xff]   ;;  %v9338_v11 = vld [vmem:[%s12827_s12 + $0x20] ss:$8 sps:$4 sm:$0xff]  }
   0xc   :  { %678 = vmatprep.subr.bf16.mxu1 %v9329_v5  ;;  %v9339_v12 = vld [vmem:[%s12826_s26 + $0x34] ss:$8 sps:$4 sm:$0xff]   ;;  %v9343_v14 = vld [vmem:[%s12826_s26 + $0x30] ss:$8 sps:$4 sm:$0xff]   ;;  %v9345_v16 = vld [vmem:[%s12826_s26 + $0x44] ss:$8 sps:$4 sm:$0xff]  }
   0xd   :  { %v9341_v13 = vld [vmem:[%s12827_s12 + $0x34] ss:$8 sps:$4 sm:$0xff]   ;;  %v9344_v15 = vld [vmem:[%s12827_s12 + $0x30] ss:$8 sps:$4 sm:$0xff]   ;;  %v9347_v17 = vld [vmem:[%s12827_s12 + $0x44] ss:$8 sps:$4 sm:$0xff]  }
   0xe   :  { %354 = vmatpush1.bf16.msra.mxu0 %v9331_v6  ;;  %v9349_v18 = vld [vmem:[%s12826_s26 + $0x40] ss:$8 sps:$4 sm:$0xff]   ;;  %v9351_v20 = vld [vmem:[%s12826_s26 + $0x54] ss:$8 sps:$4 sm:$0xff]   ;;  %v9355_v22 = vld [vmem:[%s12826_s26 + $0x50] ss:$8 sps:$4 sm:$0xff]  }
   0xf   :  { %679 = vmatpush1.bf16.msra.mxu1 %v9332_v7  ;;  %355 = vmatprep.subr.bf16.mxu0 %v9333_v8  ;;  %v9350_v19 = vld [vmem:[%s12827_s12 + $0x40] ss:$8 sps:$4 sm:$0xff]   ;;  %v9353_v21 = vld [vmem:[%s12827_s12 + $0x54] ss:$8 sps:$4 sm:$0xff]   ;;  %v9356_v23 = vld [vmem:[%s12827_s12 + $0x50] ss:$8 sps:$4 sm:$0xff]  }
  0x10   :  { %680 = vmatprep.subr.bf16.mxu1 %v9335_v9  ;;  %v9357_v24 = vld [vmem:[%s12826_s26 + $0x64] ss:$8 sps:$4 sm:$0xff]   ;;  %v9361_v26 = vld [vmem:[%s12826_s26 + $0x60] ss:$8 sps:$4 sm:$0xff]   ;;  %v9363_v28 = vld [vmem:[%s12826_s26 + $0x74] ss:$8 sps:$4 sm:$0xff]  }
  0x11   :  { %v9359_v25 = vld [vmem:[%s12827_s12 + $0x64] ss:$8 sps:$4 sm:$0xff]   ;;  %v9362_v27 = vld [vmem:[%s12827_s12 + $0x60] ss:$8 sps:$4 sm:$0xff]   ;;  %v9365_v29 = vld [vmem:[%s12827_s12 + $0x74] ss:$8 sps:$4 sm:$0xff]  }
  0x12   :  { %356 = vmatpush1.bf16.msra.mxu0 %v9337_v10  ;;  %v9367_v31 = vld [vmem:[%s12826_s26 + $0x70] ss:$8 sps:$4 sm:$0xff]   ;;  %v9369_v33 = vld [vmem:[%s12826_s26 + $0x84] ss:$8 sps:$4 sm:$0x3f]   ;;  %v102_v1 = vshrl.u32 %v101_v0, 7 }
  0x13   :  { %681 = vmatpush1.bf16.msra.mxu1 %v9338_v11  ;;  %357 = vmatprep.subr.bf16.mxu0 %v9339_v12  ;;  %v9368_v32 = vld [vmem:[%s12827_s12 + $0x70] ss:$8 sps:$4 sm:$0xff]   ;;  %v9371_v34 = vld [vmem:[%s12827_s12 + $0x84] ss:$8 sps:$4 sm:$0x3f]   ;;  %vm6152_vm5 = vcmask 850944  }
  0x14   :  { %682 = vmatprep.subr.bf16.mxu1 %v9341_v13  ;;  %v9373_v35 = vld [vmem:[%s12826_s26 + $0x80] ss:$8 sps:$4 sm:$0x3f]   ;;  %v9402_v56 = vld [vmem:[%s12804_s0 + $0x94] ss:$8 sps:$4 sm:$0xff]   ;;  %v10486_v3 = vsub.s32 0, %v102_v1 }
  0x15   :  { %v9374_v36 = vld [vmem:[%s12827_s12 + $0x80] ss:$8 sps:$4 sm:$0x3f]   ;;  %v346_v37 = vsel %vm344_vm1, %v9373_v35, 0  ;;  %v9404_v57 = vld [vmem:[%s12804_s0 + $0x90] ss:$8 sps:$4 sm:$0xff]  }
  0x16   :  { %358 = vmatpush1.bf16.msra.mxu0 %v9343_v14  ;;  %v671_v38 = vsel %vm344_vm1, %v9374_v36, 0  ;;  %v9405_v58 = vld [vmem:[%s12804_s0 + $0xa4] ss:$8 sps:$4 sm:$0xff]   ;;  %v9407_v59 = vld [vmem:[%s12804_s0 + $0xa0] ss:$8 sps:$4 sm:$0xff]   ;;  %v10491_v5 = vsub.s32 1, %v102_v1 }
  0x17   :  { %683 = vmatpush1.bf16.msra.mxu1 %v9344_v15  ;;  %359 = vmatprep.subr.bf16.mxu0 %v9345_v16  ;;  %v9408_v60 = vld [vmem:[%s12804_s0 + $0xb4] ss:$8 sps:$4 sm:$0xff]   ;;  %v9410_v61 = vld [vmem:[%s12804_s0 + $0xb0] ss:$8 sps:$4 sm:$0xff]   ;;  %v9413_v62 = vld [vmem:[%s12805_s5 + $0x4] ss:$8 sps:$4 sm:$0xff]  }
  0x18   :  { %684 = vmatprep.subr.bf16.mxu1 %v9347_v17  ;;  %v9416_v63 = vld [vmem:[%s12806_s6 + $0x4] ss:$8 sps:$4 sm:$0xff]   ;;  %v99_v2 = vld [vmem:[%s12807_s3] sm:$0x3]  ;;  %vm10180_vm6 = vmmov 0   ;;  %vm7607_vm7 = vcmask 818176  }
  0x19   :  { %v570_v4 = vld [vmem:[%s12808_s4] sm:$0x3]  ;;  %v10494_v6 = vrot.slane %v99_v2, %v10486_v3  ;;  %v10500_v8 = vrot.slane %v99_v2, %v10491_v5  ;;  %vm7684_vm8 = vcmask 15360  }
  0x1a   :  { %360 = vmatpush1.bf16.msra.mxu0 %v9349_v18  ;;  %v10497_v7 = vrot.slane %v570_v4, %v10486_v3  ;;  %v10503_v9 = vrot.slane %v570_v4, %v10491_v5 }
  0x1b   :  { %685 = vmatpush1.bf16.msra.mxu1 %v9350_v19  ;;  %361 = vmatprep.subr.bf16.mxu0 %v9351_v20 }
  0x1c   :  { %686 = vmatprep.subr.bf16.mxu1 %v9353_v21 }
  0x1e   :  { %362 = vmatpush1.bf16.msra.mxu0 %v9355_v22 }
  0x1f   :  { %687 = vmatpush1.bf16.msra.mxu1 %v9356_v23  ;;  %363 = vmatprep.subr.bf16.mxu0 %v9357_v24 }
  0x20   :  { %688 = vmatprep.subr.bf16.mxu1 %v9359_v25 }
  0x22   :  { %364 = vmatpush1.bf16.msra.mxu0 %v9361_v26 }
  0x23   :  { %689 = vmatpush1.bf16.msra.mxu1 %v9362_v27  ;;  %365 = vmatprep.subr.bf16.mxu0 %v9363_v28 }
  0x24   :  { %690 = vmatprep.subr.bf16.mxu1 %v9365_v29 }
  0x26   :  { %366 = vmatpush1.bf16.msra.mxu0 %v9367_v31 }
  0x27   :  { %691 = vmatpush1.bf16.msra.mxu1 %v9368_v32  ;;  %7732 = vmatprep.subr.msk.bf16.mxu0 %vm344_vm1, %v9369_v33 }
  0x28   :  { %7763 = vmatprep.subr.msk.bf16.mxu1 %vm344_vm1, %v9371_v34 }
  0x2a   :  { %368 = vmatpush1.bf16.msra.mxu0 %v346_v37 }
  0x2b   :  { %693 = vmatpush1.bf16.msra.mxu1 %v671_v38 }
  0x2d   :  { %384 = vmatmul.mubr.bf16.vlgmr.msra.gmra.mrb[0].mxu0 %v9375_v39 }
  0x2e   :  { %709 = vmatmul.mubr.bf16.vlgmr.msra.gmra.mrb[0].mxu1 %v9375_v39  ;;  %7734 = vmatprep.mubr.msk.bf16.mxu0 %vm307_vm0, %v9378_v40 }
  0x2f   :  { %7765 = vmatprep.mubr.msk.bf16.mxu1 %vm307_vm0, %v9378_v40 }
  0x35   :  { %394 = vmatmul.mubr.bf16.gmra.mrb[4].mxu0 %v9380_v41 }
  0x36   :  { %719 = vmatmul.mubr.bf16.gmra.mrb[4].mxu1 %v9380_v41  ;;  %7735 = vmatprep.mubr.msk.bf16.mxu0 %vm307_vm0, %v9381_v42 }
  0x37   :  { %7766 = vmatprep.mubr.msk.bf16.mxu1 %vm307_vm0, %v9381_v42 }
  0x3d   :  { %404 = vmatmul.mubr.bf16.gmra.mrb[8].mxu0 %v9383_v43 }
  0x3e   :  { %729 = vmatmul.mubr.bf16.gmra.mrb[8].mxu1 %v9383_v43  ;;  %7736 = vmatprep.mubr.msk.bf16.mxu0 %vm307_vm0, %v9384_v44 }
  0x3f   :  { %7767 = vmatprep.mubr.msk.bf16.mxu1 %vm307_vm0, %v9384_v44 }
  0x45   :  { %414 = vmatmul.mubr.bf16.gmra.mrb[12].mxu0 %v9386_v45 }
  0x46   :  { %739 = vmatmul.mubr.bf16.gmra.mrb[12].mxu1 %v9386_v45  ;;  %7737 = vmatprep.mubr.msk.bf16.mxu0 %vm307_vm0, %v9387_v46 }
  0x47   :  { %7768 = vmatprep.mubr.msk.bf16.mxu1 %vm307_vm0, %v9387_v46 }
  0x4d   :  { %424 = vmatmul.mubr.bf16.gmra.mrb[16].mxu0 %v9389_v47 }
  0x4e   :  { %749 = vmatmul.mubr.bf16.gmra.mrb[16].mxu1 %v9389_v47  ;;  %7738 = vmatprep.mubr.msk.bf16.mxu0 %vm307_vm0, %v9390_v48 }
  0x4f   :  { %7769 = vmatprep.mubr.msk.bf16.mxu1 %vm307_vm0, %v9390_v48 }
  0x55   :  { %434 = vmatmul.mubr.bf16.gmra.mrb[20].mxu0 %v9392_v49 }
  0x56   :  { %759 = vmatmul.mubr.bf16.gmra.mrb[20].mxu1 %v9392_v49  ;;  %7739 = vmatprep.mubr.msk.bf16.mxu0 %vm307_vm0, %v9393_v50 }
  0x57   :  { %7770 = vmatprep.mubr.msk.bf16.mxu1 %vm307_vm0, %v9393_v50 }
  0x5d   :  { %444 = vmatmul.mubr.bf16.gmra.mrb[24].mxu0 %v9395_v51 }
  0x5e   :  { %769 = vmatmul.mubr.bf16.gmra.mrb[24].mxu1 %v9395_v51  ;;  %7740 = vmatprep.mubr.msk.bf16.mxu0 %vm307_vm0, %v9396_v52 }
  0x5f   :  { %7771 = vmatprep.mubr.msk.bf16.mxu1 %vm307_vm0, %v9396_v52 }
  0x65   :  { %454 = vmatmul.mubr.bf16.gmra.mrb[28].mxu0 %v9398_v53 }
  0x66   :  { %779 = vmatmul.mubr.bf16.gmra.mrb[28].mxu1 %v9398_v53  ;;  %7741 = vmatprep.mubr.msk.bf16.mxu0 %vm307_vm0, %v9399_v54 }
  0x67   :  { %7772 = vmatprep.mubr.msk.bf16.mxu1 %vm307_vm0, %v9399_v54 }
  0x6d   :  { %464 = vmatmul.mubr.bf16.gmra.mrb[32].mxu0 %v9401_v55 }
  0x6e   :  { %789 = vmatmul.mubr.bf16.gmra.mrb[32].mxu1 %v9401_v55  ;;  %7742 = vmatprep.mubr.msk.bf16.mxu0 %vm307_vm0, %v9402_v56 }
  0x6f   :  { %7773 = vmatprep.mubr.msk.bf16.mxu1 %vm307_vm0, %v9402_v56 }
  0x75   :  { %474 = vmatmul.mubr.bf16.gmra.mrb[36].mxu0 %v9404_v57 }
  0x76   :  { %799 = vmatmul.mubr.bf16.gmra.mrb[36].mxu1 %v9404_v57  ;;  %7743 = vmatprep.mubr.msk.bf16.mxu0 %vm307_vm0, %v9405_v58 }
  0x77   :  { %7774 = vmatprep.mubr.msk.bf16.mxu1 %vm307_vm0, %v9405_v58 }
  0x7d   :  { %484 = vmatmul.mubr.bf16.gmra.mrb[40].mxu0 %v9407_v59 }
  0x7e   :  { %809 = vmatmul.mubr.bf16.gmra.mrb[40].mxu1 %v9407_v59  ;;  %7744 = vmatprep.mubr.msk.bf16.mxu0 %vm307_vm0, %v9408_v60 }
  0x7f   :  { %7775 = vmatprep.mubr.msk.bf16.mxu1 %vm307_vm0, %v9408_v60 }
  0x85   :  { %494 = vmatmul.mubr.bf16.gmra.mrb[44].mxu0 %v9410_v61 }
  0x86   :  { %819 = vmatmul.mubr.bf16.gmra.mrb[44].mxu1 %v9410_v61  ;;  %7842 = vmatprep.mubr.msk.bf16.mxu0 %vm1308_vm2, %v9413_v62 }
  0x87   :  { %7941 = vmatprep.mubr.msk.bf16.mxu1 %vm1308_vm2, %v9416_v63 }
 0x100   :  { %v385_v10 = vpop.f32.mrb[0].mxu0 }
 0x101   :  { %v710_v11 = vpop.f32.mrb[0].mxu1  ;;  %v386_v12 = vadd.f32 %v385_v10, %v10494_v6  ;;  %v387_v14 = vpop.f32.mrb[1].mxu0 }
 0x102   :  { %v711_v13 = vadd.f32 %v710_v11, %v10497_v7  ;;  %v712_v15 = vpop.f32.mrb[1].mxu1  ;;  %v388_v16 = vadd.f32 %v387_v14, %v10500_v8  ;;  %v389_v18 = vpop.f32.mrb[2].mxu0 }
 0x103   :  { %v713_v17 = vadd.f32 %v712_v15, %v10503_v9  ;;  %v714_v19 = vpop.f32.mrb[2].mxu1  ;;  %v504_v20 = vmax.f32 %v386_v12, 0.0  ;;  %v390_v22 = vadd.f32 %v389_v18, %v10494_v6  ;;  %v391_v24 = vpop.f32.mrb[3].mxu0 }
 0x104   :  { %v829_v21 = vmax.f32 %v711_v13, 0.0  ;;  %v715_v23 = vadd.f32 %v714_v19, %v10497_v7  ;;  %v716_v25 = vpop.f32.mrb[3].mxu1  ;;  %v505_v26 = vmax.f32 %v388_v16, 0.0  ;;  %v392_v28 = vadd.f32 %v391_v24, %v10500_v8 }
 0x105   :  { %v830_v27 = vmax.f32 %v713_v17, 0.0  ;;  %v717_v29 = vadd.f32 %v716_v25, %v10503_v9  ;;  %v506_v31 = vmax.f32 %v390_v22, 0.0 }
 0x106   :  { %v877_v30 = vmax.f32 %v504_v20, %v829_v21  ;;  %v831_v32 = vmax.f32 %v715_v23, 0.0  ;;  %v507_v34 = vmax.f32 %v392_v28, 0.0 }
 0x107   :  { %v878_v33 = vmax.f32 %v505_v26, %v830_v27  ;;  %v832_v35 = vmax.f32 %v717_v29, 0.0 }
 0x108   :  { %v879_v36 = vmax.f32 %v506_v31, %v831_v32  ;;  %v395_v38 = vpop.f32.mrb[4].mxu0 }
 0x109   :  { %v880_v37 = vmax.f32 %v507_v34, %v832_v35  ;;  %v720_v39 = vpop.f32.mrb[4].mxu1  ;;  %v396_v41 = vadd.f32 %v395_v38, %v10494_v6  ;;  %v397_v43 = vpop.f32.mrb[5].mxu0 }
 0x10a   :  { %v925_v40 = vpack.c.bf16 %v879_v36, %v877_v30  ;;  %v721_v42 = vadd.f32 %v720_v39, %v10497_v7  ;;  %v722_v44 = vpop.f32.mrb[5].mxu1  ;;  %v398_v45 = vadd.f32 %v397_v43, %v10500_v8  ;;  %v399_v47 = vpop.f32.mrb[6].mxu0 }
 0x10b   :  { %v723_v46 = vadd.f32 %v722_v44, %v10503_v9  ;;  %v724_v48 = vpop.f32.mrb[6].mxu1  ;;  %v926_v49 = vpack.c.bf16 %v880_v37, %v878_v33  ;;  %v508_v50 = vmax.f32 %v396_v41, 0.0  ;;  %v400_v52 = vadd.f32 %v399_v47, %v10494_v6  ;;  %v401_v54 = vpop.f32.mrb[7].mxu0 }
 0x10c   :  { %v833_v51 = vmax.f32 %v721_v42, 0.0  ;;  %v725_v53 = vadd.f32 %v724_v48, %v10497_v7  ;;  %v726_v55 = vpop.f32.mrb[7].mxu1  ;;  %v509_v56 = vmax.f32 %v398_v45, 0.0  ;;  %v402_v58 = vadd.f32 %v401_v54, %v10500_v8 }
 0x10d   :  { %v834_v57 = vmax.f32 %v723_v46, 0.0  ;;  %v727_v59 = vadd.f32 %v726_v55, %v10503_v9  ;;  %1408 = vmatprep.subr.bf16.mxu0 %v926_v49  ;;  %2227 = vmatprep.subr.bf16.mxu1 %v926_v49  ;;  %v510_v61 = vmax.f32 %v400_v52, 0.0 }
 0x10e   :  { %v881_v60 = vmax.f32 %v508_v50, %v833_v51  ;;  %v835_v62 = vmax.f32 %v725_v53, 0.0  ;;  %1409 = vmatpush1.bf16.msra.mxu0 %v925_v40  ;;  %2228 = vmatpush1.bf16.msra.mxu1 %v925_v40  ;;  %v511_v0 = vmax.f32 %v402_v58, 0.0 }
 0x10f   :  { %v882_v63 = vmax.f32 %v509_v56, %v834_v57  ;;  %v836_v1 = vmax.f32 %v727_v59, 0.0 }
 0x110   :  { %v883_v2 = vmax.f32 %v510_v61, %v835_v62  ;;  %v405_v10 = vpop.f32.mrb[8].mxu0 }
 0x111   :  { %v884_v4 = vmax.f32 %v511_v0, %v836_v1  ;;  %v730_v11 = vpop.f32.mrb[8].mxu1  ;;  %v406_v13 = vadd.f32 %v405_v10, %v10494_v6  ;;  %v407_v15 = vpop.f32.mrb[9].mxu0 }
 0x112   :  { %v927_v12 = vpack.c.bf16 %v883_v2, %v881_v60  ;;  %v731_v14 = vadd.f32 %v730_v11, %v10497_v7  ;;  %v732_v16 = vpop.f32.mrb[9].mxu1  ;;  %v408_v17 = vadd.f32 %v407_v15, %v10500_v8  ;;  %v409_v19 = vpop.f32.mrb[10].mxu0 }
 0x113   :  { %v733_v18 = vadd.f32 %v732_v16, %v10503_v9  ;;  %v734_v20 = vpop.f32.mrb[10].mxu1  ;;  %v928_v21 = vpack.c.bf16 %v884_v4, %v882_v63  ;;  %v512_v22 = vmax.f32 %v406_v13, 0.0  ;;  %v410_v24 = vadd.f32 %v409_v19, %v10494_v6  ;;  %v411_v26 = vpop.f32.mrb[11].mxu0 }
 0x114   :  { %v837_v23 = vmax.f32 %v731_v14, 0.0  ;;  %v735_v25 = vadd.f32 %v734_v20, %v10497_v7  ;;  %v736_v27 = vpop.f32.mrb[11].mxu1  ;;  %v513_v28 = vmax.f32 %v408_v17, 0.0  ;;  %v412_v30 = vadd.f32 %v411_v26, %v10500_v8 }
 0x115   :  { %v838_v29 = vmax.f32 %v733_v18, 0.0  ;;  %v737_v31 = vadd.f32 %v736_v27, %v10503_v9  ;;  %1410 = vmatprep.subr.bf16.mxu0 %v928_v21  ;;  %2229 = vmatprep.subr.bf16.mxu1 %v928_v21  ;;  %v514_v33 = vmax.f32 %v410_v24, 0.0 }
 0x116   :  { %v885_v32 = vmax.f32 %v512_v22, %v837_v23  ;;  %v839_v34 = vmax.f32 %v735_v25, 0.0  ;;  %1411 = vmatpush1.bf16.msra.mxu0 %v927_v12  ;;  %2230 = vmatpush1.bf16.msra.mxu1 %v927_v12  ;;  %v515_v36 = vmax.f32 %v412_v30, 0.0 }
 0x117   :  { %v886_v35 = vmax.f32 %v513_v28, %v838_v29  ;;  %v840_v37 = vmax.f32 %v737_v31, 0.0 }
 0x118   :  { %v887_v38 = vmax.f32 %v514_v33, %v839_v34  ;;  %v415_v40 = vpop.f32.mrb[12].mxu0 }
 0x119   :  { %v888_v39 = vmax.f32 %v515_v36, %v840_v37  ;;  %v740_v41 = vpop.f32.mrb[12].mxu1  ;;  %v416_v43 = vadd.f32 %v415_v40, %v10494_v6  ;;  %v417_v45 = vpop.f32.mrb[13].mxu0 }
 0x11a   :  { %v929_v42 = vpack.c.bf16 %v887_v38, %v885_v32  ;;  %v741_v44 = vadd.f32 %v740_v41, %v10497_v7  ;;  %v742_v46 = vpop.f32.mrb[13].mxu1  ;;  %v418_v47 = vadd.f32 %v417_v45, %v10500_v8  ;;  %v419_v49 = vpop.f32.mrb[14].mxu0 }
 0x11b   :  { %v743_v48 = vadd.f32 %v742_v46, %v10503_v9  ;;  %v744_v50 = vpop.f32.mrb[14].mxu1  ;;  %v930_v51 = vpack.c.bf16 %v888_v39, %v886_v35  ;;  %v516_v52 = vmax.f32 %v416_v43, 0.0  ;;  %v420_v54 = vadd.f32 %v419_v49, %v10494_v6  ;;  %v421_v56 = vpop.f32.mrb[15].mxu0 }
 0x11c   :  { %v841_v53 = vmax.f32 %v741_v44, 0.0  ;;  %v745_v55 = vadd.f32 %v744_v50, %v10497_v7  ;;  %v746_v57 = vpop.f32.mrb[15].mxu1  ;;  %v517_v58 = vmax.f32 %v418_v47, 0.0  ;;  %v422_v60 = vadd.f32 %v421_v56, %v10500_v8 }
 0x11d   :  { %v842_v59 = vmax.f32 %v743_v48, 0.0  ;;  %v747_v61 = vadd.f32 %v746_v57, %v10503_v9  ;;  %1412 = vmatprep.subr.bf16.mxu0 %v930_v51  ;;  %2231 = vmatprep.subr.bf16.mxu1 %v930_v51  ;;  %v518_v63 = vmax.f32 %v420_v54, 0.0 }
 0x11e   :  { %v889_v62 = vmax.f32 %v516_v52, %v841_v53  ;;  %v843_v0 = vmax.f32 %v745_v55, 0.0  ;;  %1413 = vmatpush1.bf16.msra.mxu0 %v929_v42  ;;  %2232 = vmatpush1.bf16.msra.mxu1 %v929_v42  ;;  %v519_v2 = vmax.f32 %v422_v60, 0.0 }
 0x11f   :  { %v890_v1 = vmax.f32 %v517_v58, %v842_v59  ;;  %v844_v4 = vmax.f32 %v747_v61, 0.0 }
 0x120   :  { %v891_v10 = vmax.f32 %v518_v63, %v843_v0  ;;  %v425_v12 = vpop.f32.mrb[16].mxu0 }
 0x121   :  { %v892_v11 = vmax.f32 %v519_v2, %v844_v4  ;;  %v750_v13 = vpop.f32.mrb[16].mxu1  ;;  %v426_v15 = vadd.f32 %v425_v12, %v10494_v6  ;;  %v427_v17 = vpop.f32.mrb[17].mxu0 }
 0x122   :  { %v931_v14 = vpack.c.bf16 %v891_v10, %v889_v62  ;;  %v751_v16 = vadd.f32 %v750_v13, %v10497_v7  ;;  %v752_v18 = vpop.f32.mrb[17].mxu1  ;;  %v428_v19 = vadd.f32 %v427_v17, %v10500_v8  ;;  %v429_v21 = vpop.f32.mrb[18].mxu0 }
 0x123   :  { %v753_v20 = vadd.f32 %v752_v18, %v10503_v9  ;;  %v754_v22 = vpop.f32.mrb[18].mxu1  ;;  %v932_v23 = vpack.c.bf16 %v892_v11, %v890_v1  ;;  %v520_v24 = vmax.f32 %v426_v15, 0.0  ;;  %v430_v26 = vadd.f32 %v429_v21, %v10494_v6  ;;  %v431_v28 = vpop.f32.mrb[19].mxu0 }
 0x124   :  { %v845_v25 = vmax.f32 %v751_v16, 0.0  ;;  %v755_v27 = vadd.f32 %v754_v22, %v10497_v7  ;;  %v756_v29 = vpop.f32.mrb[19].mxu1  ;;  %v521_v30 = vmax.f32 %v428_v19, 0.0  ;;  %v432_v32 = vadd.f32 %v431_v28, %v10500_v8 }
 0x125   :  { %v846_v31 = vmax.f32 %v753_v20, 0.0  ;;  %v757_v33 = vadd.f32 %v756_v29, %v10503_v9  ;;  %1414 = vmatprep.subr.bf16.mxu0 %v932_v23  ;;  %2233 = vmatprep.subr.bf16.mxu1 %v932_v23  ;;  %v522_v35 = vmax.f32 %v430_v26, 0.0 }
 0x126   :  { %v893_v34 = vmax.f32 %v520_v24, %v845_v25  ;;  %v847_v36 = vmax.f32 %v755_v27, 0.0  ;;  %1415 = vmatpush1.bf16.msra.mxu0 %v931_v14  ;;  %2234 = vmatpush1.bf16.msra.mxu1 %v931_v14  ;;  %v523_v38 = vmax.f32 %v432_v32, 0.0 }
 0x127   :  { %v894_v37 = vmax.f32 %v521_v30, %v846_v31  ;;  %v848_v39 = vmax.f32 %v757_v33, 0.0 }
 0x128   :  { %v895_v40 = vmax.f32 %v522_v35, %v847_v36  ;;  %v435_v42 = vpop.f32.mrb[20].mxu0 }
 0x129   :  { %v896_v41 = vmax.f32 %v523_v38, %v848_v39  ;;  %v760_v43 = vpop.f32.mrb[20].mxu1  ;;  %v436_v45 = vadd.f32 %v435_v42, %v10494_v6  ;;  %v437_v47 = vpop.f32.mrb[21].mxu0 }
 0x12a   :  { %v933_v44 = vpack.c.bf16 %v895_v40, %v893_v34  ;;  %v761_v46 = vadd.f32 %v760_v43, %v10497_v7  ;;  %v762_v48 = vpop.f32.mrb[21].mxu1  ;;  %v438_v49 = vadd.f32 %v437_v47, %v10500_v8  ;;  %v439_v51 = vpop.f32.mrb[22].mxu0 }
 0x12b   :  { %v763_v50 = vadd.f32 %v762_v48, %v10503_v9  ;;  %v764_v52 = vpop.f32.mrb[22].mxu1  ;;  %v934_v53 = vpack.c.bf16 %v896_v41, %v894_v37  ;;  %v524_v54 = vmax.f32 %v436_v45, 0.0  ;;  %v440_v56 = vadd.f32 %v439_v51, %v10494_v6  ;;  %v441_v58 = vpop.f32.mrb[23].mxu0 }
 0x12c   :  { %v849_v55 = vmax.f32 %v761_v46, 0.0  ;;  %v765_v57 = vadd.f32 %v764_v52, %v10497_v7  ;;  %v766_v59 = vpop.f32.mrb[23].mxu1  ;;  %v525_v60 = vmax.f32 %v438_v49, 0.0  ;;  %v442_v62 = vadd.f32 %v441_v58, %v10500_v8 }
 0x12d   :  { %v850_v61 = vmax.f32 %v763_v50, 0.0  ;;  %v767_v63 = vadd.f32 %v766_v59, %v10503_v9  ;;  %1416 = vmatprep.subr.bf16.mxu0 %v934_v53  ;;  %2235 = vmatprep.subr.bf16.mxu1 %v934_v53  ;;  %v526_v1 = vmax.f32 %v440_v56, 0.0 }
 0x12e   :  { %v897_v0 = vmax.f32 %v524_v54, %v849_v55  ;;  %v851_v2 = vmax.f32 %v765_v57, 0.0  ;;  %1417 = vmatpush1.bf16.msra.mxu0 %v933_v44  ;;  %2236 = vmatpush1.bf16.msra.mxu1 %v933_v44  ;;  %v527_v10 = vmax.f32 %v442_v62, 0.0 }
 0x12f   :  { %v898_v4 = vmax.f32 %v525_v60, %v850_v61  ;;  %v852_v11 = vmax.f32 %v767_v63, 0.0 }
 0x130   :  { %v899_v12 = vmax.f32 %v526_v1, %v851_v2  ;;  %v445_v14 = vpop.f32.mrb[24].mxu0 }
 0x131   :  { %v900_v13 = vmax.f32 %v527_v10, %v852_v11  ;;  %v770_v15 = vpop.f32.mrb[24].mxu1  ;;  %v446_v17 = vadd.f32 %v445_v14, %v10494_v6  ;;  %v447_v19 = vpop.f32.mrb[25].mxu0 }
 0x132   :  { %v935_v16 = vpack.c.bf16 %v899_v12, %v897_v0  ;;  %v771_v18 = vadd.f32 %v770_v15, %v10497_v7  ;;  %v772_v20 = vpop.f32.mrb[25].mxu1  ;;  %v448_v21 = vadd.f32 %v447_v19, %v10500_v8  ;;  %v449_v23 = vpop.f32.mrb[26].mxu0 }
 0x133   :  { %v773_v22 = vadd.f32 %v772_v20, %v10503_v9  ;;  %v774_v24 = vpop.f32.mrb[26].mxu1  ;;  %v936_v25 = vpack.c.bf16 %v900_v13, %v898_v4  ;;  %v528_v26 = vmax.f32 %v446_v17, 0.0  ;;  %v450_v28 = vadd.f32 %v449_v23, %v10494_v6  ;;  %v451_v30 = vpop.f32.mrb[27].mxu0 }
 0x134   :  { %v853_v27 = vmax.f32 %v771_v18, 0.0  ;;  %v775_v29 = vadd.f32 %v774_v24, %v10497_v7  ;;  %v776_v31 = vpop.f32.mrb[27].mxu1  ;;  %v529_v32 = vmax.f32 %v448_v21, 0.0  ;;  %v452_v34 = vadd.f32 %v451_v30, %v10500_v8 }
 0x135   :  { %v854_v33 = vmax.f32 %v773_v22, 0.0  ;;  %v777_v35 = vadd.f32 %v776_v31, %v10503_v9  ;;  %1418 = vmatprep.subr.bf16.mxu0 %v936_v25  ;;  %2237 = vmatprep.subr.bf16.mxu1 %v936_v25  ;;  %v530_v37 = vmax.f32 %v450_v28, 0.0 }
 0x136   :  { %v901_v36 = vmax.f32 %v528_v26, %v853_v27  ;;  %v855_v38 = vmax.f32 %v775_v29, 0.0  ;;  %1419 = vmatpush1.bf16.msra.mxu0 %v935_v16  ;;  %2238 = vmatpush1.bf16.msra.mxu1 %v935_v16  ;;  %v531_v40 = vmax.f32 %v452_v34, 0.0 }
 0x137   :  { %v902_v39 = vmax.f32 %v529_v32, %v854_v33  ;;  %v856_v41 = vmax.f32 %v777_v35, 0.0 }
 0x138   :  { %v903_v42 = vmax.f32 %v530_v37, %v855_v38  ;;  %v455_v44 = vpop.f32.mrb[28].mxu0 }
 0x139   :  { %v904_v43 = vmax.f32 %v531_v40, %v856_v41  ;;  %v780_v45 = vpop.f32.mrb[28].mxu1  ;;  %v456_v47 = vadd.f32 %v455_v44, %v10494_v6  ;;  %v457_v49 = vpop.f32.mrb[29].mxu0 }
 0x13a   :  { %v937_v46 = vpack.c.bf16 %v903_v42, %v901_v36  ;;  %v781_v48 = vadd.f32 %v780_v45, %v10497_v7  ;;  %v782_v50 = vpop.f32.mrb[29].mxu1  ;;  %v458_v51 = vadd.f32 %v457_v49, %v10500_v8  ;;  %v459_v53 = vpop.f32.mrb[30].mxu0 }
 0x13b   :  { %v783_v52 = vadd.f32 %v782_v50, %v10503_v9  ;;  %v784_v54 = vpop.f32.mrb[30].mxu1  ;;  %v938_v55 = vpack.c.bf16 %v904_v43, %v902_v39  ;;  %v532_v56 = vmax.f32 %v456_v47, 0.0  ;;  %v460_v58 = vadd.f32 %v459_v53, %v10494_v6  ;;  %v461_v60 = vpop.f32.mrb[31].mxu0 }
 0x13c   :  { %v857_v57 = vmax.f32 %v781_v48, 0.0  ;;  %v785_v59 = vadd.f32 %v784_v54, %v10497_v7  ;;  %v786_v61 = vpop.f32.mrb[31].mxu1  ;;  %v533_v62 = vmax.f32 %v458_v51, 0.0  ;;  %v462_v0 = vadd.f32 %v461_v60, %v10500_v8 }
 0x13d   :  { %v858_v63 = vmax.f32 %v783_v52, 0.0  ;;  %v787_v1 = vadd.f32 %v786_v61, %v10503_v9  ;;  %1420 = vmatprep.subr.bf16.mxu0 %v938_v55  ;;  %2239 = vmatprep.subr.bf16.mxu1 %v938_v55  ;;  %v534_v4 = vmax.f32 %v460_v58, 0.0 }
 0x13e   :  { %v905_v2 = vmax.f32 %v532_v56, %v857_v57  ;;  %v859_v10 = vmax.f32 %v785_v59, 0.0  ;;  %1421 = vmatpush1.bf16.msra.mxu0 %v937_v46  ;;  %2240 = vmatpush1.bf16.msra.mxu1 %v937_v46  ;;  %v535_v12 = vmax.f32 %v462_v0, 0.0 }
 0x13f   :  { %v906_v11 = vmax.f32 %v533_v62, %v858_v63  ;;  %v860_v13 = vmax.f32 %v787_v1, 0.0 }
 0x140   :  { %v907_v14 = vmax.f32 %v534_v4, %v859_v10  ;;  %v465_v16 = vpop.f32.mrb[32].mxu0 }
 0x141   :  { %v908_v15 = vmax.f32 %v535_v12, %v860_v13  ;;  %v790_v17 = vpop.f32.mrb[32].mxu1  ;;  %v466_v19 = vadd.f32 %v465_v16, %v10494_v6  ;;  %v467_v21 = vpop.f32.mrb[33].mxu0 }
 0x142   :  { %v939_v18 = vpack.c.bf16 %v907_v14, %v905_v2  ;;  %v791_v20 = vadd.f32 %v790_v17, %v10497_v7  ;;  %v792_v22 = vpop.f32.mrb[33].mxu1  ;;  %v468_v23 = vadd.f32 %v467_v21, %v10500_v8  ;;  %v469_v25 = vpop.f32.mrb[34].mxu0 }
 0x143   :  { %v793_v24 = vadd.f32 %v792_v22, %v10503_v9  ;;  %v794_v26 = vpop.f32.mrb[34].mxu1  ;;  %v940_v27 = vpack.c.bf16 %v908_v15, %v906_v11  ;;  %v536_v28 = vmax.f32 %v466_v19, 0.0  ;;  %v470_v30 = vadd.f32 %v469_v25, %v10494_v6  ;;  %v471_v32 = vpop.f32.mrb[35].mxu0 }
 0x144   :  { %v861_v29 = vmax.f32 %v791_v20, 0.0  ;;  %v795_v31 = vadd.f32 %v794_v26, %v10497_v7  ;;  %v796_v33 = vpop.f32.mrb[35].mxu1  ;;  %v537_v34 = vmax.f32 %v468_v23, 0.0  ;;  %v472_v36 = vadd.f32 %v471_v32, %v10500_v8 }
 0x145   :  { %v862_v35 = vmax.f32 %v793_v24, 0.0  ;;  %v797_v37 = vadd.f32 %v796_v33, %v10503_v9  ;;  %1422 = vmatprep.subr.bf16.mxu0 %v940_v27  ;;  %2241 = vmatprep.subr.bf16.mxu1 %v940_v27  ;;  %v538_v39 = vmax.f32 %v470_v30, 0.0 }
 0x146   :  { %v909_v38 = vmax.f32 %v536_v28, %v861_v29  ;;  %v863_v40 = vmax.f32 %v795_v31, 0.0  ;;  %1423 = vmatpush1.bf16.msra.mxu0 %v939_v18  ;;  %2242 = vmatpush1.bf16.msra.mxu1 %v939_v18  ;;  %v539_v42 = vmax.f32 %v472_v36, 0.0 }
 0x147   :  { %v910_v41 = vmax.f32 %v537_v34, %v862_v35  ;;  %v864_v43 = vmax.f32 %v797_v37, 0.0 }
 0x148   :  { %v911_v44 = vmax.f32 %v538_v39, %v863_v40  ;;  %v475_v46 = vpop.f32.mrb[36].mxu0 }
 0x149   :  { %v912_v45 = vmax.f32 %v539_v42, %v864_v43  ;;  %v800_v47 = vpop.f32.mrb[36].mxu1  ;;  %v476_v49 = vadd.f32 %v475_v46, %v10494_v6  ;;  %v477_v51 = vpop.f32.mrb[37].mxu0 }
 0x14a   :  { %v941_v48 = vpack.c.bf16 %v911_v44, %v909_v38  ;;  %v801_v50 = vadd.f32 %v800_v47, %v10497_v7  ;;  %v802_v52 = vpop.f32.mrb[37].mxu1  ;;  %v478_v53 = vadd.f32 %v477_v51, %v10500_v8  ;;  %v479_v55 = vpop.f32.mrb[38].mxu0 }
 0x14b   :  { %v803_v54 = vadd.f32 %v802_v52, %v10503_v9  ;;  %v804_v56 = vpop.f32.mrb[38].mxu1  ;;  %v942_v57 = vpack.c.bf16 %v912_v45, %v910_v41  ;;  %v540_v58 = vmax.f32 %v476_v49, 0.0  ;;  %v480_v60 = vadd.f32 %v479_v55, %v10494_v6  ;;  %v481_v62 = vpop.f32.mrb[39].mxu0 }
 0x14c   :  { %v865_v59 = vmax.f32 %v801_v50, 0.0  ;;  %v805_v61 = vadd.f32 %v804_v56, %v10497_v7  ;;  %v806_v63 = vpop.f32.mrb[39].mxu1  ;;  %v541_v0 = vmax.f32 %v478_v53, 0.0  ;;  %v482_v2 = vadd.f32 %v481_v62, %v10500_v8 }
 0x14d   :  { %v866_v1 = vmax.f32 %v803_v54, 0.0  ;;  %v807_v4 = vadd.f32 %v806_v63, %v10503_v9  ;;  %1424 = vmatprep.subr.bf16.mxu0 %v942_v57  ;;  %2243 = vmatprep.subr.bf16.mxu1 %v942_v57  ;;  %v542_v11 = vmax.f32 %v480_v60, 0.0 }
 0x14e   :  { %v913_v10 = vmax.f32 %v540_v58, %v865_v59  ;;  %v867_v12 = vmax.f32 %v805_v61, 0.0  ;;  %1425 = vmatpush1.bf16.msra.mxu0 %v941_v48  ;;  %2244 = vmatpush1.bf16.msra.mxu1 %v941_v48  ;;  %v543_v14 = vmax.f32 %v482_v2, 0.0 }
 0x14f   :  { %v914_v13 = vmax.f32 %v541_v0, %v866_v1  ;;  %v868_v15 = vmax.f32 %v807_v4, 0.0 }
 0x150   :  { %v915_v16 = vmax.f32 %v542_v11, %v867_v12  ;;  %v485_v18 = vpop.f32.mrb[40].mxu0 }
 0x151   :  { %v916_v17 = vmax.f32 %v543_v14, %v868_v15  ;;  %v810_v19 = vpop.f32.mrb[40].mxu1  ;;  %v486_v21 = vadd.f32 %v485_v18, %v10494_v6  ;;  %v487_v23 = vpop.f32.mrb[41].mxu0 }
 0x152   :  { %v943_v20 = vpack.c.bf16 %v915_v16, %v913_v10  ;;  %v811_v22 = vadd.f32 %v810_v19, %v10497_v7  ;;  %v812_v24 = vpop.f32.mrb[41].mxu1  ;;  %v488_v25 = vadd.f32 %v487_v23, %v10500_v8  ;;  %v489_v27 = vpop.f32.mrb[42].mxu0  ;;  %v9419_v23 = vld [vmem:[%s12806_s6 + $0x14] ss:$8 sps:$4 sm:$0xff]  }
 0x153   :  { %v813_v26 = vadd.f32 %v812_v24, %v10503_v9  ;;  %v814_v28 = vpop.f32.mrb[42].mxu1  ;;  %v944_v29 = vpack.c.bf16 %v916_v17, %v914_v13  ;;  %v544_v30 = vmax.f32 %v486_v21, 0.0  ;;  %v490_v32 = vadd.f32 %v489_v27, %v10494_v6  ;;  %v491_v34 = vpop.f32.mrb[43].mxu0  ;;  %v9434_v21 = vld [vmem:[%s12810_s8 + $0xf4] ss:$8 sps:$4 sm:$0xff]  }
 0x154   :  { %v869_v31 = vmax.f32 %v811_v22, 0.0  ;;  %v815_v33 = vadd.f32 %v814_v28, %v10497_v7  ;;  %v816_v35 = vpop.f32.mrb[43].mxu1  ;;  %v545_v36 = vmax.f32 %v488_v25, 0.0  ;;  %v492_v38 = vadd.f32 %v491_v34, %v10500_v8  ;;  %v9417_v22 = vld [vmem:[%s12805_s5 + $0x14] ss:$8 sps:$4 sm:$0xff]  }
 0x155   :  { %v870_v37 = vmax.f32 %v813_v26, 0.0  ;;  %v817_v39 = vadd.f32 %v816_v35, %v10503_v9  ;;  %1426 = vmatprep.subr.bf16.mxu0 %v944_v29  ;;  %2245 = vmatprep.subr.bf16.mxu1 %v944_v29  ;;  %v546_v41 = vmax.f32 %v490_v32, 0.0  ;;  %v9429_v24 = vld [vmem:[%s12809_s7 + $0xf0] ss:$8 sps:$4 sm:$0xff]   ;;  %v9449_v26 = vld [vmem:[%s12809_s7 + $0x104] ss:$8 sps:$4 sm:$0xff]  }
 0x156   :  { %v917_v40 = vmax.f32 %v544_v30, %v869_v31  ;;  %v871_v42 = vmax.f32 %v815_v33, 0.0  ;;  %1427 = vmatpush1.bf16.msra.mxu0 %v943_v20  ;;  %2246 = vmatpush1.bf16.msra.mxu1 %v943_v20  ;;  %v547_v44 = vmax.f32 %v492_v38, 0.0  ;;  %v9431_v20 = vld [vmem:[%s12809_s7 + $0xf4] ss:$8 sps:$4 sm:$0xff]   ;;  %v9432_v25 = vld [vmem:[%s12810_s8 + $0xf0] ss:$8 sps:$4 sm:$0xff]  }
 0x157   :  { %v918_v43 = vmax.f32 %v545_v36, %v870_v37  ;;  %v872_v45 = vmax.f32 %v817_v39, 0.0  ;;  %v9452_v27 = vld [vmem:[%s12810_s8 + $0x104] ss:$8 sps:$4 sm:$0xff]   ;;  %v9447_v28 = vld [vmem:[%s12809_s7 + $0x100] ss:$8 sps:$4 sm:$0xff]  }
 0x158   :  { %v919_v46 = vmax.f32 %v546_v41, %v871_v42  ;;  %v495_v48 = vpop.f32.mrb[44].mxu0  ;;  %v9450_v29 = vld [vmem:[%s12810_s8 + $0x100] ss:$8 sps:$4 sm:$0xff]   ;;  %v9471_v30 = vld [vmem:[%s12809_s7 + $0x114] ss:$8 sps:$4 sm:$0xff]  }
 0x159   :  { %v920_v47 = vmax.f32 %v547_v44, %v872_v45  ;;  %v820_v49 = vpop.f32.mrb[44].mxu1  ;;  %v496_v51 = vadd.f32 %v495_v48, %v10494_v6  ;;  %v497_v53 = vpop.f32.mrb[45].mxu0  ;;  %v9474_v31 = vld [vmem:[%s12810_s8 + $0x114] ss:$8 sps:$4 sm:$0xff]   ;;  %v9421_v32 = vld [vmem:[%s12805_s5 + $0x10] ss:$8 sps:$4 sm:$0xff]  }
 0x15a   :  { %v945_v50 = vpack.c.bf16 %v919_v46, %v917_v40  ;;  %v821_v52 = vadd.f32 %v820_v49, %v10497_v7  ;;  %v822_v54 = vpop.f32.mrb[45].mxu1  ;;  %v498_v55 = vadd.f32 %v497_v53, %v10500_v8  ;;  %v499_v57 = vpop.f32.mrb[46].mxu0  ;;  %v9422_v33 = vld [vmem:[%s12806_s6 + $0x10] ss:$8 sps:$4 sm:$0xff]   ;;  %v9423_v34 = vld [vmem:[%s12805_s5 + $0x24] ss:$8 sps:$4 sm:$0xff]  }
 0x15b   :  { %v823_v56 = vadd.f32 %v822_v54, %v10503_v9  ;;  %v824_v58 = vpop.f32.mrb[46].mxu1  ;;  %v946_v59 = vpack.c.bf16 %v920_v47, %v918_v43  ;;  %v548_v60 = vmax.f32 %v496_v51, 0.0  ;;  %v500_v62 = vadd.f32 %v499_v57, %v10494_v6  ;;  %v501_v0 = vpop.f32.mrb[47].mxu0  ;;  %v9425_v35 = vld [vmem:[%s12806_s6 + $0x24] ss:$8 sps:$4 sm:$0xff]  }
 0x15c   :  { %v873_v61 = vmax.f32 %v821_v52, 0.0  ;;  %v825_v63 = vadd.f32 %v824_v58, %v10497_v7  ;;  %v826_v1 = vpop.f32.mrb[47].mxu1  ;;  %v549_v2 = vmax.f32 %v498_v55, 0.0  ;;  %v502_v10 = vadd.f32 %v501_v0, %v10500_v8  ;;  %v9411_v8 = vld [vmem:[%s12805_s5] ss:$8 sps:$4 sm:$0xff]  }
 0x15d   :  { %v874_v4 = vmax.f32 %v823_v56, 0.0  ;;  %v827_v11 = vadd.f32 %v826_v1, %v10503_v9  ;;  %1428 = vmatprep.subr.bf16.mxu0 %v946_v59  ;;  %2247 = vmatprep.subr.bf16.mxu1 %v946_v59  ;;  %v550_v13 = vmax.f32 %v500_v62, 0.0  ;;  %v9414_v9 = vld [vmem:[%s12806_s6] ss:$8 sps:$4 sm:$0xff]   ;;  %v9469_v36 = vld [vmem:[%s12809_s7 + $0x110] ss:$8 sps:$4 sm:$0xff]  }
 0x15e   :  { %v921_v12 = vmax.f32 %v548_v60, %v873_v61  ;;  %v875_v14 = vmax.f32 %v825_v63, 0.0  ;;  %1429 = vmatpush1.bf16.msra.mxu0 %v945_v50  ;;  %2248 = vmatpush1.bf16.msra.mxu1 %v945_v50  ;;  %v551_v16 = vmax.f32 %v502_v10, 0.0  ;;  %v9472_v37 = vld [vmem:[%s12810_s8 + $0x110] ss:$8 sps:$4 sm:$0xff]   ;;  %v9491_v38 = vld [vmem:[%s12809_s7 + $0x124] ss:$8 sps:$4 sm:$0xff]  }
 0x15f   :  { %v922_v15 = vmax.f32 %v549_v2, %v874_v4  ;;  %v876_v6 = vmax.f32 %v827_v11, 0.0  ;;  %v9494_v39 = vld [vmem:[%s12810_s8 + $0x124] ss:$8 sps:$4 sm:$0xff]   ;;  %v9489_v40 = vld [vmem:[%s12809_s7 + $0x120] ss:$8 sps:$4 sm:$0xff]  }
 0x160   :  { %v923_v17 = vmax.f32 %v550_v13, %v875_v14  ;;  %v9492_v41 = vld [vmem:[%s12810_s8 + $0x120] ss:$8 sps:$4 sm:$0xff]   ;;  %v9509_v44 = vld [vmem:[%s12809_s7 + $0x134] ss:$8 sps:$4 sm:$0xff]   ;;  %v9507_v48 = vld [vmem:[%s12809_s7 + $0x130] ss:$8 sps:$4 sm:$0xff]  }
 0x161   :  { %v924_v7 = vmax.f32 %v551_v16, %v876_v6  ;;  %v9427_v42 = vld [vmem:[%s12805_s5 + $0x20] ss:$8 sps:$4 sm:$0xff]   ;;  %v9512_v45 = vld [vmem:[%s12810_s8 + $0x134] ss:$8 sps:$4 sm:$0xff]   ;;  %v9510_v49 = vld [vmem:[%s12810_s8 + $0x130] ss:$8 sps:$4 sm:$0xff]  }
 0x162   :  { %v947_v18 = vpack.c.bf16 %v923_v17, %v921_v12  ;;  %v9428_v43 = vld [vmem:[%s12806_s6 + $0x20] ss:$8 sps:$4 sm:$0xff]   ;;  %v9435_v46 = vld [vmem:[%s12805_s5 + $0x34] ss:$8 sps:$4 sm:$0xff]   ;;  %v9525_v50 = vld [vmem:[%s12809_s7 + $0x144] ss:$8 sps:$4 sm:$0xff]  }
 0x163   :  { %v948_v19 = vpack.c.bf16 %v924_v7, %v922_v15  ;;  %v9437_v47 = vld [vmem:[%s12806_s6 + $0x34] ss:$8 sps:$4 sm:$0xff]   ;;  %v9528_v51 = vld [vmem:[%s12810_s8 + $0x144] ss:$8 sps:$4 sm:$0xff]   ;;  %v9523_v52 = vld [vmem:[%s12809_s7 + $0x140] ss:$8 sps:$4 sm:$0xff]  }
 0x164   :  { %v9526_v53 = vld [vmem:[%s12810_s8 + $0x140] ss:$8 sps:$4 sm:$0xff]   ;;  %v9545_v54 = vld [vmem:[%s12809_s7 + $0x154] ss:$8 sps:$4 sm:$0xff]   ;;  %v9439_v56 = vld [vmem:[%s12805_s5 + $0x30] ss:$8 sps:$4 sm:$0xff]  }
 0x165   :  { %1430 = vmatprep.subr.bf16.mxu0 %v948_v19  ;;  %2249 = vmatprep.subr.bf16.mxu1 %v948_v19  ;;  %v9548_v55 = vld [vmem:[%s12810_s8 + $0x154] ss:$8 sps:$4 sm:$0xff]   ;;  %v9440_v57 = vld [vmem:[%s12806_s6 + $0x30] ss:$8 sps:$4 sm:$0xff]   ;;  %v9441_v58 = vld [vmem:[%s12805_s5 + $0x44] ss:$8 sps:$4 sm:$0xff]  }
 0x166   :  { %1431 = vmatpush1.bf16.msra.mxu0 %v947_v18  ;;  %2250 = vmatpush1.bf16.msra.mxu1 %v947_v18  ;;  %v9443_v59 = vld [vmem:[%s12806_s6 + $0x44] ss:$8 sps:$4 sm:$0xff]   ;;  %v9543_v60 = vld [vmem:[%s12809_s7 + $0x150] ss:$8 sps:$4 sm:$0xff]   ;;  %v9561_v0 = vld [vmem:[%s12809_s7 + $0x160] ss:$8 sps:$4 sm:$0xff]  }
 0x167   :  { %3095 = vmatprep.subr.bf16.mxu0 %v9431_v20  ;;  %3377 = vmatprep.subr.bf16.mxu1 %v9434_v21  ;;  %v9546_v61 = vld [vmem:[%s12810_s8 + $0x150] ss:$8 sps:$4 sm:$0xff]   ;;  %v9563_v62 = vld [vmem:[%s12809_s7 + $0x164] ss:$8 sps:$4 sm:$0xff]   ;;  %v9564_v1 = vld [vmem:[%s12810_s8 + $0x160] ss:$8 sps:$4 sm:$0xff]  }
 0x168   :  { %v9566_v63 = vld [vmem:[%s12810_s8 + $0x164] ss:$8 sps:$4 sm:$0xff]   ;;  %v9445_v2 = vld [vmem:[%s12805_s5 + $0x40] ss:$8 sps:$4 sm:$0xff]   ;;  %v9581_v10 = vld [vmem:[%s12809_s7 + $0x174] ss:$8 sps:$4 sm:$0xff]  }
 0x169   :  { %1441 = vmatmul.mubr.bf16.vlgmr.msra.gmra.mrb[48].mxu0 %v9411_v8  ;;  %2260 = vmatmul.mubr.bf16.vlgmr.msra.gmra.mrb[48].mxu1 %v9414_v9  ;;  %v9446_v4 = vld [vmem:[%s12806_s6 + $0x40] ss:$8 sps:$4 sm:$0xff]   ;;  %v9584_v11 = vld [vmem:[%s12810_s8 + $0x174] ss:$8 sps:$4 sm:$0xff]   ;;  %v9579_v14 = vld [vmem:[%s12809_s7 + $0x170] ss:$8 sps:$4 sm:$0xff]  }
 0x16a   :  { %7843 = vmatprep.mubr.msk.bf16.mxu0 %vm1308_vm2, %v9417_v22  ;;  %7942 = vmatprep.mubr.msk.bf16.mxu1 %vm1308_vm2, %v9419_v23  ;;  %v9453_v12 = vld [vmem:[%s12805_s5 + $0x54] ss:$8 sps:$4 sm:$0xff]   ;;  %v9582_v15 = vld [vmem:[%s12810_s8 + $0x170] ss:$8 sps:$4 sm:$0xff]   ;;  %v9459_v17 = vld [vmem:[%s12805_s5 + $0x64] ss:$8 sps:$4 sm:$0xff]  }
 0x16b   :  { %3096 = vmatpush1.bf16.msra.mxu0 %v9429_v24  ;;  %3378 = vmatpush1.bf16.msra.mxu1 %v9432_v25  ;;  %v9455_v13 = vld [vmem:[%s12806_s6 + $0x54] ss:$8 sps:$4 sm:$0xff]   ;;  %v9457_v16 = vld [vmem:[%s12805_s5 + $0x50] ss:$8 sps:$4 sm:$0xff]   ;;  %v9461_v7 = vld [vmem:[%s12806_s6 + $0x64] ss:$8 sps:$4 sm:$0xff]  }
 0x16c   :  { %3097 = vmatprep.subr.bf16.mxu0 %v9449_v26  ;;  %3379 = vmatprep.subr.bf16.mxu1 %v9452_v27  ;;  %v9458_v6 = vld [vmem:[%s12806_s6 + $0x50] ss:$8 sps:$4 sm:$0xff]   ;;  %v9597_v18 = vld [vmem:[%s12809_s7 + $0x180] ss:$8 sps:$4 sm:$0xff]   ;;  %v9599_v19 = vld [vmem:[%s12809_s7 + $0x184] ss:$8 sps:$4 sm:$0xff]  }
 0x16d   :  { %v9600_v8 = vld [vmem:[%s12810_s8 + $0x180] ss:$8 sps:$4 sm:$0xff]   ;;  %v9602_v9 = vld [vmem:[%s12810_s8 + $0x184] ss:$8 sps:$4 sm:$0xff]   ;;  %v9465_v22 = vld [vmem:[%s12805_s5 + $0x74] ss:$8 sps:$4 sm:$0xff]  }
 0x16e   :  { %v9463_v20 = vld [vmem:[%s12805_s5 + $0x60] ss:$8 sps:$4 sm:$0xff]   ;;  %v9467_v23 = vld [vmem:[%s12806_s6 + $0x74] ss:$8 sps:$4 sm:$0xff]   ;;  %v9475_v24 = vld [vmem:[%s12805_s5 + $0x70] ss:$8 sps:$4 sm:$0xff]  }
 0x16f   :  { %3098 = vmatpush1.bf16.msra.mxu0 %v9447_v28  ;;  %3380 = vmatpush1.bf16.msra.mxu1 %v9450_v29  ;;  %v9464_v21 = vld [vmem:[%s12806_s6 + $0x60] ss:$8 sps:$4 sm:$0xff]   ;;  %v9476_v25 = vld [vmem:[%s12806_s6 + $0x70] ss:$8 sps:$4 sm:$0xff]   ;;  %v9477_v26 = vld [vmem:[%s12805_s5 + $0x84] ss:$8 sps:$4 sm:$0xff]  }
 0x170   :  { %3099 = vmatprep.subr.bf16.mxu0 %v9471_v30  ;;  %3381 = vmatprep.subr.bf16.mxu1 %v9474_v31  ;;  %v9479_v27 = vld [vmem:[%s12806_s6 + $0x84] ss:$8 sps:$4 sm:$0xff]   ;;  %v9619_v28 = vld [vmem:[%s12809_s7 + $0x190] ss:$8 sps:$4 sm:$0xff]   ;;  %v9621_v29 = vld [vmem:[%s12809_s7 + $0x194] ss:$8 sps:$4 sm:$0xff]  }
 0x171   :  { %1451 = vmatmul.mubr.bf16.gmra.mrb[52].mxu0 %v9421_v32  ;;  %2270 = vmatmul.mubr.bf16.gmra.mrb[52].mxu1 %v9422_v33  ;;  %v9481_v30 = vld [vmem:[%s12805_s5 + $0x80] ss:$8 sps:$4 sm:$0xff]   ;;  %v9622_v32 = vld [vmem:[%s12810_s8 + $0x190] ss:$8 sps:$4 sm:$0xff]   ;;  %v9624_v33 = vld [vmem:[%s12810_s8 + $0x194] ss:$8 sps:$4 sm:$0xff]  }
 0x172   :  { %7844 = vmatprep.mubr.msk.bf16.mxu0 %vm1308_vm2, %v9423_v34  ;;  %7943 = vmatprep.mubr.msk.bf16.mxu1 %vm1308_vm2, %v9425_v35  ;;  %v9482_v31 = vld [vmem:[%s12806_s6 + $0x80] ss:$8 sps:$4 sm:$0xff]   ;;  %v9483_v34 = vld [vmem:[%s12805_s5 + $0x94] ss:$8 sps:$4 sm:$0xff]  }
 0x173   :  { %3100 = vmatpush1.bf16.msra.mxu0 %v9469_v36  ;;  %3382 = vmatpush1.bf16.msra.mxu1 %v9472_v37  ;;  %v9485_v35 = vld [vmem:[%s12806_s6 + $0x94] ss:$8 sps:$4 sm:$0xff]   ;;  %v9487_v36 = vld [vmem:[%s12805_s5 + $0x90] ss:$8 sps:$4 sm:$0xff]  }
 0x174   :  { %3101 = vmatprep.subr.bf16.mxu0 %v9491_v38  ;;  %3383 = vmatprep.subr.bf16.mxu1 %v9494_v39  ;;  %v9488_v37 = vld [vmem:[%s12806_s6 + $0x90] ss:$8 sps:$4 sm:$0xff]   ;;  %v9495_v38 = vld [vmem:[%s12805_s5 + $0xa4] ss:$8 sps:$4 sm:$0xff]  }
 0x175   :  { %v9497_v39 = vld [vmem:[%s12806_s6 + $0xa4] ss:$8 sps:$4 sm:$0xff]  }
 0x177   :  { %3102 = vmatpush1.bf16.msra.mxu0 %v9489_v40  ;;  %3384 = vmatpush1.bf16.msra.mxu1 %v9492_v41  ;;  %v9499_v40 = vld [vmem:[%s12805_s5 + $0xa0] ss:$8 sps:$4 sm:$0xff]  }
 0x178   :  { %3103 = vmatprep.subr.bf16.mxu0 %v9509_v44  ;;  %3385 = vmatprep.subr.bf16.mxu1 %v9512_v45  ;;  %v9500_v41 = vld [vmem:[%s12806_s6 + $0xa0] ss:$8 sps:$4 sm:$0xff]   ;;  %v9505_v44 = vld [vmem:[%s12805_s5 + $0xb0] ss:$8 sps:$4 sm:$0xff]  }
 0x179   :  { %1461 = vmatmul.mubr.bf16.gmra.mrb[56].mxu0 %v9427_v42  ;;  %2280 = vmatmul.mubr.bf16.gmra.mrb[56].mxu1 %v9428_v43  ;;  %v9501_v42 = vld [vmem:[%s12805_s5 + $0xb4] ss:$8 sps:$4 sm:$0xff]   ;;  %v9506_v45 = vld [vmem:[%s12806_s6 + $0xb0] ss:$8 sps:$4 sm:$0xff]  }
 0x17a   :  { %7845 = vmatprep.mubr.msk.bf16.mxu0 %vm1308_vm2, %v9435_v46  ;;  %7944 = vmatprep.mubr.msk.bf16.mxu1 %vm1308_vm2, %v9437_v47  ;;  %v9503_v43 = vld [vmem:[%s12806_s6 + $0xb4] ss:$8 sps:$4 sm:$0xff]   ;;  %v9513_v46 = vld [vmem:[%s12805_s5 + $0xc4] ss:$8 sps:$4 sm:$0xff]  }
 0x17b   :  { %3104 = vmatpush1.bf16.msra.mxu0 %v9507_v48  ;;  %3386 = vmatpush1.bf16.msra.mxu1 %v9510_v49  ;;  %v9515_v47 = vld [vmem:[%s12806_s6 + $0xc4] ss:$8 sps:$4 sm:$0xff]   ;;  %v9633_v48 = vld [vmem:[%s12809_s7 + $0x1a0] ss:$8 sps:$4 sm:$0xff]  }
 0x17c   :  { %3105 = vmatprep.subr.bf16.mxu0 %v9525_v50  ;;  %3387 = vmatprep.subr.bf16.mxu1 %v9528_v51  ;;  %v9635_v49 = vld [vmem:[%s12809_s7 + $0x1a4] ss:$8 sps:$4 sm:$0xff]   ;;  %v9636_v50 = vld [vmem:[%s12810_s8 + $0x1a0] ss:$8 sps:$4 sm:$0xff]  }
 0x17d   :  { %v9638_v51 = vld [vmem:[%s12810_s8 + $0x1a4] ss:$8 sps:$4 sm:$0xff]  }
 0x17f   :  { %3106 = vmatpush1.bf16.msra.mxu0 %v9523_v52  ;;  %3388 = vmatpush1.bf16.msra.mxu1 %v9526_v53  ;;  %v9517_v52 = vld [vmem:[%s12805_s5 + $0xc0] ss:$8 sps:$4 sm:$0xff]  }
 0x180   :  { %3107 = vmatprep.subr.bf16.mxu0 %v9545_v54  ;;  %3389 = vmatprep.subr.bf16.mxu1 %v9548_v55  ;;  %v9518_v53 = vld [vmem:[%s12806_s6 + $0xc0] ss:$8 sps:$4 sm:$0xff]   ;;  %v9519_v54 = vld [vmem:[%s12805_s5 + $0xd4] ss:$8 sps:$4 sm:$0xff]  }
 0x181   :  { %1471 = vmatmul.mubr.bf16.gmra.mrb[60].mxu0 %v9439_v56  ;;  %2290 = vmatmul.mubr.bf16.gmra.mrb[60].mxu1 %v9440_v57  ;;  %v9521_v55 = vld [vmem:[%s12806_s6 + $0xd4] ss:$8 sps:$4 sm:$0xff]   ;;  %v9529_v56 = vld [vmem:[%s12805_s5 + $0xd0] ss:$8 sps:$4 sm:$0xff]  }
 0x182   :  { %7846 = vmatprep.mubr.msk.bf16.mxu0 %vm1308_vm2, %v9441_v58  ;;  %7945 = vmatprep.mubr.msk.bf16.mxu1 %vm1308_vm2, %v9443_v59  ;;  %v9530_v57 = vld [vmem:[%s12806_s6 + $0xd0] ss:$8 sps:$4 sm:$0xff]   ;;  %v9531_v58 = vld [vmem:[%s12805_s5 + $0xe4] ss:$8 sps:$4 sm:$0xff]  }
 0x183   :  { %3108 = vmatpush1.bf16.msra.mxu0 %v9543_v60  ;;  %3390 = vmatpush1.bf16.msra.mxu1 %v9546_v61  ;;  %v9533_v59 = vld [vmem:[%s12806_s6 + $0xe4] ss:$8 sps:$4 sm:$0xff]   ;;  %v9651_v60 = vld [vmem:[%s12809_s7 + $0x1b0] ss:$8 sps:$4 sm:$0xff]   ;;  %v9653_v61 = vld [vmem:[%s12809_s7 + $0x1b4] ss:$8 sps:$4 sm:$0xff]  }
 0x184   :  { %3109 = vmatprep.subr.bf16.mxu0 %v9563_v62  ;;  %3391 = vmatprep.subr.bf16.mxu1 %v9566_v63  ;;  %v9654_v62 = vld [vmem:[%s12810_s8 + $0x1b0] ss:$8 sps:$4 sm:$0xff]   ;;  %v9656_v63 = vld [vmem:[%s12810_s8 + $0x1b4] ss:$8 sps:$4 sm:$0xff]  }
 0x187   :  { %3110 = vmatpush1.bf16.msra.mxu0 %v9561_v0  ;;  %3392 = vmatpush1.bf16.msra.mxu1 %v9564_v1  ;;  %v9535_v0 = vld [vmem:[%s12805_s5 + $0xe0] ss:$8 sps:$4 sm:$0xff]  }
 0x188   :  { %3111 = vmatprep.subr.bf16.mxu0 %v9581_v10  ;;  %3393 = vmatprep.subr.bf16.mxu1 %v9584_v11  ;;  %v9536_v1 = vld [vmem:[%s12806_s6 + $0xe0] ss:$8 sps:$4 sm:$0xff]   ;;  %v9541_v10 = vld [vmem:[%s12805_s5 + $0xf0] ss:$8 sps:$4 sm:$0xff]  }
 0x189   :  { %1481 = vmatmul.mubr.bf16.gmra.mrb[64].mxu0 %v9445_v2  ;;  %2300 = vmatmul.mubr.bf16.gmra.mrb[64].mxu1 %v9446_v4  ;;  %v9537_v2 = vld [vmem:[%s12805_s5 + $0xf4] ss:$8 sps:$4 sm:$0xff]   ;;  %v9542_v11 = vld [vmem:[%s12806_s6 + $0xf0] ss:$8 sps:$4 sm:$0xff]  }
 0x18a   :  { %7847 = vmatprep.mubr.msk.bf16.mxu0 %vm1308_vm2, %v9453_v12  ;;  %7946 = vmatprep.mubr.msk.bf16.mxu1 %vm1308_vm2, %v9455_v13  ;;  %v9539_v4 = vld [vmem:[%s12806_s6 + $0xf4] ss:$8 sps:$4 sm:$0xff]   ;;  %v9549_v12 = vld [vmem:[%s12805_s5 + $0x104] ss:$8 sps:$4 sm:$0xff]  }
 0x18b   :  { %3112 = vmatpush1.bf16.msra.mxu0 %v9579_v14  ;;  %3394 = vmatpush1.bf16.msra.mxu1 %v9582_v15  ;;  %v9551_v13 = vld [vmem:[%s12806_s6 + $0x104] ss:$8 sps:$4 sm:$0xff]   ;;  %v9669_v14 = vld [vmem:[%s12809_s7 + $0x1c0] ss:$8 sps:$4 sm:$0xff]  }
 0x18c   :  { %3113 = vmatprep.subr.bf16.mxu0 %v9599_v19  ;;  %3395 = vmatprep.subr.bf16.mxu1 %v9602_v9  ;;  %v9671_v15 = vld [vmem:[%s12809_s7 + $0x1c4] ss:$8 sps:$4 sm:$0xff]   ;;  %v9557_v19 = vld [vmem:[%s12806_s6 + $0x114] ss:$8 sps:$4 sm:$0xff]   ;;  %v9560_v9 = vld [vmem:[%s12806_s6 + $0x110] ss:$8 sps:$4 sm:$0xff]  }
 0x18f   :  { %3114 = vmatpush1.bf16.msra.mxu0 %v9597_v18  ;;  %3396 = vmatpush1.bf16.msra.mxu1 %v9600_v8  ;;  %v9555_v18 = vld [vmem:[%s12805_s5 + $0x114] ss:$8 sps:$4 sm:$0xff]   ;;  %v9559_v8 = vld [vmem:[%s12805_s5 + $0x110] ss:$8 sps:$4 sm:$0xff]  }
 0x190   :  { %3115 = vmatprep.subr.bf16.mxu0 %v9621_v29  ;;  %3397 = vmatprep.subr.bf16.mxu1 %v9624_v33  ;;  %v9575_v29 = vld [vmem:[%s12806_s6 + $0x134] ss:$8 sps:$4 sm:$0xff]   ;;  %v9702_v33 = vld [vmem:[%s12810_s8 + $0x4] ss:$8 sps:$4 sm:$0xff]  }
 0x191   :  { %1491 = vmatmul.mubr.bf16.gmra.mrb[68].mxu0 %v9457_v16  ;;  %2310 = vmatmul.mubr.bf16.gmra.mrb[68].mxu1 %v9458_v6  ;;  %v9672_v16 = vld [vmem:[%s12810_s8 + $0x1c0] ss:$8 sps:$4 sm:$0xff]   ;;  %v9674_v6 = vld [vmem:[%s12810_s8 + $0x1c4] ss:$8 sps:$4 sm:$0xff]  }
 0x192   :  { %7848 = vmatprep.mubr.msk.bf16.mxu0 %vm1308_vm2, %v9459_v17  ;;  %7947 = vmatprep.mubr.msk.bf16.mxu1 %vm1308_vm2, %v9461_v7  ;;  %v9553_v17 = vld [vmem:[%s12805_s5 + $0x100] ss:$8 sps:$4 sm:$0xff]  }
 0x193   :  { %3116 = vmatpush1.bf16.msra.mxu0 %v9619_v28  ;;  %3398 = vmatpush1.bf16.msra.mxu1 %v9622_v32  ;;  %v9554_v7 = vld [vmem:[%s12806_s6 + $0x100] ss:$8 sps:$4 sm:$0xff]   ;;  %v9573_v28 = vld [vmem:[%s12805_s5 + $0x134] ss:$8 sps:$4 sm:$0xff]   ;;  %v9699_v32 = vld [vmem:[%s12809_s7 + $0x4] ss:$8 sps:$4 sm:$0xff]  }
 0x194   :  { %3117 = vmatprep.subr.bf16.mxu0 %v9635_v49  ;;  %3399 = vmatprep.subr.bf16.mxu1 %v9638_v51  ;;  %v9614_v49 = vld [vmem:[%s12806_s6 + $0x170] ss:$8 sps:$4 sm:$0xff]   ;;  %v9617_v51 = vld [vmem:[%s12806_s6 + $0x184] ss:$8 sps:$4 sm:$0xff]  }
 0x197   :  { %3118 = vmatpush1.bf16.msra.mxu0 %v9633_v48  ;;  %3400 = vmatpush1.bf16.msra.mxu1 %v9636_v50  ;;  %v9613_v48 = vld [vmem:[%s12805_s5 + $0x170] ss:$8 sps:$4 sm:$0xff]   ;;  %v9615_v50 = vld [vmem:[%s12805_s5 + $0x184] ss:$8 sps:$4 sm:$0xff]  }
 0x198   :  { %3119 = vmatprep.subr.bf16.mxu0 %v9653_v61  ;;  %3401 = vmatprep.subr.bf16.mxu1 %v9656_v63  ;;  %v9644_v61 = vld [vmem:[%s12806_s6 + $0x1a0] ss:$8 sps:$4 sm:$0xff]   ;;  %v9647_v63 = vld [vmem:[%s12806_s6 + $0x1b4] ss:$8 sps:$4 sm:$0xff]  }
 0x199   :  { %1501 = vmatmul.mubr.bf16.gmra.mrb[72].mxu0 %v9463_v20  ;;  %2320 = vmatmul.mubr.bf16.gmra.mrb[72].mxu1 %v9464_v21  ;;  %v9567_v20 = vld [vmem:[%s12805_s5 + $0x124] ss:$8 sps:$4 sm:$0xff]  }
 0x19a   :  { %7849 = vmatprep.mubr.msk.bf16.mxu0 %vm1308_vm2, %v9465_v22  ;;  %7948 = vmatprep.mubr.msk.bf16.mxu1 %vm1308_vm2, %v9467_v23  ;;  %v9569_v21 = vld [vmem:[%s12806_s6 + $0x124] ss:$8 sps:$4 sm:$0xff]   ;;  %v9687_v22 = vld [vmem:[%s12809_s7 + $0x1d0] ss:$8 sps:$4 sm:$0xff]   ;;  %v9689_v23 = vld [vmem:[%s12809_s7 + $0x1d4] ss:$8 sps:$4 sm:$0xff]  }
 0x19b   :  { %3120 = vmatpush1.bf16.msra.mxu0 %v9651_v60  ;;  %3402 = vmatpush1.bf16.msra.mxu1 %v9654_v62  ;;  %v9643_v60 = vld [vmem:[%s12805_s5 + $0x1a0] ss:$8 sps:$4 sm:$0xff]   ;;  %v9645_v62 = vld [vmem:[%s12805_s5 + $0x1b4] ss:$8 sps:$4 sm:$0xff]  }
 0x19c   :  { %3121 = vmatprep.subr.bf16.mxu0 %v9671_v15  ;;  %3403 = vmatprep.subr.bf16.mxu1 %v9674_v6  ;;  %v9659_v6 = vld [vmem:[%s12806_s6 + $0x1c4] ss:$8 sps:$4 sm:$0xff]  }
 0x19f   :  { %3122 = vmatpush1.bf16.msra.mxu0 %v9669_v14  ;;  %3404 = vmatpush1.bf16.msra.mxu1 %v9672_v16  ;;  %v9657_v16 = vld [vmem:[%s12805_s5 + $0x1c4] ss:$8 sps:$4 sm:$0xff]  }
 0x1a0   :  { %3123 = vmatprep.subr.bf16.mxu0 %v9689_v23 }
 0x1a1   :  { %1511 = vmatmul.mubr.bf16.gmra.mrb[76].mxu0 %v9475_v24  ;;  %2330 = vmatmul.mubr.bf16.gmra.mrb[76].mxu1 %v9476_v25  ;;  %v9690_v24 = vld [vmem:[%s12810_s8 + $0x1d0] ss:$8 sps:$4 sm:$0xff]   ;;  %v9571_v25 = vld [vmem:[%s12805_s5 + $0x120] ss:$8 sps:$4 sm:$0xff]  }
 0x1a2   :  { %7850 = vmatprep.mubr.msk.bf16.mxu0 %vm1308_vm2, %v9477_v26  ;;  %7949 = vmatprep.mubr.msk.bf16.mxu1 %vm1308_vm2, %v9479_v27  ;;  %v9572_v26 = vld [vmem:[%s12806_s6 + $0x120] ss:$8 sps:$4 sm:$0xff]   ;;  %v9692_v27 = vld [vmem:[%s12810_s8 + $0x1d4] ss:$8 sps:$4 sm:$0xff]  }
 0x1a3   :  { %3405 = vmatprep.subr.bf16.mxu1 %v9692_v27  ;;  %3124 = vmatpush1.bf16.msra.mxu0 %v9687_v22 }
 0x1a4   :  { %3406 = vmatpush1.bf16.msra.mxu1 %v9690_v24  ;;  %3649 = vmatprep.subr.bf16.mxu0 %v9699_v32 }
 0x1a5   :  { %3900 = vmatprep.subr.bf16.mxu1 %v9702_v33 }
 0x1a9   :  { %1521 = vmatmul.mubr.bf16.gmra.mrb[80].mxu0 %v9481_v30  ;;  %2340 = vmatmul.mubr.bf16.gmra.mrb[80].mxu1 %v9482_v31  ;;  %v9577_v30 = vld [vmem:[%s12805_s5 + $0x130] ss:$8 sps:$4 sm:$0xff]  }
 0x1aa   :  { %7851 = vmatprep.mubr.msk.bf16.mxu0 %vm1308_vm2, %v9483_v34  ;;  %7950 = vmatprep.mubr.msk.bf16.mxu1 %vm1308_vm2, %v9485_v35  ;;  %v9578_v31 = vld [vmem:[%s12806_s6 + $0x130] ss:$8 sps:$4 sm:$0xff]   ;;  %v9585_v34 = vld [vmem:[%s12805_s5 + $0x144] ss:$8 sps:$4 sm:$0xff]  }
 0x1ab   :  { %v9587_v35 = vld [vmem:[%s12806_s6 + $0x144] ss:$8 sps:$4 sm:$0xff]  }
 0x1b1   :  { %1531 = vmatmul.mubr.bf16.gmra.mrb[84].mxu0 %v9487_v36  ;;  %2350 = vmatmul.mubr.bf16.gmra.mrb[84].mxu1 %v9488_v37  ;;  %v9589_v36 = vld [vmem:[%s12805_s5 + $0x140] ss:$8 sps:$4 sm:$0xff]  }
 0x1b2   :  { %7852 = vmatprep.mubr.msk.bf16.mxu0 %vm1308_vm2, %v9495_v38  ;;  %7951 = vmatprep.mubr.msk.bf16.mxu1 %vm1308_vm2, %v9497_v39  ;;  %v9590_v37 = vld [vmem:[%s12806_s6 + $0x140] ss:$8 sps:$4 sm:$0xff]   ;;  %v9591_v38 = vld [vmem:[%s12805_s5 + $0x154] ss:$8 sps:$4 sm:$0xff]  }
 0x1b3   :  { %v9593_v39 = vld [vmem:[%s12806_s6 + $0x154] ss:$8 sps:$4 sm:$0xff]  }
 0x1b9   :  { %1541 = vmatmul.mubr.bf16.gmra.mrb[88].mxu0 %v9499_v40  ;;  %2360 = vmatmul.mubr.bf16.gmra.mrb[88].mxu1 %v9500_v41  ;;  %v9595_v40 = vld [vmem:[%s12805_s5 + $0x150] ss:$8 sps:$4 sm:$0xff]  }
 0x1ba   :  { %7853 = vmatprep.mubr.msk.bf16.mxu0 %vm1308_vm2, %v9501_v42  ;;  %7952 = vmatprep.mubr.msk.bf16.mxu1 %vm1308_vm2, %v9503_v43  ;;  %v9596_v41 = vld [vmem:[%s12806_s6 + $0x150] ss:$8 sps:$4 sm:$0xff]   ;;  %v9603_v42 = vld [vmem:[%s12805_s5 + $0x164] ss:$8 sps:$4 sm:$0xff]  }
 0x1bb   :  { %v9605_v43 = vld [vmem:[%s12806_s6 + $0x164] ss:$8 sps:$4 sm:$0xff]  }
 0x1c1   :  { %1551 = vmatmul.mubr.bf16.gmra.mrb[92].mxu0 %v9505_v44  ;;  %2370 = vmatmul.mubr.bf16.gmra.mrb[92].mxu1 %v9506_v45  ;;  %v9607_v44 = vld [vmem:[%s12805_s5 + $0x160] ss:$8 sps:$4 sm:$0xff]  }
 0x1c2   :  { %7854 = vmatprep.mubr.msk.bf16.mxu0 %vm1308_vm2, %v9513_v46  ;;  %7953 = vmatprep.mubr.msk.bf16.mxu1 %vm1308_vm2, %v9515_v47  ;;  %v9608_v45 = vld [vmem:[%s12806_s6 + $0x160] ss:$8 sps:$4 sm:$0xff]   ;;  %v9609_v46 = vld [vmem:[%s12805_s5 + $0x174] ss:$8 sps:$4 sm:$0xff]  }
 0x1c3   :  { %v9611_v47 = vld [vmem:[%s12806_s6 + $0x174] ss:$8 sps:$4 sm:$0xff]  }
 0x1c9   :  { %1561 = vmatmul.mubr.bf16.gmra.mrb[96].mxu0 %v9517_v52  ;;  %2380 = vmatmul.mubr.bf16.gmra.mrb[96].mxu1 %v9518_v53  ;;  %v9625_v52 = vld [vmem:[%s12805_s5 + $0x180] ss:$8 sps:$4 sm:$0xff]  }
 0x1ca   :  { %7855 = vmatprep.mubr.msk.bf16.mxu0 %vm1308_vm2, %v9519_v54  ;;  %7954 = vmatprep.mubr.msk.bf16.mxu1 %vm1308_vm2, %v9521_v55  ;;  %v9626_v53 = vld [vmem:[%s12806_s6 + $0x180] ss:$8 sps:$4 sm:$0xff]   ;;  %v9627_v54 = vld [vmem:[%s12805_s5 + $0x194] ss:$8 sps:$4 sm:$0xff]  }
 0x1cb   :  { %v9629_v55 = vld [vmem:[%s12806_s6 + $0x194] ss:$8 sps:$4 sm:$0xff]  }
 0x1d1   :  { %1571 = vmatmul.mubr.bf16.gmra.mrb[100].mxu0 %v9529_v56  ;;  %2390 = vmatmul.mubr.bf16.gmra.mrb[100].mxu1 %v9530_v57  ;;  %v9631_v56 = vld [vmem:[%s12805_s5 + $0x190] ss:$8 sps:$4 sm:$0xff]  }
 0x1d2   :  { %7856 = vmatprep.mubr.msk.bf16.mxu0 %vm1308_vm2, %v9531_v58  ;;  %7955 = vmatprep.mubr.msk.bf16.mxu1 %vm1308_vm2, %v9533_v59  ;;  %v9632_v57 = vld [vmem:[%s12806_s6 + $0x190] ss:$8 sps:$4 sm:$0xff]   ;;  %v9639_v58 = vld [vmem:[%s12805_s5 + $0x1a4] ss:$8 sps:$4 sm:$0xff]  }
 0x1d3   :  { %v9641_v59 = vld [vmem:[%s12806_s6 + $0x1a4] ss:$8 sps:$4 sm:$0xff]  }
 0x1d9   :  { %1581 = vmatmul.mubr.bf16.gmra.mrb[104].mxu0 %v9535_v0  ;;  %2400 = vmatmul.mubr.bf16.gmra.mrb[104].mxu1 %v9536_v1 }
 0x1da   :  { %7857 = vmatprep.mubr.msk.bf16.mxu0 %vm1308_vm2, %v9537_v2  ;;  %7956 = vmatprep.mubr.msk.bf16.mxu1 %vm1308_vm2, %v9539_v4 }
 0x1e1   :  { %1591 = vmatmul.mubr.bf16.gmra.mrb[108].mxu0 %v9541_v10  ;;  %2410 = vmatmul.mubr.bf16.gmra.mrb[108].mxu1 %v9542_v11  ;;  %v9649_v11 = vld [vmem:[%s12805_s5 + $0x1b0] ss:$8 sps:$4 sm:$0xff]  }
 0x1e2   :  { %7858 = vmatprep.mubr.msk.bf16.mxu0 %vm1308_vm2, %v9549_v12  ;;  %7957 = vmatprep.mubr.msk.bf16.mxu1 %vm1308_vm2, %v9551_v13  ;;  %v9650_v12 = vld [vmem:[%s12806_s6 + $0x1b0] ss:$8 sps:$4 sm:$0xff]  }
 0x1e9   :  { %1601 = vmatmul.mubr.bf16.gmra.mrb[112].mxu0 %v9553_v17  ;;  %2420 = vmatmul.mubr.bf16.gmra.mrb[112].mxu1 %v9554_v7 }
 0x1ea   :  { %7859 = vmatprep.mubr.msk.bf16.mxu0 %vm1308_vm2, %v9555_v18  ;;  %7958 = vmatprep.mubr.msk.bf16.mxu1 %vm1308_vm2, %v9557_v19 }
 0x1f1   :  { %1611 = vmatmul.mubr.bf16.gmra.mrb[116].mxu0 %v9559_v8  ;;  %2430 = vmatmul.mubr.bf16.gmra.mrb[116].mxu1 %v9560_v9 }
 0x1f2   :  { %7860 = vmatprep.mubr.msk.bf16.mxu0 %vm1308_vm2, %v9567_v20  ;;  %7959 = vmatprep.mubr.msk.bf16.mxu1 %vm1308_vm2, %v9569_v21 }
 0x1f9   :  { %1621 = vmatmul.mubr.bf16.gmra.mrb[120].mxu0 %v9571_v25  ;;  %2440 = vmatmul.mubr.bf16.gmra.mrb[120].mxu1 %v9572_v26  ;;  %v9661_v25 = vld [vmem:[%s12805_s5 + $0x1c0] ss:$8 sps:$4 sm:$0xff]  }
 0x1fa   :  { %7861 = vmatprep.mubr.msk.bf16.mxu0 %vm1308_vm2, %v9573_v28  ;;  %7960 = vmatprep.mubr.msk.bf16.mxu1 %vm1308_vm2, %v9575_v29  ;;  %v9662_v26 = vld [vmem:[%s12806_s6 + $0x1c0] ss:$8 sps:$4 sm:$0xff]  }
 0x201   :  { %1631 = vmatmul.mubr.bf16.gmra.mrb[124].mxu0 %v9577_v30  ;;  %2450 = vmatmul.mubr.bf16.gmra.mrb[124].mxu1 %v9578_v31  ;;  %v9663_v30 = vld [vmem:[%s12805_s5 + $0x1d4] ss:$8 sps:$4 sm:$0xff]  }
 0x202   :  { %7862 = vmatprep.mubr.msk.bf16.mxu0 %vm1308_vm2, %v9585_v34  ;;  %7961 = vmatprep.mubr.msk.bf16.mxu1 %vm1308_vm2, %v9587_v35  ;;  %v9665_v31 = vld [vmem:[%s12806_s6 + $0x1d4] ss:$8 sps:$4 sm:$0xff]  }
 0x209   :  { %1641 = vmatmul.mubr.bf16.gmra.mrb[128].mxu0 %v9589_v36  ;;  %2460 = vmatmul.mubr.bf16.gmra.mrb[128].mxu1 %v9590_v37 }
 0x20a   :  { %7863 = vmatprep.mubr.msk.bf16.mxu0 %vm1308_vm2, %v9591_v38  ;;  %7962 = vmatprep.mubr.msk.bf16.mxu1 %vm1308_vm2, %v9593_v39 }
 0x211   :  { %1651 = vmatmul.mubr.bf16.gmra.mrb[132].mxu0 %v9595_v40  ;;  %2470 = vmatmul.mubr.bf16.gmra.mrb[132].mxu1 %v9596_v41 }
 0x212   :  { %7864 = vmatprep.mubr.msk.bf16.mxu0 %vm1308_vm2, %v9603_v42  ;;  %7963 = vmatprep.mubr.msk.bf16.mxu1 %vm1308_vm2, %v9605_v43  ;;  %v9667_v43 = vld [vmem:[%s12805_s5 + $0x1d0] ss:$8 sps:$4 sm:$0xff]  }
 0x219   :  { %1661 = vmatmul.mubr.bf16.gmra.mrb[136].mxu0 %v9607_v44  ;;  %2480 = vmatmul.mubr.bf16.gmra.mrb[136].mxu1 %v9608_v45  ;;  %v9668_v44 = vld [vmem:[%s12806_s6 + $0x1d0] ss:$8 sps:$4 sm:$0xff]  }
 0x21a   :  { %7865 = vmatprep.mubr.msk.bf16.mxu0 %vm1308_vm2, %v9609_v46  ;;  %7964 = vmatprep.mubr.msk.bf16.mxu1 %vm1308_vm2, %v9611_v47 }
 0x221   :  { %1671 = vmatmul.mubr.bf16.gmra.mrb[140].mxu0 %v9613_v48  ;;  %2490 = vmatmul.mubr.bf16.gmra.mrb[140].mxu1 %v9614_v49  ;;  %v9675_v48 = vld [vmem:[%s12805_s5 + $0x1e4] ss:$8 sps:$4 sm:$0xff]  }
 0x222   :  { %7866 = vmatprep.mubr.msk.bf16.mxu0 %vm1308_vm2, %v9615_v50  ;;  %7965 = vmatprep.mubr.msk.bf16.mxu1 %vm1308_vm2, %v9617_v51  ;;  %v9677_v49 = vld [vmem:[%s12806_s6 + $0x1e4] ss:$8 sps:$4 sm:$0xff]  }
 0x229   :  { %1681 = vmatmul.mubr.bf16.gmra.mrb[144].mxu0 %v9625_v52  ;;  %2500 = vmatmul.mubr.bf16.gmra.mrb[144].mxu1 %v9626_v53 }
 0x22a   :  { %7867 = vmatprep.mubr.msk.bf16.mxu0 %vm1308_vm2, %v9627_v54  ;;  %7966 = vmatprep.mubr.msk.bf16.mxu1 %vm1308_vm2, %v9629_v55 }
 0x231   :  { %1691 = vmatmul.mubr.bf16.gmra.mrb[148].mxu0 %v9631_v56  ;;  %2510 = vmatmul.mubr.bf16.gmra.mrb[148].mxu1 %v9632_v57 }
 0x232   :  { %7868 = vmatprep.mubr.msk.bf16.mxu0 %vm1308_vm2, %v9639_v58  ;;  %7967 = vmatprep.mubr.msk.bf16.mxu1 %vm1308_vm2, %v9641_v59 }
 0x239   :  { %1701 = vmatmul.mubr.bf16.gmra.mrb[152].mxu0 %v9643_v60  ;;  %2520 = vmatmul.mubr.bf16.gmra.mrb[152].mxu1 %v9644_v61  ;;  %v9679_v61 = vld [vmem:[%s12805_s5 + $0x1e0] ss:$8 sps:$4 sm:$0xff]  }
 0x23a   :  { %7869 = vmatprep.mubr.msk.bf16.mxu0 %vm1308_vm2, %v9645_v62  ;;  %7968 = vmatprep.mubr.msk.bf16.mxu1 %vm1308_vm2, %v9647_v63  ;;  %v9680_v62 = vld [vmem:[%s12806_s6 + $0x1e0] ss:$8 sps:$4 sm:$0xff]  }
 0x23c   :  { %v1442_v0 = vpop.f32.mrb[48].mxu0  ;;  %v2261_v1 = vpop.f32.mrb[48].mxu1 }
 0x23d   :  { %v2588_v2 = vmax.f32 %v1442_v0, %v2261_v1  ;;  %v1444_v4 = vpop.f32.mrb[49].mxu0  ;;  %v2263_v10 = vpop.f32.mrb[49].mxu1 }
 0x23e   :  { %v2589_v13 = vmax.f32 %v1444_v4, %v2263_v10  ;;  %v1446_v14 = vpop.f32.mrb[50].mxu0  ;;  %v2265_v15 = vpop.f32.mrb[50].mxu1  ;;  %v9683_v4 = vld [vmem:[%s12806_s6 + $0x1f4] ss:$8 sps:$4 sm:$0xff]  }
 0x23f   :  { %v2590_v17 = vmax.f32 %v1446_v14, %v2265_v15  ;;  %v1448_v7 = vpop.f32.mrb[51].mxu0  ;;  %v2267_v18 = vpop.f32.mrb[51].mxu1 }
 0x240   :  { %v2591_v19 = vmax.f32 %v1448_v7, %v2267_v18 }
 0x241   :  { %v11177_v8 = vpack.c.bf16 %v2590_v17, %v2588_v2  ;;  %1711 = vmatmul.mubr.bf16.gmra.mrb[156].mxu0 %v9649_v11  ;;  %2530 = vmatmul.mubr.bf16.gmra.mrb[156].mxu1 %v9650_v12  ;;  %v9681_v2 = vld [vmem:[%s12805_s5 + $0x1f4] ss:$8 sps:$4 sm:$0xff]  }
 0x242   :  { %v11179_v9 = vpack.c.bf16 %v2591_v19, %v2589_v13  ;;  %7870 = vmatprep.mubr.msk.bf16.mxu0 %vm1308_vm2, %v9657_v16  ;;  %7969 = vmatprep.mubr.msk.bf16.mxu1 %vm1308_vm2, %v9659_v6  ;;  %v1013_v16 = vld [vmem:[%s12805_s5 + $0x200] sm:$0xff] }
 0x243   :  { %v1833_v6 = vld [vmem:[%s12806_s6 + $0x200] sm:$0xff] }
 0x244   :  { %v1452_v20 = vpop.f32.mrb[52].mxu0  ;;  %v2271_v21 = vpop.f32.mrb[52].mxu1 }
 0x245   :  { %v2592_v22 = vmax.f32 %v1452_v20, %v2271_v21  ;;  %v1454_v23 = vpop.f32.mrb[53].mxu0  ;;  %v2273_v24 = vpop.f32.mrb[53].mxu1  ;;  %v9685_v21 = vld [vmem:[%s12805_s5 + $0x1f0] ss:$8 sps:$4 sm:$0xff]  }
 0x246   :  { %v2593_v27 = vmax.f32 %v1454_v23, %v2273_v24  ;;  %v1456_v28 = vpop.f32.mrb[54].mxu0  ;;  %v2275_v29 = vpop.f32.mrb[54].mxu1 }
 0x247   :  { %v2594_v32 = vmax.f32 %v1456_v28, %v2275_v29  ;;  %v1458_v33 = vpop.f32.mrb[55].mxu0  ;;  %v2277_v34 = vpop.f32.mrb[55].mxu1 }
 0x248   :  { %v2595_v35 = vmax.f32 %v1458_v33, %v2277_v34 }
 0x249   :  { %v11195_v36 = vpack.c.bf16 %v2594_v32, %v2592_v22  ;;  %1721 = vmatmul.mubr.bf16.gmra.mrb[160].mxu0 %v9661_v25  ;;  %2540 = vmatmul.mubr.bf16.gmra.mrb[160].mxu1 %v9662_v26  ;;  %v9686_v22 = vld [vmem:[%s12806_s6 + $0x1f0] ss:$8 sps:$4 sm:$0xff]   ;;  %v7841_v26 = vcombine.high %v1013_v16, %v1013_v16  ;;  %s12828_s6 = sld [smem:[#allocation4_spill]] }
 0x24a   :  { %v11197_v37 = vpack.c.bf16 %v2595_v35, %v2593_v27  ;;  %7871 = vmatprep.mubr.msk.bf16.mxu0 %vm1308_vm2, %v9663_v30  ;;  %7970 = vmatprep.mubr.msk.bf16.mxu1 %vm1308_vm2, %v9665_v31  ;;  %v7940_v27 = vcombine.high %v1833_v6, %v1833_v6 }
 0x24c   :  { %v1462_v38 = vpop.f32.mrb[56].mxu0  ;;  %v2281_v39 = vpop.f32.mrb[56].mxu1 }
 0x24d   :  { %v2596_v40 = vmax.f32 %v1462_v38, %v2281_v39  ;;  %v1464_v41 = vpop.f32.mrb[57].mxu0  ;;  %v2283_v42 = vpop.f32.mrb[57].mxu1 }
 0x24e   :  { %v2597_v45 = vmax.f32 %v1464_v41, %v2283_v42  ;;  %v1466_v46 = vpop.f32.mrb[58].mxu0  ;;  %v2285_v47 = vpop.f32.mrb[58].mxu1  ;;  %v7840_v41 = vcombine.low %v1013_v16, %v1013_v16  ;;  %v7939_v42 = vcombine.low %v1833_v6, %v1833_v6 }
 0x24f   :  { %v2598_v50 = vmax.f32 %v1466_v46, %v2285_v47  ;;  %v1468_v51 = vpop.f32.mrb[59].mxu0  ;;  %v2287_v52 = vpop.f32.mrb[59].mxu1 }
 0x250   :  { %v2599_v53 = vmax.f32 %v1468_v51, %v2287_v52 }
 0x251   :  { %v11213_v54 = vpack.c.bf16 %v2598_v50, %v2596_v40  ;;  %1731 = vmatmul.mubr.bf16.gmra.mrb[164].mxu0 %v9667_v43  ;;  %2550 = vmatmul.mubr.bf16.gmra.mrb[164].mxu1 %v9668_v44 }
 0x252   :  { %v11215_v55 = vpack.c.bf16 %v2599_v53, %v2597_v45  ;;  %7872 = vmatprep.mubr.msk.bf16.mxu0 %vm1308_vm2, %v9675_v48  ;;  %7971 = vmatprep.mubr.msk.bf16.mxu1 %vm1308_vm2, %v9677_v49 }
 0x254   :  { %v1472_v56 = vpop.f32.mrb[60].mxu0  ;;  %v2291_v57 = vpop.f32.mrb[60].mxu1 }
 0x255   :  { %v2600_v58 = vmax.f32 %v1472_v56, %v2291_v57  ;;  %v1474_v59 = vpop.f32.mrb[61].mxu0  ;;  %v2293_v60 = vpop.f32.mrb[61].mxu1 }
 0x256   :  { %v2601_v63 = vmax.f32 %v1474_v59, %v2293_v60  ;;  %v1476_v0 = vpop.f32.mrb[62].mxu0  ;;  %v2295_v1 = vpop.f32.mrb[62].mxu1 }
 0x257   :  { %v2602_v10 = vmax.f32 %v1476_v0, %v2295_v1  ;;  %v1478_v11 = vpop.f32.mrb[63].mxu0  ;;  %v2297_v12 = vpop.f32.mrb[63].mxu1 }
 0x258   :  { %v2603_v13 = vmax.f32 %v1478_v11, %v2297_v12 }
 0x259   :  { %v11231_v14 = vpack.c.bf16 %v2602_v10, %v2600_v58  ;;  %1741 = vmatmul.mubr.bf16.gmra.mrb[168].mxu0 %v9679_v61  ;;  %2560 = vmatmul.mubr.bf16.gmra.mrb[168].mxu1 %v9680_v62 }
 0x25a   :  { %v11233_v15 = vpack.c.bf16 %v2603_v13, %v2601_v63  ;;  %7873 = vmatprep.mubr.msk.bf16.mxu0 %vm1308_vm2, %v9681_v2  ;;  %7972 = vmatprep.mubr.msk.bf16.mxu1 %vm1308_vm2, %v9683_v4 }
 0x25c   :  { %v1482_v17 = vpop.f32.mrb[64].mxu0  ;;  %v2301_v7 = vpop.f32.mrb[64].mxu1 }
 0x25d   :  { %v2604_v18 = vmax.f32 %v1482_v17, %v2301_v7  ;;  %v1484_v19 = vpop.f32.mrb[65].mxu0  ;;  %v2303_v20 = vpop.f32.mrb[65].mxu1 }
 0x25e   :  { %v2605_v23 = vmax.f32 %v1484_v19, %v2303_v20  ;;  %v1486_v24 = vpop.f32.mrb[66].mxu0  ;;  %v2305_v25 = vpop.f32.mrb[66].mxu1 }
 0x25f   :  { %v2606_v28 = vmax.f32 %v1486_v24, %v2305_v25  ;;  %v1488_v29 = vpop.f32.mrb[67].mxu0  ;;  %v2307_v30 = vpop.f32.mrb[67].mxu1 }
 0x260   :  { %v2607_v31 = vmax.f32 %v1488_v29, %v2307_v30  ;;  %v9697_v29 = vld [vmem:[%s12809_s7] ss:$8 sps:$4 sm:$0xff]  }
 0x261   :  { %v11249_v32 = vpack.c.bf16 %v2606_v28, %v2604_v18  ;;  %1751 = vmatmul.mubr.bf16.gmra.mrb[172].mxu0 %v9685_v21  ;;  %2570 = vmatmul.mubr.bf16.gmra.mrb[172].mxu1 %v9686_v22 }
 0x262   :  { %v11251_v33 = vpack.c.bf16 %v2607_v31, %v2605_v23  ;;  %7874 = vmatprep.mubr.msk.bf16.mxu0 %vm1308_vm2, %v7841_v26  ;;  %7973 = vmatprep.mubr.msk.bf16.mxu1 %vm1308_vm2, %v7940_v27 }
 0x264   :  { %v1492_v34 = vpop.f32.mrb[68].mxu0  ;;  %v2311_v35 = vpop.f32.mrb[68].mxu1 }
 0x265   :  { %v2608_v38 = vmax.f32 %v1492_v34, %v2311_v35  ;;  %v1494_v39 = vpop.f32.mrb[69].mxu0  ;;  %v2313_v40 = vpop.f32.mrb[69].mxu1 }
 0x266   :  { %v2609_v43 = vmax.f32 %v1494_v39, %v2313_v40  ;;  %v1496_v44 = vpop.f32.mrb[70].mxu0  ;;  %v2315_v45 = vpop.f32.mrb[70].mxu1 }
 0x267   :  { %v2610_v46 = vmax.f32 %v1496_v44, %v2315_v45  ;;  %v1498_v47 = vpop.f32.mrb[71].mxu0  ;;  %v2317_v48 = vpop.f32.mrb[71].mxu1  ;;  %v9708_v44 = vld [vmem:[%s12810_s8 + $0x14] ss:$8 sps:$4 sm:$0xff]  }
 0x268   :  { %v2611_v49 = vmax.f32 %v1498_v47, %v2317_v48 }
 0x269   :  { %v11255_v50 = vpack.c.bf16 %v2610_v46, %v2608_v38  ;;  %1761 = vmatmul.mubr.bf16.gmra.mrb[176].mxu0 %v7840_v41  ;;  %2580 = vmatmul.mubr.bf16.gmra.mrb[176].mxu1 %v7939_v42  ;;  %v9700_v38 = vld [vmem:[%s12810_s8] ss:$8 sps:$4 sm:$0xff]  }
 0x26a   :  { %v11257_v51 = vpack.c.bf16 %v2611_v49, %v2609_v43  ;;  %v9705_v43 = vld [vmem:[%s12809_s7 + $0x14] ss:$8 sps:$4 sm:$0xff]  }
 0x26c   :  { %v1502_v52 = vpop.f32.mrb[72].mxu0  ;;  %v2321_v53 = vpop.f32.mrb[72].mxu1 }
 0x26d   :  { %v2612_v56 = vmax.f32 %v1502_v52, %v2321_v53  ;;  %v1504_v57 = vpop.f32.mrb[73].mxu0  ;;  %v2323_v58 = vpop.f32.mrb[73].mxu1  ;;  %v9703_v53 = vld [vmem:[%s12809_s7 + $0x10] ss:$8 sps:$4 sm:$0xff]  }
 0x26e   :  { %v2613_v59 = vmax.f32 %v1504_v57, %v2323_v58  ;;  %v1506_v60 = vpop.f32.mrb[74].mxu0  ;;  %v2325_v61 = vpop.f32.mrb[74].mxu1  ;;  %v9711_v58 = vld [vmem:[%s12809_s7 + $0x24] ss:$8 sps:$4 sm:$0xff]  }
 0x26f   :  { %v2614_v62 = vmax.f32 %v1506_v60, %v2325_v61  ;;  %v1508_v63 = vpop.f32.mrb[75].mxu0  ;;  %v2327_v0 = vpop.f32.mrb[75].mxu1 }
 0x270   :  { %v2615_v1 = vmax.f32 %v1508_v63, %v2327_v0 }
 0x271   :  { %v11259_v2 = vpack.c.bf16 %v2614_v62, %v2612_v56  ;;  %v9706_v56 = vld [vmem:[%s12810_s8 + $0x10] ss:$8 sps:$4 sm:$0xff]  }
 0x272   :  { %v11261_v4 = vpack.c.bf16 %v2615_v1, %v2613_v59  ;;  %v9714_v59 = vld [vmem:[%s12810_s8 + $0x24] ss:$8 sps:$4 sm:$0xff]  }
 0x273   :  { %v2890_v30 = vrot.slane %v11259_v2, 4 }
 0x274   :  { %v1512_v10 = vpop.f32.mrb[76].mxu0  ;;  %v2331_v11 = vpop.f32.mrb[76].mxu1  ;;  %v2893_v25 = vrot.slane %v11261_v4, 4 }
 0x275   :  { %v2616_v12 = vmax.f32 %v1512_v10, %v2331_v11  ;;  %v1514_v13 = vpop.f32.mrb[77].mxu0  ;;  %v2333_v16 = vpop.f32.mrb[77].mxu1  ;;  %v9709_v11 = vld [vmem:[%s12809_s7 + $0x20] ss:$8 sps:$4 sm:$0xff]  }
 0x276   :  { %v2617_v6 = vmax.f32 %v1514_v13, %v2333_v16  ;;  %v1516_v17 = vpop.f32.mrb[78].mxu0  ;;  %v2335_v7 = vpop.f32.mrb[78].mxu1 }
 0x277   :  { %v2618_v18 = vmax.f32 %v1516_v17, %v2335_v7  ;;  %v1518_v19 = vpop.f32.mrb[79].mxu0  ;;  %v2337_v20 = vpop.f32.mrb[79].mxu1 }
 0x278   :  { %v2619_v21 = vmax.f32 %v1518_v19, %v2337_v20  ;;  %v9720_v19 = vld [vmem:[%s12810_s8 + $0x34] ss:$8 sps:$4 sm:$0xff]  }
 0x279   :  { %v2732_v22 = vpack.c.bf16 %v2618_v18, %v2616_v12  ;;  %v9712_v12 = vld [vmem:[%s12810_s8 + $0x20] ss:$8 sps:$4 sm:$0xff]   ;;  %v9717_v18 = vld [vmem:[%s12809_s7 + $0x34] ss:$8 sps:$4 sm:$0xff]  }
 0x27a   :  { %v2733_v23 = vpack.c.bf16 %v2619_v21, %v2617_v6 }
 0x27b   :  { %v2891_v24 = vrot.slane %v2732_v22, 4 }
 0x27c   :  { %v2894_v26 = vrot.slane %v2733_v23, 4  ;;  %v1522_v27 = vpop.f32.mrb[80].mxu0  ;;  %v2341_v28 = vpop.f32.mrb[80].mxu1 }
 0x27d   :  { %v2620_v31 = vmax.f32 %v1522_v27, %v2341_v28  ;;  %v1524_v34 = vpop.f32.mrb[81].mxu0  ;;  %v2343_v35 = vpop.f32.mrb[81].mxu1  ;;  %v2892_v48 = vsel %vm2889_vm3, %v2890_v30, %v2891_v24  ;;  %v9723_v28 = vld [vmem:[%s12809_s7 + $0x44] ss:$8 sps:$4 sm:$0xff]  }
 0x27e   :  { %v2621_v39 = vmax.f32 %v1524_v34, %v2343_v35  ;;  %v1526_v40 = vpop.f32.mrb[82].mxu0  ;;  %v2345_v41 = vpop.f32.mrb[82].mxu1  ;;  %v2895_v42 = vsel %vm2889_vm3, %v2893_v25, %v2894_v26  ;;  %v9715_v25 = vld [vmem:[%s12809_s7 + $0x30] ss:$8 sps:$4 sm:$0xff]  }
 0x27f   :  { %v2622_v45 = vmax.f32 %v1526_v40, %v2345_v41  ;;  %v1528_v46 = vpop.f32.mrb[83].mxu0  ;;  %v2347_v47 = vpop.f32.mrb[83].mxu1  ;;  %8034 = vmatprep.mubr.msk.bf16.mxu0 %vm3073_vm4, %v2895_v42  ;;  %8101 = vmatprep.mubr.msk.bf16.mxu1 %vm3073_vm4, %v2895_v42  ;;  %v9721_v41 = vld [vmem:[%s12809_s7 + $0x40] ss:$8 sps:$4 sm:$0xff]  }
 0x280   :  { %v2623_v49 = vmax.f32 %v1528_v46, %v2347_v47  ;;  %3128 = vmatmul.mubr.bf16.vlgmr.msra.gmra.mrb[180].mxu0 %v2892_v48  ;;  %3410 = vmatmul.mubr.bf16.vlgmr.msra.gmra.mrb[180].mxu1 %v2892_v48  ;;  %v9724_v42 = vld [vmem:[%s12810_s8 + $0x40] ss:$8 sps:$4 sm:$0xff]   ;;  %v9729_v48 = vld [vmem:[%s12809_s7 + $0x54] ss:$8 sps:$4 sm:$0xff]  }
 0x281   :  { %v2734_v52 = vpack.c.bf16 %v2622_v45, %v2620_v31  ;;  %3650 = vmatpush1.bf16.msra.mxu0 %v9697_v29  ;;  %3901 = vmatpush1.bf16.msra.mxu1 %v9700_v38  ;;  %v9726_v29 = vld [vmem:[%s12810_s8 + $0x44] ss:$8 sps:$4 sm:$0xff]  }
 0x282   :  { %v2735_v57 = vpack.c.bf16 %v2623_v49, %v2621_v39  ;;  %3651 = vmatprep.subr.bf16.mxu0 %v9705_v43  ;;  %3902 = vmatprep.subr.bf16.mxu1 %v9708_v44  ;;  %v9732_v49 = vld [vmem:[%s12810_s8 + $0x54] ss:$8 sps:$4 sm:$0xff]  }
 0x283   :  { %v2896_v60 = vrot.slane %v2734_v52, 4 }
 0x284   :  { %v2898_v61 = vrot.slane %v2735_v57, 4  ;;  %v1532_v62 = vpop.f32.mrb[84].mxu0  ;;  %v2351_v63 = vpop.f32.mrb[84].mxu1 }
 0x285   :  { %v2624_v0 = vmax.f32 %v1532_v62, %v2351_v63  ;;  %3652 = vmatpush1.bf16.msra.mxu0 %v9703_v53  ;;  %3903 = vmatpush1.bf16.msra.mxu1 %v9706_v56  ;;  %v1534_v1 = vpop.f32.mrb[85].mxu0  ;;  %v2353_v10 = vpop.f32.mrb[85].mxu1  ;;  %v2897_v13 = vsel %vm2889_vm3, %v2891_v24, %v2896_v60  ;;  %v9735_v62 = vld [vmem:[%s12809_s7 + $0x64] ss:$8 sps:$4 sm:$0xff]  }
 0x286   :  { %v2625_v16 = vmax.f32 %v1534_v1, %v2353_v10  ;;  %v1536_v6 = vpop.f32.mrb[86].mxu0  ;;  %v2355_v17 = vpop.f32.mrb[86].mxu1  ;;  %v2899_v7 = vsel %vm2889_vm3, %v2894_v26, %v2898_v61  ;;  %3653 = vmatprep.subr.bf16.mxu0 %v9711_v58  ;;  %3904 = vmatprep.subr.bf16.mxu1 %v9714_v59  ;;  %v9718_v26 = vld [vmem:[%s12810_s8 + $0x30] ss:$8 sps:$4 sm:$0xff]   ;;  %v9738_v63 = vld [vmem:[%s12810_s8 + $0x64] ss:$8 sps:$4 sm:$0xff]  }
 0x287   :  { %v2626_v20 = vmax.f32 %v1536_v6, %v2355_v17  ;;  %v1538_v21 = vpop.f32.mrb[87].mxu0  ;;  %v2357_v22 = vpop.f32.mrb[87].mxu1  ;;  %8035 = vmatprep.mubr.msk.bf16.mxu0 %vm3073_vm4, %v2899_v7  ;;  %8102 = vmatprep.mubr.msk.bf16.mxu1 %vm3073_vm4, %v2899_v7  ;;  %v9727_v59 = vld [vmem:[%s12809_s7 + $0x50] ss:$8 sps:$4 sm:$0xff]   ;;  %v9733_v6 = vld [vmem:[%s12809_s7 + $0x60] ss:$8 sps:$4 sm:$0xff]  }
 0x288   :  { %v2627_v23 = vmax.f32 %v1538_v21, %v2357_v22  ;;  %3138 = vmatmul.mubr.bf16.gmra.mrb[184].mxu0 %v2897_v13  ;;  %3420 = vmatmul.mubr.bf16.gmra.mrb[184].mxu1 %v2897_v13  ;;  %v9736_v17 = vld [vmem:[%s12810_s8 + $0x60] ss:$8 sps:$4 sm:$0xff]   ;;  %v9741_v22 = vld [vmem:[%s12809_s7 + $0x74] ss:$8 sps:$4 sm:$0xff]  }
 0x289   :  { %v2736_v24 = vpack.c.bf16 %v2626_v20, %v2624_v0  ;;  %3654 = vmatpush1.bf16.msra.mxu0 %v9709_v11  ;;  %3905 = vmatpush1.bf16.msra.mxu1 %v9712_v12 }
 0x28a   :  { %v2737_v27 = vpack.c.bf16 %v2627_v23, %v2625_v16  ;;  %3655 = vmatprep.subr.bf16.mxu0 %v9717_v18  ;;  %3906 = vmatprep.subr.bf16.mxu1 %v9720_v19  ;;  %v9744_v23 = vld [vmem:[%s12810_s8 + $0x74] ss:$8 sps:$4 sm:$0xff]  }
 0x28b   :  { %v2900_v30 = vrot.slane %v2736_v24, 4 }
 0x28c   :  { %v2902_v31 = vrot.slane %v2737_v27, 4  ;;  %v1542_v34 = vpop.f32.mrb[88].mxu0  ;;  %v2361_v35 = vpop.f32.mrb[88].mxu1 }
 0x28d   :  { %v2628_v38 = vmax.f32 %v1542_v34, %v2361_v35  ;;  %3656 = vmatpush1.bf16.msra.mxu0 %v9715_v25  ;;  %3907 = vmatpush1.bf16.msra.mxu1 %v9718_v26  ;;  %v1544_v39 = vpop.f32.mrb[89].mxu0  ;;  %v2363_v40 = vpop.f32.mrb[89].mxu1  ;;  %v2901_v43 = vsel %vm2889_vm3, %v2896_v60, %v2900_v30  ;;  %v9730_v60 = vld [vmem:[%s12810_s8 + $0x50] ss:$8 sps:$4 sm:$0xff]   ;;  %v9747_v34 = vld [vmem:[%s12809_s7 + $0x84] ss:$8 sps:$4 sm:$0xff]  }
 0x28e   :  { %v2629_v44 = vmax.f32 %v1544_v39, %v2363_v40  ;;  %v1546_v45 = vpop.f32.mrb[90].mxu0  ;;  %v2365_v46 = vpop.f32.mrb[90].mxu1  ;;  %v2903_v47 = vsel %vm2889_vm3, %v2898_v61, %v2902_v31  ;;  %3657 = vmatprep.subr.bf16.mxu0 %v9723_v28  ;;  %3908 = vmatprep.subr.bf16.mxu1 %v9726_v29  ;;  %v9739_v29 = vld [vmem:[%s12809_s7 + $0x70] ss:$8 sps:$4 sm:$0xff]   ;;  %v9750_v35 = vld [vmem:[%s12810_s8 + $0x84] ss:$8 sps:$4 sm:$0xff]  }
 0x28f   :  { %v2630_v52 = vmax.f32 %v1546_v45, %v2365_v46  ;;  %v1548_v53 = vpop.f32.mrb[91].mxu0  ;;  %v2367_v56 = vpop.f32.mrb[91].mxu1  ;;  %8036 = vmatprep.mubr.msk.bf16.mxu0 %vm3073_vm4, %v2903_v47  ;;  %8103 = vmatprep.mubr.msk.bf16.mxu1 %vm3073_vm4, %v2903_v47  ;;  %v9745_v45 = vld [vmem:[%s12809_s7 + $0x80] ss:$8 sps:$4 sm:$0xff]  }
 0x290   :  { %v2631_v57 = vmax.f32 %v1548_v53, %v2367_v56  ;;  %3148 = vmatmul.mubr.bf16.gmra.mrb[188].mxu0 %v2901_v43  ;;  %3430 = vmatmul.mubr.bf16.gmra.mrb[188].mxu1 %v2901_v43  ;;  %v9748_v46 = vld [vmem:[%s12810_s8 + $0x80] ss:$8 sps:$4 sm:$0xff]   ;;  %v9753_v56 = vld [vmem:[%s12809_s7 + $0x94] ss:$8 sps:$4 sm:$0xff]  }
 0x291   :  { %v2738_v58 = vpack.c.bf16 %v2630_v52, %v2628_v38  ;;  %3658 = vmatpush1.bf16.msra.mxu0 %v9721_v41  ;;  %3909 = vmatpush1.bf16.msra.mxu1 %v9724_v42 }
 0x292   :  { %v2739_v61 = vpack.c.bf16 %v2631_v57, %v2629_v44  ;;  %3659 = vmatprep.subr.bf16.mxu0 %v9729_v48  ;;  %3910 = vmatprep.subr.bf16.mxu1 %v9732_v49  ;;  %v9756_v57 = vld [vmem:[%s12810_s8 + $0x94] ss:$8 sps:$4 sm:$0xff]  }
 0x293   :  { %v2904_v0 = vrot.slane %v2738_v58, 4 }
 0x294   :  { %v2906_v1 = vrot.slane %v2739_v61, 4  ;;  %v1552_v10 = vpop.f32.mrb[92].mxu0  ;;  %v2371_v11 = vpop.f32.mrb[92].mxu1 }
 0x295   :  { %v2632_v12 = vmax.f32 %v1552_v10, %v2371_v11  ;;  %3660 = vmatpush1.bf16.msra.mxu0 %v9727_v59  ;;  %3911 = vmatpush1.bf16.msra.mxu1 %v9730_v60  ;;  %v1554_v13 = vpop.f32.mrb[93].mxu0  ;;  %v2373_v16 = vpop.f32.mrb[93].mxu1  ;;  %v2905_v7 = vsel %vm2889_vm3, %v2900_v30, %v2904_v0  ;;  %v9742_v30 = vld [vmem:[%s12810_s8 + $0x70] ss:$8 sps:$4 sm:$0xff]   ;;  %v9759_v10 = vld [vmem:[%s12809_s7 + $0xa4] ss:$8 sps:$4 sm:$0xff]  }
 0x296   :  { %v2633_v18 = vmax.f32 %v1554_v13, %v2373_v16  ;;  %v1556_v19 = vpop.f32.mrb[94].mxu0  ;;  %v2375_v20 = vpop.f32.mrb[94].mxu1  ;;  %v2907_v21 = vsel %vm2889_vm3, %v2902_v31, %v2906_v1  ;;  %3661 = vmatprep.subr.bf16.mxu0 %v9735_v62  ;;  %3912 = vmatprep.subr.bf16.mxu1 %v9738_v63  ;;  %v9751_v63 = vld [vmem:[%s12809_s7 + $0x90] ss:$8 sps:$4 sm:$0xff]   ;;  %v9762_v11 = vld [vmem:[%s12810_s8 + $0xa4] ss:$8 sps:$4 sm:$0xff]  }
 0x297   :  { %v2634_v24 = vmax.f32 %v1556_v19, %v2375_v20  ;;  %v1558_v25 = vpop.f32.mrb[95].mxu0  ;;  %v2377_v26 = vpop.f32.mrb[95].mxu1  ;;  %8037 = vmatprep.mubr.msk.bf16.mxu0 %vm3073_vm4, %v2907_v21  ;;  %8104 = vmatprep.mubr.msk.bf16.mxu1 %vm3073_vm4, %v2907_v21 }
 0x298   :  { %v2635_v27 = vmax.f32 %v1558_v25, %v2377_v26  ;;  %3158 = vmatmul.mubr.bf16.gmra.mrb[192].mxu0 %v2905_v7  ;;  %3440 = vmatmul.mubr.bf16.gmra.mrb[192].mxu1 %v2905_v7  ;;  %v9760_v7 = vld [vmem:[%s12810_s8 + $0xa0] ss:$8 sps:$4 sm:$0xff]   ;;  %v9765_v26 = vld [vmem:[%s12809_s7 + $0xb4] ss:$8 sps:$4 sm:$0xff]  }
 0x299   :  { %v2740_v28 = vpack.c.bf16 %v2634_v24, %v2632_v12  ;;  %3662 = vmatpush1.bf16.msra.mxu0 %v9733_v6  ;;  %3913 = vmatpush1.bf16.msra.mxu1 %v9736_v17  ;;  %v9757_v17 = vld [vmem:[%s12809_s7 + $0xa0] ss:$8 sps:$4 sm:$0xff]  }
 0x29a   :  { %v2741_v31 = vpack.c.bf16 %v2635_v27, %v2633_v18  ;;  %3663 = vmatprep.subr.bf16.mxu0 %v9741_v22  ;;  %3914 = vmatprep.subr.bf16.mxu1 %v9744_v23  ;;  %v9768_v27 = vld [vmem:[%s12810_s8 + $0xb4] ss:$8 sps:$4 sm:$0xff]  }
 0x29b   :  { %v2908_v38 = vrot.slane %v2740_v28, 4 }
 0x29c   :  { %v2910_v39 = vrot.slane %v2741_v31, 4  ;;  %v1562_v40 = vpop.f32.mrb[96].mxu0  ;;  %v2381_v41 = vpop.f32.mrb[96].mxu1 }
 0x29d   :  { %v2636_v42 = vmax.f32 %v1562_v40, %v2381_v41  ;;  %3664 = vmatpush1.bf16.msra.mxu0 %v9739_v29  ;;  %3915 = vmatpush1.bf16.msra.mxu1 %v9742_v30  ;;  %v1564_v43 = vpop.f32.mrb[97].mxu0  ;;  %v2383_v44 = vpop.f32.mrb[97].mxu1  ;;  %v2909_v47 = vsel %vm2889_vm3, %v2904_v0, %v2908_v38  ;;  %v9754_v0 = vld [vmem:[%s12810_s8 + $0x90] ss:$8 sps:$4 sm:$0xff]   ;;  %v9774_v40 = vld [vmem:[%s12810_s8 + $0xc4] ss:$8 sps:$4 sm:$0xff]  }
 0x29e   :  { %v2637_v48 = vmax.f32 %v1564_v43, %v2383_v44  ;;  %v1566_v49 = vpop.f32.mrb[98].mxu0  ;;  %v2385_v52 = vpop.f32.mrb[98].mxu1  ;;  %v2911_v53 = vsel %vm2889_vm3, %v2906_v1, %v2910_v39  ;;  %3665 = vmatprep.subr.bf16.mxu0 %v9747_v34  ;;  %3916 = vmatprep.subr.bf16.mxu1 %v9750_v35  ;;  %v9763_v34 = vld [vmem:[%s12809_s7 + $0xb0] ss:$8 sps:$4 sm:$0xff]   ;;  %v9769_v44 = vld [vmem:[%s12809_s7 + $0xc0] ss:$8 sps:$4 sm:$0xff]  }
 0x29f   :  { %v2638_v58 = vmax.f32 %v1566_v49, %v2385_v52  ;;  %v1568_v59 = vpop.f32.mrb[99].mxu0  ;;  %v2387_v60 = vpop.f32.mrb[99].mxu1  ;;  %8038 = vmatprep.mubr.msk.bf16.mxu0 %vm3073_vm4, %v2911_v53  ;;  %8105 = vmatprep.mubr.msk.bf16.mxu1 %vm3073_vm4, %v2911_v53  ;;  %v9766_v35 = vld [vmem:[%s12810_s8 + $0xb0] ss:$8 sps:$4 sm:$0xff]  }
 0x2a0   :  { %v2639_v61 = vmax.f32 %v1568_v59, %v2387_v60  ;;  %3168 = vmatmul.mubr.bf16.gmra.mrb[196].mxu0 %v2909_v47  ;;  %3450 = vmatmul.mubr.bf16.gmra.mrb[196].mxu1 %v2909_v47 }
 0x2a1   :  { %v2742_v62 = vpack.c.bf16 %v2638_v58, %v2636_v42  ;;  %3666 = vmatpush1.bf16.msra.mxu0 %v9745_v45  ;;  %3917 = vmatpush1.bf16.msra.mxu1 %v9748_v46  ;;  %v9772_v45 = vld [vmem:[%s12810_s8 + $0xc0] ss:$8 sps:$4 sm:$0xff]  }
 0x2a2   :  { %v2743_v1 = vpack.c.bf16 %v2639_v61, %v2637_v48  ;;  %3667 = vmatprep.subr.bf16.mxu0 %v9753_v56  ;;  %3918 = vmatprep.subr.bf16.mxu1 %v9756_v57  ;;  %v9777_v56 = vld [vmem:[%s12809_s7 + $0xd4] ss:$8 sps:$4 sm:$0xff]  }
 0x2a3   :  { %v2912_v12 = vrot.slane %v2742_v62, 4  ;;  %v9780_v57 = vld [vmem:[%s12810_s8 + $0xd4] ss:$8 sps:$4 sm:$0xff]   ;;  %v9775_v62 = vld [vmem:[%s12809_s7 + $0xd0] ss:$8 sps:$4 sm:$0xff]  }
 0x2a4   :  { %v2914_v13 = vrot.slane %v2743_v1, 4  ;;  %v1572_v16 = vpop.f32.mrb[100].mxu0  ;;  %v2391_v6 = vpop.f32.mrb[100].mxu1  ;;  %v9783_v1 = vld [vmem:[%s12809_s7 + $0xe4] ss:$8 sps:$4 sm:$0xff]  }
 0x2a5   :  { %3668 = vmatpush1.bf16.msra.mxu0 %v9751_v63  ;;  %3919 = vmatpush1.bf16.msra.mxu1 %v9754_v0  ;;  %v2913_v18 = vsel %vm2889_vm3, %v2908_v38, %v2912_v12  ;;  %v2640_v19 = vmax.f32 %v1572_v16, %v2391_v6  ;;  %v1574_v20 = vpop.f32.mrb[101].mxu0  ;;  %v2393_v21 = vpop.f32.mrb[101].mxu1  ;;  %v9778_v63 = vld [vmem:[%s12810_s8 + $0xd0] ss:$8 sps:$4 sm:$0xff]   ;;  %v9784_v16 = vld [vmem:[%s12810_s8 + $0xe0] ss:$8 sps:$4 sm:$0xff]  }
 0x2a6   :  { %v2915_v22 = vsel %vm2889_vm3, %v2910_v39, %v2914_v13  ;;  %3669 = vmatprep.subr.bf16.mxu0 %v9759_v10  ;;  %3920 = vmatprep.subr.bf16.mxu1 %v9762_v11  ;;  %v2641_v23 = vmax.f32 %v1574_v20, %v2393_v21  ;;  %v1576_v24 = vpop.f32.mrb[102].mxu0  ;;  %v2395_v25 = vpop.f32.mrb[102].mxu1  ;;  %v9771_v39 = vld [vmem:[%s12809_s7 + $0xc4] ss:$8 sps:$4 sm:$0xff]  }
 0x2a7   :  { %8039 = vmatprep.mubr.msk.bf16.mxu0 %vm3073_vm4, %v2915_v22  ;;  %8106 = vmatprep.mubr.msk.bf16.mxu1 %vm3073_vm4, %v2915_v22  ;;  %v2642_v28 = vmax.f32 %v1576_v24, %v2395_v25  ;;  %v1578_v29 = vpop.f32.mrb[103].mxu0  ;;  %v2397_v30 = vpop.f32.mrb[103].mxu1  ;;  %v9786_v10 = vld [vmem:[%s12810_s8 + $0xe4] ss:$8 sps:$4 sm:$0xff]  }
 0x2a8   :  { %3178 = vmatmul.mubr.bf16.gmra.mrb[200].mxu0 %v2913_v18  ;;  %3460 = vmatmul.mubr.bf16.gmra.mrb[200].mxu1 %v2913_v18  ;;  %v2643_v31 = vmax.f32 %v1578_v29, %v2397_v30  ;;  %v9789_v18 = vld [vmem:[%s12809_s7 + $0x1e4] ss:$8 sps:$4 sm:$0xff]   ;;  %v9790_v29 = vld [vmem:[%s12810_s8 + $0x1e0] ss:$8 sps:$4 sm:$0xff]  }
 0x2a9   :  { %3670 = vmatpush1.bf16.msra.mxu0 %v9757_v17  ;;  %3921 = vmatpush1.bf16.msra.mxu1 %v9760_v7  ;;  %v11427_v38 = vpack.c.bf16 %v2642_v28, %v2640_v19  ;;  %v9792_v19 = vld [vmem:[%s12810_s8 + $0x1e4] ss:$8 sps:$4 sm:$0xff]   ;;  %v9787_v28 = vld [vmem:[%s12809_s7 + $0x1e0] ss:$8 sps:$4 sm:$0xff]  }
 0x2aa   :  { %8040 = vmatprep.mubr.msk.bf16.mxu0 %vm3073_vm4, %v2914_v13  ;;  %8107 = vmatprep.mubr.msk.bf16.mxu1 %vm3073_vm4, %v2914_v13  ;;  %v11437_v41 = vpack.c.bf16 %v2643_v31, %v2641_v23  ;;  %v9795_v31 = vld [vmem:[%s12809_s7 + $0x1f4] ss:$8 sps:$4 sm:$0xff]  }
 0x2ab   :  { %3671 = vmatprep.subr.bf16.mxu0 %v9765_v26  ;;  %3922 = vmatprep.subr.bf16.mxu1 %v9768_v27 }
 0x2ac   :  { %v1582_v42 = vpop.f32.mrb[104].mxu0  ;;  %v2401_v43 = vpop.f32.mrb[104].mxu1 }
 0x2ad   :  { %3672 = vmatpush1.bf16.msra.mxu0 %v9763_v34  ;;  %3923 = vmatpush1.bf16.msra.mxu1 %v9766_v35  ;;  %v2644_v46 = vmax.f32 %v1582_v42, %v2401_v43  ;;  %v1584_v47 = vpop.f32.mrb[105].mxu0  ;;  %v2403_v48 = vpop.f32.mrb[105].mxu1  ;;  %v9798_v34 = vld [vmem:[%s12810_s8 + $0x1f4] ss:$8 sps:$4 sm:$0xff]  }
 0x2ae   :  { %3673 = vmatprep.subr.bf16.mxu0 %v9771_v39  ;;  %3924 = vmatprep.subr.bf16.mxu1 %v9774_v40  ;;  %v2645_v49 = vmax.f32 %v1584_v47, %v2403_v48  ;;  %v1586_v52 = vpop.f32.mrb[106].mxu0  ;;  %v2405_v53 = vpop.f32.mrb[106].mxu1  ;;  %v9804_v48 = vld [vmem:[%s12810_s8 + $0x204] ss:$8 sps:$4 sm:$0xff]  }
 0x2af   :  { %v2646_v58 = vmax.f32 %v1586_v52, %v2405_v53  ;;  %v1588_v59 = vpop.f32.mrb[107].mxu0  ;;  %v2407_v60 = vpop.f32.mrb[107].mxu1 }
 0x2b0   :  { %3188 = vmatmul.mubr.bf16.gmra.mrb[204].mxu0 %v2912_v12  ;;  %3470 = vmatmul.mubr.bf16.gmra.mrb[204].mxu1 %v2912_v12  ;;  %v2647_v61 = vmax.f32 %v1588_v59, %v2407_v60  ;;  %v9802_v59 = vld [vmem:[%s12810_s8 + $0x200] ss:$8 sps:$4 sm:$0xff]  }
 0x2b1   :  { %3674 = vmatpush1.bf16.msra.mxu0 %v9769_v44  ;;  %3925 = vmatpush1.bf16.msra.mxu1 %v9772_v45  ;;  %v11457_v0 = vpack.c.bf16 %v2646_v58, %v2644_v46  ;;  %v9793_v44 = vld [vmem:[%s12809_s7 + $0x1f0] ss:$8 sps:$4 sm:$0xff]   ;;  %v9799_v58 = vld [vmem:[%s12809_s7 + $0x200] ss:$8 sps:$4 sm:$0xff]  }
 0x2b2   :  { %8138 = vmatprep.mubr.msk.bf16.mxu0 %vm3073_vm4, %v11179_v9  ;;  %8175 = vmatprep.mubr.msk.bf16.mxu1 %vm3073_vm4, %v11179_v9  ;;  %v11469_v11 = vpack.c.bf16 %v2647_v61, %v2645_v49  ;;  %v9781_v9 = vld [vmem:[%s12809_s7 + $0xe0] ss:$8 sps:$4 sm:$0xff]   ;;  %v9807_v61 = vld [vmem:[%s12809_s7 + $0x214] ss:$8 sps:$4 sm:$0xff]  }
 0x2b3   :  { %3675 = vmatprep.subr.bf16.mxu0 %v9777_v56  ;;  %3926 = vmatprep.subr.bf16.mxu1 %v9780_v57 }
 0x2b4   :  { %v1592_v12 = vpop.f32.mrb[108].mxu0  ;;  %v2411_v13 = vpop.f32.mrb[108].mxu1 }
 0x2b5   :  { %3676 = vmatpush1.bf16.msra.mxu0 %v9775_v62  ;;  %3927 = vmatpush1.bf16.msra.mxu1 %v9778_v63  ;;  %v2648_v6 = vmax.f32 %v1592_v12, %v2411_v13  ;;  %v1594_v17 = vpop.f32.mrb[109].mxu0  ;;  %v2413_v7 = vpop.f32.mrb[109].mxu1  ;;  %v9810_v62 = vld [vmem:[%s12810_s8 + $0x214] ss:$8 sps:$4 sm:$0xff]  }
 0x2b6   :  { %3677 = vmatprep.subr.bf16.mxu0 %v9783_v1  ;;  %3928 = vmatprep.subr.bf16.mxu1 %v9786_v10  ;;  %v2649_v20 = vmax.f32 %v1594_v17, %v2413_v7  ;;  %v1596_v21 = vpop.f32.mrb[110].mxu0  ;;  %v2415_v22 = vpop.f32.mrb[110].mxu1  ;;  %v9816_v7 = vld [vmem:[%s12810_s8 + $0x224] ss:$8 sps:$4 sm:$0xff]  }
 0x2b7   :  { %v2650_v23 = vmax.f32 %v1596_v21, %v2415_v22  ;;  %v1598_v24 = vpop.f32.mrb[111].mxu0  ;;  %v2417_v25 = vpop.f32.mrb[111].mxu1 }
 0x2b8   :  { %v2651_v26 = vmax.f32 %v1598_v24, %v2417_v25  ;;  %v9814_v24 = vld [vmem:[%s12810_s8 + $0x220] ss:$8 sps:$4 sm:$0xff]  }
 0x2b9   :  { %3678 = vmatpush1.bf16.msra.mxu0 %v9781_v9  ;;  %3929 = vmatpush1.bf16.msra.mxu1 %v9784_v16  ;;  %v11483_v27 = vpack.c.bf16 %v2650_v23, %v2648_v6  ;;  %v9805_v9 = vld [vmem:[%s12809_s7 + $0x210] ss:$8 sps:$4 sm:$0xff]   ;;  %v9811_v23 = vld [vmem:[%s12809_s7 + $0x220] ss:$8 sps:$4 sm:$0xff]  }
 0x2ba   :  { %4203 = vmatprep.subr.bf16.mxu0 %v9789_v18  ;;  %4485 = vmatprep.subr.bf16.mxu1 %v9792_v19  ;;  %v11491_v30 = vpack.c.bf16 %v2651_v26, %v2649_v20  ;;  %v9819_v26 = vld [vmem:[%s12809_s7 + $0x234] ss:$8 sps:$4 sm:$0xff]  }
 0x2bc   :  { %3682 = vmatmul.mubr.bf16.vlgmr.msra.gmra.mrb[180].mxu0 %v11177_v8  ;;  %3933 = vmatmul.mubr.bf16.vlgmr.msra.gmra.mrb[180].mxu1 %v11177_v8  ;;  %v1602_v35 = vpop.f32.mrb[112].mxu0  ;;  %v2421_v39 = vpop.f32.mrb[112].mxu1  ;;  %v9796_v8 = vld [vmem:[%s12810_s8 + $0x1f0] ss:$8 sps:$4 sm:$0xff]  }
 0x2bd   :  { %8139 = vmatprep.mubr.msk.bf16.mxu0 %vm3073_vm4, %v11197_v37  ;;  %8176 = vmatprep.mubr.msk.bf16.mxu1 %vm3073_vm4, %v11197_v37  ;;  %v2652_v40 = vmax.f32 %v1602_v35, %v2421_v39  ;;  %v1604_v42 = vpop.f32.mrb[113].mxu0  ;;  %v2423_v43 = vpop.f32.mrb[113].mxu1  ;;  %v9801_v37 = vld [vmem:[%s12809_s7 + $0x204] ss:$8 sps:$4 sm:$0xff]  }
 0x2be   :  { %4204 = vmatpush1.bf16.msra.mxu0 %v9787_v28  ;;  %4486 = vmatpush1.bf16.msra.mxu1 %v9790_v29  ;;  %v2653_v45 = vmax.f32 %v1604_v42, %v2423_v43  ;;  %v1606_v46 = vpop.f32.mrb[114].mxu0  ;;  %v2425_v47 = vpop.f32.mrb[114].mxu1  ;;  %v9822_v28 = vld [vmem:[%s12810_s8 + $0x234] ss:$8 sps:$4 sm:$0xff]  }
 0x2bf   :  { %4205 = vmatprep.subr.bf16.mxu0 %v9795_v31  ;;  %4487 = vmatprep.subr.bf16.mxu1 %v9798_v34  ;;  %v2654_v49 = vmax.f32 %v1606_v46, %v2425_v47  ;;  %v1608_v52 = vpop.f32.mrb[115].mxu0  ;;  %v2427_v53 = vpop.f32.mrb[115].mxu1 }
 0x2c0   :  { %v2655_v56 = vmax.f32 %v1608_v52, %v2427_v53  ;;  %v9826_v52 = vld [vmem:[%s12810_s8 + $0x240] ss:$8 sps:$4 sm:$0xff]  }
 0x2c1   :  { %v11517_v57 = vpack.c.bf16 %v2654_v49, %v2652_v40  ;;  %v9817_v40 = vld [vmem:[%s12809_s7 + $0x230] ss:$8 sps:$4 sm:$0xff]   ;;  %v9823_v49 = vld [vmem:[%s12809_s7 + $0x240] ss:$8 sps:$4 sm:$0xff]  }
 0x2c2   :  { %4206 = vmatpush1.bf16.msra.mxu0 %v9793_v44  ;;  %4488 = vmatpush1.bf16.msra.mxu1 %v9796_v8  ;;  %v11525_v60 = vpack.c.bf16 %v2655_v56, %v2653_v45  ;;  %v9828_v8 = vld [vmem:[%s12810_s8 + $0x244] ss:$8 sps:$4 sm:$0xff]   ;;  %v9831_v56 = vld [vmem:[%s12809_s7 + $0x254] ss:$8 sps:$4 sm:$0xff]  }
 0x2c3   :  { %4207 = vmatprep.subr.bf16.mxu0 %v9801_v37  ;;  %4489 = vmatprep.subr.bf16.mxu1 %v9804_v48 }
 0x2c4   :  { %3692 = vmatmul.mubr.bf16.gmra.mrb[184].mxu0 %v11195_v36  ;;  %3943 = vmatmul.mubr.bf16.gmra.mrb[184].mxu1 %v11195_v36  ;;  %v1612_v63 = vpop.f32.mrb[116].mxu0  ;;  %v2431_v1 = vpop.f32.mrb[116].mxu1  ;;  %v9808_v36 = vld [vmem:[%s12810_s8 + $0x210] ss:$8 sps:$4 sm:$0xff]  }
 0x2c5   :  { %8140 = vmatprep.mubr.msk.bf16.mxu0 %vm3073_vm4, %v11215_v55  ;;  %8177 = vmatprep.mubr.msk.bf16.mxu1 %vm3073_vm4, %v11215_v55  ;;  %v2656_v10 = vmax.f32 %v1612_v63, %v2431_v1  ;;  %v1614_v12 = vpop.f32.mrb[117].mxu0  ;;  %v2433_v13 = vpop.f32.mrb[117].mxu1  ;;  %v9813_v55 = vld [vmem:[%s12809_s7 + $0x224] ss:$8 sps:$4 sm:$0xff]  }
 0x2c6   :  { %4208 = vmatpush1.bf16.msra.mxu0 %v9799_v58  ;;  %4490 = vmatpush1.bf16.msra.mxu1 %v9802_v59  ;;  %v2657_v16 = vmax.f32 %v1614_v12, %v2433_v13  ;;  %v1616_v6 = vpop.f32.mrb[118].mxu0  ;;  %v2435_v17 = vpop.f32.mrb[118].mxu1  ;;  %v9834_v58 = vld [vmem:[%s12810_s8 + $0x254] ss:$8 sps:$4 sm:$0xff]  }
 0x2c7   :  { %4209 = vmatprep.subr.bf16.mxu0 %v9807_v61  ;;  %4491 = vmatprep.subr.bf16.mxu1 %v9810_v62  ;;  %v2658_v18 = vmax.f32 %v1616_v6, %v2435_v17  ;;  %v1618_v19 = vpop.f32.mrb[119].mxu0  ;;  %v2437_v20 = vpop.f32.mrb[119].mxu1 }
 0x2c8   :  { %v2659_v21 = vmax.f32 %v1618_v19, %v2437_v20  ;;  %v9838_v19 = vld [vmem:[%s12810_s8 + $0x260] ss:$8 sps:$4 sm:$0xff]  }
 0x2c9   :  { %v11551_v22 = vpack.c.bf16 %v2658_v18, %v2656_v10  ;;  %v9829_v10 = vld [vmem:[%s12809_s7 + $0x250] ss:$8 sps:$4 sm:$0xff]   ;;  %v9835_v18 = vld [vmem:[%s12809_s7 + $0x260] ss:$8 sps:$4 sm:$0xff]  }
 0x2ca   :  { %4210 = vmatpush1.bf16.msra.mxu0 %v9805_v9  ;;  %4492 = vmatpush1.bf16.msra.mxu1 %v9808_v36  ;;  %v11559_v25 = vpack.c.bf16 %v2659_v21, %v2657_v16  ;;  %v9840_v36 = vld [vmem:[%s12810_s8 + $0x264] ss:$8 sps:$4 sm:$0xff]   ;;  %v9843_v21 = vld [vmem:[%s12809_s7 + $0x274] ss:$8 sps:$4 sm:$0xff]  }
 0x2cb   :  { %4211 = vmatprep.subr.bf16.mxu0 %v9813_v55  ;;  %4493 = vmatprep.subr.bf16.mxu1 %v9816_v7 }
 0x2cc   :  { %3702 = vmatmul.mubr.bf16.gmra.mrb[188].mxu0 %v11213_v54  ;;  %3953 = vmatmul.mubr.bf16.gmra.mrb[188].mxu1 %v11213_v54  ;;  %v1622_v29 = vpop.f32.mrb[120].mxu0  ;;  %v2441_v31 = vpop.f32.mrb[120].mxu1  ;;  %v9820_v54 = vld [vmem:[%s12810_s8 + $0x230] ss:$8 sps:$4 sm:$0xff]  }
 0x2cd   :  { %8141 = vmatprep.mubr.msk.bf16.mxu0 %vm3073_vm4, %v11233_v15  ;;  %8178 = vmatprep.mubr.msk.bf16.mxu1 %vm3073_vm4, %v11233_v15  ;;  %v2660_v34 = vmax.f32 %v1622_v29, %v2441_v31  ;;  %v1624_v35 = vpop.f32.mrb[121].mxu0  ;;  %v2443_v39 = vpop.f32.mrb[121].mxu1  ;;  %v9825_v15 = vld [vmem:[%s12809_s7 + $0x244] ss:$8 sps:$4 sm:$0xff]  }
 0x2ce   :  { %4212 = vmatpush1.bf16.msra.mxu0 %v9811_v23  ;;  %4494 = vmatpush1.bf16.msra.mxu1 %v9814_v24  ;;  %v2661_v42 = vmax.f32 %v1624_v35, %v2443_v39  ;;  %v1626_v43 = vpop.f32.mrb[122].mxu0  ;;  %v2445_v44 = vpop.f32.mrb[122].mxu1  ;;  %v9846_v23 = vld [vmem:[%s12810_s8 + $0x274] ss:$8 sps:$4 sm:$0xff]  }
 0x2cf   :  { %4213 = vmatprep.subr.bf16.mxu0 %v9819_v26  ;;  %4495 = vmatprep.subr.bf16.mxu1 %v9822_v28  ;;  %v2662_v45 = vmax.f32 %v1626_v43, %v2445_v44  ;;  %v1628_v46 = vpop.f32.mrb[123].mxu0  ;;  %v2447_v47 = vpop.f32.mrb[123].mxu1  ;;  %v9849_v43 = vld [vmem:[%s12809_s7 + $0x284] ss:$8 sps:$4 sm:$0xff]  }
 0x2d0   :  { %v2663_v37 = vmax.f32 %v1628_v46, %v2447_v47  ;;  %v9852_v44 = vld [vmem:[%s12810_s8 + $0x284] ss:$8 sps:$4 sm:$0xff]  }
 0x2d1   :  { %v11585_v48 = vpack.c.bf16 %v2662_v45, %v2660_v34  ;;  %v9841_v34 = vld [vmem:[%s12809_s7 + $0x270] ss:$8 sps:$4 sm:$0xff]  }
 0x2d2   :  { %4214 = vmatpush1.bf16.msra.mxu0 %v9817_v40  ;;  %4496 = vmatpush1.bf16.msra.mxu1 %v9820_v54  ;;  %v11593_v53 = vpack.c.bf16 %v2663_v37, %v2661_v42  ;;  %v9847_v37 = vld [vmem:[%s12809_s7 + $0x280] ss:$8 sps:$4 sm:$0xff]  }
 0x2d3   :  { %4215 = vmatprep.subr.bf16.mxu0 %v9825_v15  ;;  %4497 = vmatprep.subr.bf16.mxu1 %v9828_v8 }
 0x2d4   :  { %3712 = vmatmul.mubr.bf16.gmra.mrb[192].mxu0 %v11231_v14  ;;  %3963 = vmatmul.mubr.bf16.gmra.mrb[192].mxu1 %v11231_v14  ;;  %v1632_v59 = vpop.f32.mrb[124].mxu0  ;;  %v2451_v61 = vpop.f32.mrb[124].mxu1  ;;  %v9832_v14 = vld [vmem:[%s12810_s8 + $0x250] ss:$8 sps:$4 sm:$0xff]  }
 0x2d5   :  { %8142 = vmatprep.mubr.msk.bf16.mxu0 %vm3073_vm4, %v11251_v33  ;;  %8179 = vmatprep.mubr.msk.bf16.mxu1 %vm3073_vm4, %v11251_v33  ;;  %v2664_v62 = vmax.f32 %v1632_v59, %v2451_v61  ;;  %v1634_v63 = vpop.f32.mrb[125].mxu0  ;;  %v2453_v1 = vpop.f32.mrb[125].mxu1  ;;  %v9837_v33 = vld [vmem:[%s12809_s7 + $0x264] ss:$8 sps:$4 sm:$0xff]  }
 0x2d6   :  { %4216 = vmatpush1.bf16.msra.mxu0 %v9823_v49  ;;  %4498 = vmatpush1.bf16.msra.mxu1 %v9826_v52  ;;  %v2665_v12 = vmax.f32 %v1634_v63, %v2453_v1  ;;  %v1636_v13 = vpop.f32.mrb[126].mxu0  ;;  %v2455_v9 = vpop.f32.mrb[126].mxu1  ;;  %v9850_v49 = vld [vmem:[%s12810_s8 + $0x280] ss:$8 sps:$4 sm:$0xff]  }
 0x2d7   :  { %4217 = vmatprep.subr.bf16.mxu0 %v9831_v56  ;;  %4499 = vmatprep.subr.bf16.mxu1 %v9834_v58  ;;  %v2666_v16 = vmax.f32 %v1636_v13, %v2455_v9  ;;  %v1638_v6 = vpop.f32.mrb[127].mxu0  ;;  %v2457_v17 = vpop.f32.mrb[127].mxu1  ;;  %v9855_v56 = vld [vmem:[%s12809_s7 + $0x294] ss:$8 sps:$4 sm:$0xff]  }
 0x2d8   :  { %v2667_v55 = vmax.f32 %v1638_v6, %v2457_v17  ;;  %v9858_v58 = vld [vmem:[%s12810_s8 + $0x294] ss:$8 sps:$4 sm:$0xff]   ;;  %v9861_v17 = vld [vmem:[%s12809_s7 + $0x2a4] ss:$8 sps:$4 sm:$0xff]  }
 0x2d9   :  { %v11619_v7 = vpack.c.bf16 %v2666_v16, %v2664_v62 }
 0x2da   :  { %4218 = vmatpush1.bf16.msra.mxu0 %v9829_v10  ;;  %4500 = vmatpush1.bf16.msra.mxu1 %v9832_v14  ;;  %v11627_v20 = vpack.c.bf16 %v2667_v55, %v2665_v12  ;;  %v9856_v12 = vld [vmem:[%s12810_s8 + $0x290] ss:$8 sps:$4 sm:$0xff]   ;;  %v9864_v55 = vld [vmem:[%s12810_s8 + $0x2a4] ss:$8 sps:$4 sm:$0xff]  }
 0x2db   :  { %4219 = vmatprep.subr.bf16.mxu0 %v9837_v33  ;;  %4501 = vmatprep.subr.bf16.mxu1 %v9840_v36  ;;  %v4683_v8 = vrot.slane %v11619_v7, 4 }
 0x2dc   :  { %3722 = vmatmul.mubr.bf16.gmra.mrb[196].mxu0 %v11249_v32  ;;  %3973 = vmatmul.mubr.bf16.gmra.mrb[196].mxu1 %v11249_v32  ;;  %v1642_v24 = vpop.f32.mrb[128].mxu0  ;;  %v2461_v26 = vpop.f32.mrb[128].mxu1  ;;  %v9844_v32 = vld [vmem:[%s12810_s8 + $0x270] ss:$8 sps:$4 sm:$0xff]   ;;  %v4686_v46 = vrot.slane %v11627_v20, 4 }
 0x2dd   :  { %8143 = vmatprep.mubr.msk.bf16.mxu0 %vm3073_vm4, %v11257_v51  ;;  %8180 = vmatprep.mubr.msk.bf16.mxu1 %vm3073_vm4, %v11257_v51  ;;  %v2668_v28 = vmax.f32 %v1642_v24, %v2461_v26  ;;  %v1644_v29 = vpop.f32.mrb[129].mxu0  ;;  %v2463_v31 = vpop.f32.mrb[129].mxu1  ;;  %v9862_v24 = vld [vmem:[%s12810_s8 + $0x2a0] ss:$8 sps:$4 sm:$0xff]  }
 0x2de   :  { %4220 = vmatpush1.bf16.msra.mxu0 %v9835_v18  ;;  %4502 = vmatpush1.bf16.msra.mxu1 %v9838_v19  ;;  %v2669_v35 = vmax.f32 %v1644_v29, %v2463_v31  ;;  %v1646_v39 = vpop.f32.mrb[130].mxu0  ;;  %v2465_v40 = vpop.f32.mrb[130].mxu1  ;;  %v9870_v29 = vld [vmem:[%s12810_s8 + $0x2b4] ss:$8 sps:$4 sm:$0xff]  }
 0x2df   :  { %4221 = vmatprep.subr.bf16.mxu0 %v9843_v21  ;;  %4503 = vmatprep.subr.bf16.mxu1 %v9846_v23  ;;  %v2670_v54 = vmax.f32 %v1646_v39, %v2465_v40  ;;  %v1648_v51 = vpop.f32.mrb[131].mxu0  ;;  %v2467_v42 = vpop.f32.mrb[131].mxu1  ;;  %v9859_v23 = vld [vmem:[%s12809_s7 + $0x2a0] ss:$8 sps:$4 sm:$0xff]  }
 0x2e0   :  { %v2671_v15 = vmax.f32 %v1648_v51, %v2467_v42  ;;  %v9868_v51 = vld [vmem:[%s12810_s8 + $0x2b0] ss:$8 sps:$4 sm:$0xff]  }
 0x2e1   :  { %v2758_v45 = vpack.c.bf16 %v2670_v54, %v2668_v28  ;;  %v9867_v28 = vld [vmem:[%s12809_s7 + $0x2b4] ss:$8 sps:$4 sm:$0xff]  }
 0x2e2   :  { %4222 = vmatpush1.bf16.msra.mxu0 %v9841_v34  ;;  %4504 = vmatpush1.bf16.msra.mxu1 %v9844_v32  ;;  %v11655_v47 = vpack.c.bf16 %v2671_v15, %v2669_v35 }
 0x2e3   :  { %v4684_v52 = vrot.slane %v2758_v45, 4  ;;  %4223 = vmatprep.subr.bf16.mxu0 %v9849_v43  ;;  %4505 = vmatprep.subr.bf16.mxu1 %v9852_v44 }
 0x2e4   :  { %v4687_v59 = vrot.slane %v11655_v47, 4  ;;  %3732 = vmatmul.mubr.bf16.gmra.mrb[200].mxu0 %v11255_v50  ;;  %3983 = vmatmul.mubr.bf16.gmra.mrb[200].mxu1 %v11255_v50  ;;  %v1652_v61 = vpop.f32.mrb[132].mxu0  ;;  %v2471_v62 = vpop.f32.mrb[132].mxu1  ;;  %v9853_v50 = vld [vmem:[%s12809_s7 + $0x290] ss:$8 sps:$4 sm:$0xff]  }
 0x2e5   :  { %8144 = vmatprep.mubr.msk.bf16.mxu0 %vm3073_vm4, %v11261_v4  ;;  %8181 = vmatprep.mubr.msk.bf16.mxu1 %vm3073_vm4, %v11261_v4  ;;  %v2672_v63 = vmax.f32 %v1652_v61, %v2471_v62  ;;  %v1654_v1 = vpop.f32.mrb[133].mxu0  ;;  %v2473_v10 = vpop.f32.mrb[133].mxu1  ;;  %v11677_v14 = vsel %vm2889_vm3, %v4683_v8, %v4684_v52  ;;  %v9876_v47 = vld [vmem:[%s12810_s8 + $0x2c4] ss:$8 sps:$4 sm:$0xff]   ;;  %v9879_v61 = vld [vmem:[%s12809_s7 + $0x2d4] ss:$8 sps:$4 sm:$0xff]  }
 0x2e6   :  { %4224 = vmatpush1.bf16.msra.mxu0 %v9847_v37  ;;  %4506 = vmatpush1.bf16.msra.mxu1 %v9850_v49  ;;  %v2673_v13 = vmax.f32 %v1654_v1, %v2473_v10  ;;  %v1656_v9 = vpop.f32.mrb[134].mxu0  ;;  %v2475_v33 = vpop.f32.mrb[134].mxu1  ;;  %v11686_v4 = vsel %vm2889_vm3, %v4686_v46, %v4687_v59  ;;  %v9873_v46 = vld [vmem:[%s12809_s7 + $0x2c4] ss:$8 sps:$4 sm:$0xff]   ;;  %v9882_v62 = vld [vmem:[%s12810_s8 + $0x2d4] ss:$8 sps:$4 sm:$0xff]  }
 0x2e7   :  { %4225 = vmatprep.subr.bf16.mxu0 %v9855_v56  ;;  %4507 = vmatprep.subr.bf16.mxu1 %v9858_v58  ;;  %v2674_v36 = vmax.f32 %v1656_v9, %v2475_v33  ;;  %v1658_v16 = vpop.f32.mrb[135].mxu0  ;;  %v2477_v6 = vpop.f32.mrb[135].mxu1  ;;  %v9871_v56 = vld [vmem:[%s12809_s7 + $0x2c0] ss:$8 sps:$4 sm:$0xff]  }
 0x2e8   :  { %v2675_v18 = vmax.f32 %v1658_v16, %v2477_v6  ;;  %v9874_v58 = vld [vmem:[%s12810_s8 + $0x2c0] ss:$8 sps:$4 sm:$0xff]  }
 0x2e9   :  { %v2760_v19 = vpack.c.bf16 %v2674_v36, %v2672_v63 }
 0x2ea   :  { %4226 = vmatpush1.bf16.msra.mxu0 %v9853_v50  ;;  %4508 = vmatpush1.bf16.msra.mxu1 %v9856_v12  ;;  %v2761_v21 = vpack.c.bf16 %v2675_v18, %v2673_v13 }
 0x2eb   :  { %v4689_v26 = vrot.slane %v2760_v19, 4  ;;  %4227 = vmatprep.subr.bf16.mxu0 %v9861_v17  ;;  %4509 = vmatprep.subr.bf16.mxu1 %v9864_v55  ;;  %v9877_v17 = vld [vmem:[%s12809_s7 + $0x2d0] ss:$8 sps:$4 sm:$0xff]  }
 0x2ec   :  { %v4691_v31 = vrot.slane %v2761_v21, 4  ;;  %3742 = vmatmul.mubr.bf16.gmra.mrb[208].mxu0 %v11259_v2  ;;  %3993 = vmatmul.mubr.bf16.gmra.mrb[208].mxu1 %v11259_v2  ;;  %v1662_v34 = vpop.f32.mrb[136].mxu0  ;;  %v2481_v32 = vpop.f32.mrb[136].mxu1  ;;  %v9865_v2 = vld [vmem:[%s12809_s7 + $0x2b0] ss:$8 sps:$4 sm:$0xff]  }
 0x2ed   :  { %8242 = vmatprep.mubr.msk.bf16.mxu0 %vm3073_vm4, %v11437_v41  ;;  %8309 = vmatprep.mubr.msk.bf16.mxu1 %vm3073_vm4, %v11437_v41  ;;  %v2676_v35 = vmax.f32 %v1662_v34, %v2481_v32  ;;  %v1664_v39 = vpop.f32.mrb[137].mxu0  ;;  %v2483_v40 = vpop.f32.mrb[137].mxu1  ;;  %v11713_v54 = vsel %vm2889_vm3, %v4684_v52, %v4689_v26  ;;  %v9880_v55 = vld [vmem:[%s12810_s8 + $0x2d0] ss:$8 sps:$4 sm:$0xff]   ;;  %v9886_v32 = vld [vmem:[%s12810_s8 + $0x2e0] ss:$8 sps:$4 sm:$0xff]  }
 0x2ee   :  { %4228 = vmatpush1.bf16.msra.mxu0 %v9859_v23  ;;  %4510 = vmatpush1.bf16.msra.mxu1 %v9862_v24  ;;  %v2677_v42 = vmax.f32 %v1664_v39, %v2483_v40  ;;  %v1666_v43 = vpop.f32.mrb[138].mxu0  ;;  %v2485_v44 = vpop.f32.mrb[138].mxu1  ;;  %v11722_v41 = vsel %vm2889_vm3, %v4687_v59, %v4691_v31  ;;  %v9885_v24 = vld [vmem:[%s12809_s7 + $0x2e4] ss:$8 sps:$4 sm:$0xff]  }
 0x2ef   :  { %4229 = vmatprep.subr.bf16.mxu0 %v9867_v28  ;;  %4511 = vmatprep.subr.bf16.mxu1 %v9870_v29  ;;  %v2678_v15 = vmax.f32 %v1666_v43, %v2485_v44  ;;  %v1668_v8 = vpop.f32.mrb[139].mxu0  ;;  %v2487_v45 = vpop.f32.mrb[139].mxu1 }
 0x2f0   :  { %v2679_v37 = vmax.f32 %v1668_v8, %v2487_v45 }
 0x2f1   :  { %v2762_v49 = vpack.c.bf16 %v2678_v15, %v2676_v35 }
 0x2f2   :  { %4230 = vmatpush1.bf16.msra.mxu0 %v9865_v2  ;;  %4512 = vmatpush1.bf16.msra.mxu1 %v9868_v51  ;;  %v2763_v52 = vpack.c.bf16 %v2679_v37, %v2677_v42 }
 0x2f3   :  { %v4693_v59 = vrot.slane %v2762_v49, 4  ;;  %4231 = vmatprep.subr.bf16.mxu0 %v9873_v46  ;;  %4513 = vmatprep.subr.bf16.mxu1 %v9876_v47  ;;  %v9889_v46 = vld [vmem:[%s12809_s7 + $0x2f0] ss:$8 sps:$4 sm:$0xff]  }
 0x2f4   :  { %v4695_v63 = vrot.slane %v2763_v52, 4  ;;  %v1672_v1 = vpop.f32.mrb[140].mxu0  ;;  %v2491_v10 = vpop.f32.mrb[140].mxu1  ;;  %v9892_v47 = vld [vmem:[%s12810_s8 + $0x2f0] ss:$8 sps:$4 sm:$0xff]  }
 0x2f5   :  { %v2680_v50 = vmax.f32 %v1672_v1, %v2491_v10  ;;  %v1674_v12 = vpop.f32.mrb[141].mxu0  ;;  %v2493_v13 = vpop.f32.mrb[141].mxu1  ;;  %v11743_v9 = vsel %vm2889_vm3, %v4689_v26, %v4693_v59  ;;  %v9888_v26 = vld [vmem:[%s12810_s8 + $0x2e4] ss:$8 sps:$4 sm:$0xff]   ;;  %v9898_v10 = vld [vmem:[%s12810_s8 + $0x300] ss:$8 sps:$4 sm:$0xff]  }
 0x2f6   :  { %4232 = vmatpush1.bf16.msra.mxu0 %v9871_v56  ;;  %4514 = vmatpush1.bf16.msra.mxu1 %v9874_v58  ;;  %v2681_v33 = vmax.f32 %v1674_v12, %v2493_v13  ;;  %v1676_v36 = vpop.f32.mrb[142].mxu0  ;;  %v2495_v16 = vpop.f32.mrb[142].mxu1  ;;  %v11746_v6 = vsel %vm2889_vm3, %v4691_v31, %v4695_v63  ;;  %v9883_v31 = vld [vmem:[%s12809_s7 + $0x2e0] ss:$8 sps:$4 sm:$0xff]   ;;  %v9897_v58 = vld [vmem:[%s12809_s7 + $0x304] ss:$8 sps:$4 sm:$0xff]  }
 0x2f7   :  { %4887 = vmatprep.subr.bf16.mxu0 %v9879_v61  ;;  %5169 = vmatprep.subr.bf16.mxu1 %v9882_v62  ;;  %v2682_v18 = vmax.f32 %v1676_v36, %v2495_v16  ;;  %v1678_v19 = vpop.f32.mrb[143].mxu0  ;;  %v2497_v21 = vpop.f32.mrb[143].mxu1 }
 0x2f8   :  { %v2683_v23 = vmax.f32 %v1678_v19, %v2497_v21 }
 0x2f9   :  { %4236 = vmatmul.mubr.bf16.vlgmr.msra.gmra.mrb[180].mxu0 %v11427_v38  ;;  %4518 = vmatmul.mubr.bf16.vlgmr.msra.gmra.mrb[180].mxu1 %v11427_v38  ;;  %v2764_v28 = vpack.c.bf16 %v2682_v18, %v2680_v50  ;;  %v9891_v38 = vld [vmem:[%s12809_s7 + $0x2f4] ss:$8 sps:$4 sm:$0xff]  }
 0x2fa   :  { %8243 = vmatprep.mubr.msk.bf16.mxu0 %vm3073_vm4, %v11469_v11  ;;  %8310 = vmatprep.mubr.msk.bf16.mxu1 %vm3073_vm4, %v11469_v11  ;;  %v2765_v29 = vpack.c.bf16 %v2683_v23, %v2681_v33  ;;  %v9894_v11 = vld [vmem:[%s12810_s8 + $0x2f4] ss:$8 sps:$4 sm:$0xff]   ;;  %v9901_v23 = vld [vmem:[%s12809_s7 + $0x310] ss:$8 sps:$4 sm:$0xff]  }
 0x2fb   :  { %4888 = vmatpush1.bf16.msra.mxu0 %v9877_v17  ;;  %5170 = vmatpush1.bf16.msra.mxu1 %v9880_v55  ;;  %v4697_v34 = vrot.slane %v2764_v28, 4 }
 0x2fc   :  { %v4699_v35 = vrot.slane %v2765_v29, 4  ;;  %4889 = vmatprep.subr.bf16.mxu0 %v9885_v24  ;;  %5171 = vmatprep.subr.bf16.mxu1 %v9888_v26  ;;  %v1682_v39 = vpop.f32.mrb[144].mxu0  ;;  %v2501_v40 = vpop.f32.mrb[144].mxu1  ;;  %v9904_v24 = vld [vmem:[%s12810_s8 + $0x310] ss:$8 sps:$4 sm:$0xff]  }
 0x2fd   :  { %v2684_v2 = vmax.f32 %v1682_v39, %v2501_v40  ;;  %v1684_v51 = vpop.f32.mrb[145].mxu0  ;;  %v2503_v42 = vpop.f32.mrb[145].mxu1  ;;  %v11779_v43 = vsel %vm2889_vm3, %v4693_v59, %v4697_v34  ;;  %v9900_v59 = vld [vmem:[%s12810_s8 + $0x304] ss:$8 sps:$4 sm:$0xff]   ;;  %v9915_v40 = vld [vmem:[%s12809_s7 + $0x334] ss:$8 sps:$4 sm:$0xff]  }
 0x2fe   :  { %v2685_v44 = vmax.f32 %v1684_v51, %v2503_v42  ;;  %v1686_v15 = vpop.f32.mrb[146].mxu0  ;;  %v2505_v8 = vpop.f32.mrb[146].mxu1  ;;  %v11782_v45 = vsel %vm2889_vm3, %v4695_v63, %v4699_v35  ;;  %v9895_v63 = vld [vmem:[%s12809_s7 + $0x300] ss:$8 sps:$4 sm:$0xff]  }
 0x2ff   :  { %4890 = vmatpush1.bf16.msra.mxu0 %v9883_v31  ;;  %5172 = vmatpush1.bf16.msra.mxu1 %v9886_v32  ;;  %v2686_v37 = vmax.f32 %v1686_v15, %v2505_v8  ;;  %v1688_v49 = vpop.f32.mrb[147].mxu0  ;;  %v2507_v52 = vpop.f32.mrb[147].mxu1  ;;  %v9912_v32 = vld [vmem:[%s12810_s8 + $0x324] ss:$8 sps:$4 sm:$0xff]  }
 0x300   :  { %4891 = vmatprep.subr.bf16.mxu0 %v9891_v38  ;;  %5173 = vmatprep.subr.bf16.mxu1 %v9894_v11  ;;  %v2687_v56 = vmax.f32 %v1688_v49, %v2507_v52  ;;  %v9907_v11 = vld [vmem:[%s12809_s7 + $0x320] ss:$8 sps:$4 sm:$0xff]  }
 0x301   :  { %4246 = vmatmul.mubr.bf16.gmra.mrb[184].mxu0 %v11457_v0  ;;  %4528 = vmatmul.mubr.bf16.gmra.mrb[184].mxu1 %v11457_v0  ;;  %v2766_v61 = vpack.c.bf16 %v2686_v37, %v2684_v2  ;;  %v9903_v0 = vld [vmem:[%s12809_s7 + $0x314] ss:$8 sps:$4 sm:$0xff]  }
 0x302   :  { %8244 = vmatprep.mubr.msk.bf16.mxu0 %vm3073_vm4, %v11491_v30  ;;  %8311 = vmatprep.mubr.msk.bf16.mxu1 %vm3073_vm4, %v11491_v30  ;;  %v2767_v62 = vpack.c.bf16 %v2687_v56, %v2685_v44  ;;  %v9906_v30 = vld [vmem:[%s12810_s8 + $0x314] ss:$8 sps:$4 sm:$0xff]   ;;  %v9913_v56 = vld [vmem:[%s12809_s7 + $0x330] ss:$8 sps:$4 sm:$0xff]  }
 0x303   :  { %4892 = vmatpush1.bf16.msra.mxu0 %v9889_v46  ;;  %5174 = vmatpush1.bf16.msra.mxu1 %v9892_v47  ;;  %v4701_v1 = vrot.slane %v2766_v61, 4 }
 0x304   :  { %v4703_v50 = vrot.slane %v2767_v62, 4  ;;  %4893 = vmatprep.subr.bf16.mxu0 %v9897_v58  ;;  %5175 = vmatprep.subr.bf16.mxu1 %v9900_v59  ;;  %v1692_v12 = vpop.f32.mrb[148].mxu0  ;;  %v2511_v13 = vpop.f32.mrb[148].mxu1  ;;  %v9916_v58 = vld [vmem:[%s12810_s8 + $0x330] ss:$8 sps:$4 sm:$0xff]  }
 0x305   :  { %v2688_v33 = vmax.f32 %v1692_v12, %v2511_v13  ;;  %v1694_v36 = vpop.f32.mrb[149].mxu0  ;;  %v2513_v16 = vpop.f32.mrb[149].mxu1  ;;  %v11815_v17 = vsel %vm2889_vm3, %v4697_v34, %v4701_v1  ;;  %v9909_v34 = vld [vmem:[%s12809_s7 + $0x324] ss:$8 sps:$4 sm:$0xff]   ;;  %v9927_v12 = vld [vmem:[%s12809_s7 + $0x354] ss:$8 sps:$4 sm:$0xff]  }
 0x306   :  { %v2689_v55 = vmax.f32 %v1694_v36, %v2513_v16  ;;  %v1696_v18 = vpop.f32.mrb[150].mxu0  ;;  %v2515_v19 = vpop.f32.mrb[150].mxu1  ;;  %v11818_v21 = vsel %vm2889_vm3, %v4699_v35, %v4703_v50 }
 0x307   :  { %4894 = vmatpush1.bf16.msra.mxu0 %v9895_v63  ;;  %5176 = vmatpush1.bf16.msra.mxu1 %v9898_v10  ;;  %v2690_v26 = vmax.f32 %v1696_v18, %v2515_v19  ;;  %v1698_v28 = vpop.f32.mrb[151].mxu0  ;;  %v2517_v29 = vpop.f32.mrb[151].mxu1  ;;  %v9921_v63 = vld [vmem:[%s12809_s7 + $0x344] ss:$8 sps:$4 sm:$0xff]  }
 0x308   :  { %4895 = vmatprep.subr.bf16.mxu0 %v9903_v0  ;;  %5177 = vmatprep.subr.bf16.mxu1 %v9906_v30  ;;  %v2691_v31 = vmax.f32 %v1698_v28, %v2517_v29  ;;  %v9919_v30 = vld [vmem:[%s12809_s7 + $0x340] ss:$8 sps:$4 sm:$0xff]  }
 0x309   :  { %4256 = vmatmul.mubr.bf16.gmra.mrb[188].mxu0 %v11483_v27  ;;  %4538 = vmatmul.mubr.bf16.gmra.mrb[188].mxu1 %v11483_v27  ;;  %v2768_v38 = vpack.c.bf16 %v2690_v26, %v2688_v33  ;;  %v9910_v27 = vld [vmem:[%s12810_s8 + $0x320] ss:$8 sps:$4 sm:$0xff]   ;;  %v9928_v26 = vld [vmem:[%s12810_s8 + $0x350] ss:$8 sps:$4 sm:$0xff]  }
 0x30a   :  { %8245 = vmatprep.mubr.msk.bf16.mxu0 %vm3073_vm4, %v11525_v60  ;;  %8312 = vmatprep.mubr.msk.bf16.mxu1 %vm3073_vm4, %v11525_v60  ;;  %v2769_v35 = vpack.c.bf16 %v2691_v31, %v2689_v55  ;;  %v9918_v60 = vld [vmem:[%s12810_s8 + $0x334] ss:$8 sps:$4 sm:$0xff]  }
 0x30b   :  { %4896 = vmatpush1.bf16.msra.mxu0 %v9901_v23  ;;  %5178 = vmatpush1.bf16.msra.mxu1 %v9904_v24  ;;  %v11841_v39 = vrot.slane %v2768_v38, 4  ;;  %v9925_v24 = vld [vmem:[%s12809_s7 + $0x350] ss:$8 sps:$4 sm:$0xff]  }
 0x30c   :  { %v11849_v2 = vrot.slane %v2769_v35, 4  ;;  %4897 = vmatprep.subr.bf16.mxu0 %v9909_v34  ;;  %5179 = vmatprep.subr.bf16.mxu1 %v9912_v32  ;;  %v1702_v51 = vpop.f32.mrb[152].mxu0  ;;  %v2521_v42 = vpop.f32.mrb[152].mxu1  ;;  %v9933_v34 = vld [vmem:[%s12809_s7 + $0x364] ss:$8 sps:$4 sm:$0xff]  }
 0x30d   :  { %v2692_v44 = vmax.f32 %v1702_v51, %v2521_v42  ;;  %v1704_v15 = vpop.f32.mrb[153].mxu0  ;;  %v2523_v8 = vpop.f32.mrb[153].mxu1  ;;  %v11856_v46 = vsel %vm2889_vm3, %v4701_v1, %v11841_v39  ;;  %v9924_v1 = vld [vmem:[%s12810_s8 + $0x344] ss:$8 sps:$4 sm:$0xff]  }
 0x30e   :  { %v2693_v47 = vmax.f32 %v1704_v15, %v2523_v8  ;;  %v1706_v37 = vpop.f32.mrb[154].mxu0  ;;  %v2525_v49 = vpop.f32.mrb[154].mxu1  ;;  %v11860_v52 = vsel %vm2889_vm3, %v4703_v50, %v11849_v2  ;;  %v9936_v32 = vld [vmem:[%s12810_s8 + $0x364] ss:$8 sps:$4 sm:$0xff]  }
 0x30f   :  { %4898 = vmatpush1.bf16.msra.mxu0 %v9907_v11  ;;  %5180 = vmatpush1.bf16.msra.mxu1 %v9910_v27  ;;  %v2694_v59 = vmax.f32 %v1706_v37, %v2525_v49  ;;  %v1708_v61 = vpop.f32.mrb[155].mxu0  ;;  %v2527_v62 = vpop.f32.mrb[155].mxu1  ;;  %v9931_v27 = vld [vmem:[%s12809_s7 + $0x360] ss:$8 sps:$4 sm:$0xff]   ;;  %v9937_v49 = vld [vmem:[%s12809_s7 + $0x370] ss:$8 sps:$4 sm:$0xff]  }
 0x310   :  { %4899 = vmatprep.subr.bf16.mxu0 %v9915_v40  ;;  %5181 = vmatprep.subr.bf16.mxu1 %v9918_v60  ;;  %v2695_v10 = vmax.f32 %v1708_v61, %v2527_v62  ;;  %v9939_v40 = vld [vmem:[%s12809_s7 + $0x374] ss:$8 sps:$4 sm:$0xff]   ;;  %v9945_v62 = vld [vmem:[%s12809_s7 + $0x384] ss:$8 sps:$4 sm:$0xff]  }
 0x311   :  { %4266 = vmatmul.mubr.bf16.gmra.mrb[192].mxu0 %v11517_v57  ;;  %4548 = vmatmul.mubr.bf16.gmra.mrb[192].mxu1 %v11517_v57  ;;  %v11876_v0 = vpack.c.bf16 %v2694_v59, %v2692_v44  ;;  %v9922_v57 = vld [vmem:[%s12810_s8 + $0x340] ss:$8 sps:$4 sm:$0xff]  }
 0x312   :  { %8246 = vmatprep.mubr.msk.bf16.mxu0 %vm3073_vm4, %v11559_v25  ;;  %8313 = vmatprep.mubr.msk.bf16.mxu1 %vm3073_vm4, %v11559_v25  ;;  %v11882_v50 = vpack.c.bf16 %v2695_v10, %v2693_v47  ;;  %v9930_v25 = vld [vmem:[%s12810_s8 + $0x354] ss:$8 sps:$4 sm:$0xff]  }
 0x313   :  { %4900 = vmatpush1.bf16.msra.mxu0 %v9913_v56  ;;  %5182 = vmatpush1.bf16.msra.mxu1 %v9916_v58  ;;  %v9940_v56 = vld [vmem:[%s12810_s8 + $0x370] ss:$8 sps:$4 sm:$0xff]  }
 0x314   :  { %4901 = vmatprep.subr.bf16.mxu0 %v9921_v63  ;;  %5183 = vmatprep.subr.bf16.mxu1 %v9924_v1  ;;  %v1712_v13 = vpop.f32.mrb[156].mxu0  ;;  %v2531_v33 = vpop.f32.mrb[156].mxu1  ;;  %v9948_v63 = vld [vmem:[%s12810_s8 + $0x384] ss:$8 sps:$4 sm:$0xff]  }
 0x315   :  { %v2696_v36 = vmax.f32 %v1712_v13, %v2531_v33  ;;  %v1714_v16 = vpop.f32.mrb[157].mxu0  ;;  %v2533_v55 = vpop.f32.mrb[157].mxu1 }
 0x316   :  { %v2697_v18 = vmax.f32 %v1714_v16, %v2533_v55  ;;  %v1716_v19 = vpop.f32.mrb[158].mxu0  ;;  %v2535_v23 = vpop.f32.mrb[158].mxu1 }
 0x317   :  { %4902 = vmatpush1.bf16.msra.mxu0 %v9919_v30  ;;  %5184 = vmatpush1.bf16.msra.mxu1 %v9922_v57  ;;  %v2698_v28 = vmax.f32 %v1716_v19, %v2535_v23  ;;  %v1718_v29 = vpop.f32.mrb[159].mxu0  ;;  %v2537_v31 = vpop.f32.mrb[159].mxu1  ;;  %v9943_v57 = vld [vmem:[%s12809_s7 + $0x380] ss:$8 sps:$4 sm:$0xff]   ;;  %v9949_v23 = vld [vmem:[%s12809_s7 + $0x390] ss:$8 sps:$4 sm:$0xff]  }
 0x318   :  { %4903 = vmatprep.subr.bf16.mxu0 %v9927_v12  ;;  %5185 = vmatprep.subr.bf16.mxu1 %v9930_v25  ;;  %v2699_v38 = vmax.f32 %v1718_v29, %v2537_v31  ;;  %v9951_v12 = vld [vmem:[%s12809_s7 + $0x394] ss:$8 sps:$4 sm:$0xff]   ;;  %v9957_v31 = vld [vmem:[%s12809_s7 + $0x3a4] ss:$8 sps:$4 sm:$0xff]  }
 0x319   :  { %4276 = vmatmul.mubr.bf16.gmra.mrb[196].mxu0 %v11551_v22  ;;  %4558 = vmatmul.mubr.bf16.gmra.mrb[196].mxu1 %v11551_v22  ;;  %v11910_v35 = vpack.c.bf16 %v2698_v28, %v2696_v36  ;;  %v9934_v22 = vld [vmem:[%s12810_s8 + $0x360] ss:$8 sps:$4 sm:$0xff]  }
 0x31a   :  { %8247 = vmatprep.mubr.msk.bf16.mxu0 %vm3073_vm4, %v11593_v53  ;;  %8314 = vmatprep.mubr.msk.bf16.mxu1 %vm3073_vm4, %v11593_v53  ;;  %v11916_v11 = vpack.c.bf16 %v2699_v38, %v2697_v18  ;;  %v9942_v53 = vld [vmem:[%s12810_s8 + $0x374] ss:$8 sps:$4 sm:$0xff]  }
 0x31b   :  { %4904 = vmatpush1.bf16.msra.mxu0 %v9925_v24  ;;  %5186 = vmatpush1.bf16.msra.mxu1 %v9928_v26  ;;  %v9952_v24 = vld [vmem:[%s12810_s8 + $0x390] ss:$8 sps:$4 sm:$0xff]  }
 0x31c   :  { %4905 = vmatprep.subr.bf16.mxu0 %v9933_v34  ;;  %5187 = vmatprep.subr.bf16.mxu1 %v9936_v32  ;;  %v1722_v60 = vpop.f32.mrb[160].mxu0  ;;  %v2541_v51 = vpop.f32.mrb[160].mxu1  ;;  %v9960_v34 = vld [vmem:[%s12810_s8 + $0x3a4] ss:$8 sps:$4 sm:$0xff]  }
 0x31d   :  { %v2700_v42 = vmax.f32 %v1722_v60, %v2541_v51  ;;  %v1724_v44 = vpop.f32.mrb[161].mxu0  ;;  %v2543_v15 = vpop.f32.mrb[161].mxu1 }
 0x31e   :  { %v2701_v8 = vmax.f32 %v1724_v44, %v2543_v15  ;;  %v1726_v47 = vpop.f32.mrb[162].mxu0  ;;  %v2545_v37 = vpop.f32.mrb[162].mxu1 }
 0x31f   :  { %4906 = vmatpush1.bf16.msra.mxu0 %v9931_v27  ;;  %5188 = vmatpush1.bf16.msra.mxu1 %v9934_v22  ;;  %v2702_v58 = vmax.f32 %v1726_v47, %v2545_v37  ;;  %v1728_v59 = vpop.f32.mrb[163].mxu0  ;;  %v2547_v61 = vpop.f32.mrb[163].mxu1  ;;  %v9955_v22 = vld [vmem:[%s12809_s7 + $0x3a0] ss:$8 sps:$4 sm:$0xff]   ;;  %v9961_v37 = vld [vmem:[%s12809_s7 + $0x3b0] ss:$8 sps:$4 sm:$0xff]  }
 0x320   :  { %4907 = vmatprep.subr.bf16.mxu0 %v9939_v40  ;;  %5189 = vmatprep.subr.bf16.mxu1 %v9942_v53  ;;  %v2703_v1 = vmax.f32 %v1728_v59, %v2547_v61  ;;  %v9963_v40 = vld [vmem:[%s12809_s7 + $0x3b4] ss:$8 sps:$4 sm:$0xff]   ;;  %v9969_v61 = vld [vmem:[%s12809_s7 + $0x3c4] ss:$8 sps:$4 sm:$0xff]  }
 0x321   :  { %4286 = vmatmul.mubr.bf16.gmra.mrb[200].mxu0 %v11585_v48  ;;  %4568 = vmatmul.mubr.bf16.gmra.mrb[200].mxu1 %v11585_v48  ;;  %v11944_v10 = vpack.c.bf16 %v2702_v58, %v2700_v42  ;;  %v9946_v48 = vld [vmem:[%s12810_s8 + $0x380] ss:$8 sps:$4 sm:$0xff]  }
 0x322   :  { %8248 = vmatprep.mubr.msk.bf16.mxu0 %vm3073_vm4, %v11627_v20  ;;  %8315 = vmatprep.mubr.msk.bf16.mxu1 %vm3073_vm4, %v11627_v20  ;;  %v11950_v30 = vpack.c.bf16 %v2703_v1, %v2701_v8  ;;  %v9954_v20 = vld [vmem:[%s12810_s8 + $0x394] ss:$8 sps:$4 sm:$0xff]  }
 0x323   :  { %4908 = vmatpush1.bf16.msra.mxu0 %v9937_v49  ;;  %5190 = vmatpush1.bf16.msra.mxu1 %v9940_v56  ;;  %v9964_v49 = vld [vmem:[%s12810_s8 + $0x3b0] ss:$8 sps:$4 sm:$0xff]  }
 0x324   :  { %4909 = vmatprep.subr.bf16.mxu0 %v9945_v62  ;;  %5191 = vmatprep.subr.bf16.mxu1 %v9948_v63  ;;  %v1732_v25 = vpop.f32.mrb[164].mxu0  ;;  %v2551_v13 = vpop.f32.mrb[164].mxu1  ;;  %v9972_v62 = vld [vmem:[%s12810_s8 + $0x3c4] ss:$8 sps:$4 sm:$0xff]  }
 0x325   :  { %v2704_v33 = vmax.f32 %v1732_v25, %v2551_v13  ;;  %v1734_v36 = vpop.f32.mrb[165].mxu0  ;;  %v2553_v16 = vpop.f32.mrb[165].mxu1  ;;  %v9975_v13 = vld [vmem:[%s12809_s7 + $0x3d4] ss:$8 sps:$4 sm:$0xff]  }
 0x326   :  { %v2705_v55 = vmax.f32 %v1734_v36, %v2553_v16  ;;  %v1736_v18 = vpop.f32.mrb[166].mxu0  ;;  %v2555_v19 = vpop.f32.mrb[166].mxu1 }
 0x327   :  { %4910 = vmatpush1.bf16.msra.mxu0 %v9943_v57  ;;  %5192 = vmatpush1.bf16.msra.mxu1 %v9946_v48  ;;  %v2706_v26 = vmax.f32 %v1736_v18, %v2555_v19  ;;  %v1738_v28 = vpop.f32.mrb[167].mxu0  ;;  %v2557_v29 = vpop.f32.mrb[167].mxu1  ;;  %v9967_v48 = vld [vmem:[%s12809_s7 + $0x3c0] ss:$8 sps:$4 sm:$0xff]  }
 0x328   :  { %4911 = vmatprep.subr.bf16.mxu0 %v9951_v12  ;;  %5193 = vmatprep.subr.bf16.mxu1 %v9954_v20  ;;  %v2707_v32 = vmax.f32 %v1738_v28, %v2557_v29  ;;  %v9970_v12 = vld [vmem:[%s12810_s8 + $0x3c0] ss:$8 sps:$4 sm:$0xff]   ;;  %v9973_v29 = vld [vmem:[%s12809_s7 + $0x3d0] ss:$8 sps:$4 sm:$0xff]  }
 0x329   :  { %4296 = vmatmul.mubr.bf16.gmra.mrb[212].mxu0 %v11619_v7  ;;  %4578 = vmatmul.mubr.bf16.gmra.mrb[212].mxu1 %v11619_v7  ;;  %v11978_v38 = vpack.c.bf16 %v2706_v26, %v2704_v33  ;;  %v9958_v7 = vld [vmem:[%s12810_s8 + $0x3a0] ss:$8 sps:$4 sm:$0xff]   ;;  %v9978_v33 = vld [vmem:[%s12810_s8 + $0x3d4] ss:$8 sps:$4 sm:$0xff]  }
 0x32a   :  { %8376 = vmatprep.mubr.msk.bf16.mxu0 %vm3073_vm4, %v11686_v4  ;;  %8443 = vmatprep.mubr.msk.bf16.mxu1 %vm3073_vm4, %v11686_v4  ;;  %v11984_v27 = vpack.c.bf16 %v2707_v32, %v2705_v55  ;;  %v9966_v4 = vld [vmem:[%s12810_s8 + $0x3b4] ss:$8 sps:$4 sm:$0xff]  }
 0x32b   :  { %4912 = vmatpush1.bf16.msra.mxu0 %v9949_v23  ;;  %5194 = vmatpush1.bf16.msra.mxu1 %v9952_v24 }
 0x32c   :  { %4913 = vmatprep.subr.bf16.mxu0 %v9957_v31  ;;  %5195 = vmatprep.subr.bf16.mxu1 %v9960_v34  ;;  %v1742_v53 = vpop.f32.mrb[168].mxu0  ;;  %v2561_v60 = vpop.f32.mrb[168].mxu1  ;;  %v9984_v34 = vld [vmem:[%s12810_s8 + $0x3e4] ss:$8 sps:$4 sm:$0xff]  }
 0x32d   :  { %v2708_v51 = vmax.f32 %v1742_v53, %v2561_v60  ;;  %v1744_v42 = vpop.f32.mrb[169].mxu0  ;;  %v2563_v44 = vpop.f32.mrb[169].mxu1  ;;  %v9987_v60 = vld [vmem:[%s12809_s7 + $0x3f4] ss:$8 sps:$4 sm:$0xff]  }
 0x32e   :  { %v2709_v15 = vmax.f32 %v1744_v42, %v2563_v44  ;;  %v1746_v8 = vpop.f32.mrb[170].mxu0  ;;  %v2565_v47 = vpop.f32.mrb[170].mxu1 }
 0x32f   :  { %4914 = vmatpush1.bf16.msra.mxu0 %v9955_v22  ;;  %5196 = vmatpush1.bf16.msra.mxu1 %v9958_v7  ;;  %v2710_v56 = vmax.f32 %v1746_v8, %v2565_v47  ;;  %v1748_v58 = vpop.f32.mrb[171].mxu0  ;;  %v2567_v59 = vpop.f32.mrb[171].mxu1  ;;  %v9979_v7 = vld [vmem:[%s12809_s7 + $0x3e0] ss:$8 sps:$4 sm:$0xff]  }
 0x330   :  { %4915 = vmatprep.subr.bf16.mxu0 %v9963_v40  ;;  %5197 = vmatprep.subr.bf16.mxu1 %v9966_v4  ;;  %v2711_v63 = vmax.f32 %v1748_v58, %v2567_v59  ;;  %v9982_v40 = vld [vmem:[%s12810_s8 + $0x3e0] ss:$8 sps:$4 sm:$0xff]   ;;  %v9985_v58 = vld [vmem:[%s12809_s7 + $0x3f0] ss:$8 sps:$4 sm:$0xff]   ;;  %v9993_v59 = vld [vmem:[%s12809_s7 + $0x404] ss:$8 sps:$4 sm:$0xff]  }
 0x331   :  { %v12010_v1 = vpack.c.bf16 %v2710_v56, %v2708_v51  ;;  %v9990_v51 = vld [vmem:[%s12810_s8 + $0x3f4] ss:$8 sps:$4 sm:$0xff]  }
 0x332   :  { %v12012_v57 = vpack.c.bf16 %v2711_v63, %v2709_v15  ;;  %v9999_v63 = vld [vmem:[%s12809_s7 + $0x414] ss:$8 sps:$4 sm:$0xff]  }
 0x333   :  { %4916 = vmatpush1.bf16.msra.mxu0 %v9961_v37  ;;  %5198 = vmatpush1.bf16.msra.mxu1 %v9964_v49 }
 0x334   :  { %5524 = vmatprep.subr.bf16.mxu0 %v9969_v61  ;;  %5806 = vmatprep.subr.bf16.mxu1 %v9972_v62  ;;  %v1752_v20 = vpop.f32.mrb[172].mxu0  ;;  %v2571_v25 = vpop.f32.mrb[172].mxu1  ;;  %v9991_v61 = vld [vmem:[%s12809_s7 + $0x400] ss:$8 sps:$4 sm:$0xff]  }
 0x335   :  { %v2712_v36 = vmax.f32 %v1752_v20, %v2571_v25  ;;  %v1754_v16 = vpop.f32.mrb[173].mxu0  ;;  %v2573_v55 = vpop.f32.mrb[173].mxu1  ;;  %v9994_v62 = vld [vmem:[%s12810_s8 + $0x400] ss:$8 sps:$4 sm:$0xff]   ;;  %v10000_v20 = vld [vmem:[%s12810_s8 + $0x410] ss:$8 sps:$4 sm:$0xff]  }
 0x336   :  { %4920 = vmatmul.mubr.bf16.vlgmr.msra.gmra.mrb[180].mxu0 %v11677_v14  ;;  %5202 = vmatmul.mubr.bf16.vlgmr.msra.gmra.mrb[180].mxu1 %v11677_v14  ;;  %v2713_v18 = vmax.f32 %v1754_v16, %v2573_v55  ;;  %v1756_v19 = vpop.f32.mrb[174].mxu0  ;;  %v2575_v23 = vpop.f32.mrb[174].mxu1  ;;  %v9976_v14 = vld [vmem:[%s12810_s8 + $0x3d0] ss:$8 sps:$4 sm:$0xff]   ;;  %v10003_v25 = vld [vmem:[%s12809_s7 + $0x420] ss:$8 sps:$4 sm:$0xff]  }
 0x337   :  { %8377 = vmatprep.mubr.msk.bf16.mxu0 %vm3073_vm4, %v11722_v41  ;;  %8444 = vmatprep.mubr.msk.bf16.mxu1 %vm3073_vm4, %v11722_v41  ;;  %v2714_v24 = vmax.f32 %v1756_v19, %v2575_v23  ;;  %v1758_v26 = vpop.f32.mrb[175].mxu0  ;;  %v2577_v28 = vpop.f32.mrb[175].mxu1  ;;  %v9981_v41 = vld [vmem:[%s12809_s7 + $0x3e4] ss:$8 sps:$4 sm:$0xff]   ;;  %v10009_v16 = vld [vmem:[%s12809_s7 + $0x430] ss:$8 sps:$4 sm:$0xff]  }
 0x338   :  { %5525 = vmatpush1.bf16.msra.mxu0 %v9967_v48  ;;  %5807 = vmatpush1.bf16.msra.mxu1 %v9970_v12  ;;  %v2715_v31 = vmax.f32 %v1758_v26, %v2577_v28  ;;  %v10002_v48 = vld [vmem:[%s12810_s8 + $0x414] ss:$8 sps:$4 sm:$0xff]   ;;  %v9997_v12 = vld [vmem:[%s12809_s7 + $0x410] ss:$8 sps:$4 sm:$0xff]   ;;  %v10018_v19 = vld [vmem:[%s12810_s8 + $0x440] ss:$8 sps:$4 sm:$0xff]  }
 0x339   :  { %5526 = vmatprep.subr.bf16.mxu0 %v9975_v13  ;;  %5808 = vmatprep.subr.bf16.mxu1 %v9978_v33  ;;  %v12044_v32 = vpack.c.bf16 %v2714_v24, %v2712_v36  ;;  %v10006_v13 = vld [vmem:[%s12810_s8 + $0x420] ss:$8 sps:$4 sm:$0xff]   ;;  %v10011_v33 = vld [vmem:[%s12809_s7 + $0x434] ss:$8 sps:$4 sm:$0xff]   ;;  %v10012_v55 = vld [vmem:[%s12810_s8 + $0x430] ss:$8 sps:$4 sm:$0xff]  }
 0x33a   :  { %v12046_v22 = vpack.c.bf16 %v2715_v31, %v2713_v18  ;;  %v10014_v36 = vld [vmem:[%s12810_s8 + $0x434] ss:$8 sps:$4 sm:$0xff]   ;;  %v10015_v18 = vld [vmem:[%s12809_s7 + $0x440] ss:$8 sps:$4 sm:$0xff]   ;;  %v10021_v26 = vld [vmem:[%s12809_s7 + $0x450] ss:$8 sps:$4 sm:$0xff]  }
 0x33b   :  { %v10023_v23 = vld [vmem:[%s12809_s7 + $0x454] ss:$8 sps:$4 sm:$0xff]   ;;  %v10024_v28 = vld [vmem:[%s12810_s8 + $0x450] ss:$8 sps:$4 sm:$0xff]  }
 0x33c   :  { %5527 = vmatpush1.bf16.msra.mxu0 %v9973_v29  ;;  %5809 = vmatpush1.bf16.msra.mxu1 %v9976_v14  ;;  %v1762_v4 = vpop.f32.mrb[176].mxu0  ;;  %v2581_v53 = vpop.f32.mrb[176].mxu1  ;;  %v10026_v24 = vld [vmem:[%s12810_s8 + $0x454] ss:$8 sps:$4 sm:$0xff]   ;;  %v10027_v29 = vld [vmem:[%s12809_s7 + $0x460] ss:$8 sps:$4 sm:$0xff]  }
 0x33d   :  { %5528 = vmatprep.subr.bf16.mxu0 %v9981_v41  ;;  %5810 = vmatprep.subr.bf16.mxu1 %v9984_v34  ;;  %v12060_v42 = vmax.f32 %v1762_v4, %v2581_v53  ;;  %v1764_v44 = vpop.f32.mrb[177].mxu0  ;;  %v2583_v15 = vpop.f32.mrb[177].mxu1  ;;  %v10030_v14 = vld [vmem:[%s12810_s8 + $0x460] ss:$8 sps:$4 sm:$0xff]   ;;  %v10035_v31 = vld [vmem:[%s12809_s7 + $0x474] ss:$8 sps:$4 sm:$0xff]  }
 0x33e   :  { %4930 = vmatmul.mubr.bf16.gmra.mrb[184].mxu0 %v11713_v54  ;;  %5212 = vmatmul.mubr.bf16.gmra.mrb[184].mxu1 %v11713_v54  ;;  %v12064_v8 = vmax.f32 %v1764_v44, %v2583_v15  ;;  %v1766_v47 = vpop.f32.mrb[178].mxu0  ;;  %v2585_v37 = vpop.f32.mrb[178].mxu1  ;;  %v9988_v54 = vld [vmem:[%s12810_s8 + $0x3f0] ss:$8 sps:$4 sm:$0xff]   ;;  %v10038_v41 = vld [vmem:[%s12810_s8 + $0x474] ss:$8 sps:$4 sm:$0xff]  }
 0x33f   :  { %8378 = vmatprep.mubr.msk.bf16.mxu0 %vm3073_vm4, %v11746_v6  ;;  %8445 = vmatprep.mubr.msk.bf16.mxu1 %vm3073_vm4, %v11746_v6  ;;  %v1767_v49 = vpop.f32.mrb[179].mxu0  ;;  %v2586_v56 = vpop.f32.mrb[179].mxu1  ;;  %v9996_v6 = vld [vmem:[%s12810_s8 + $0x404] ss:$8 sps:$4 sm:$0xff]   ;;  %v10033_v34 = vld [vmem:[%s12809_s7 + $0x470] ss:$8 sps:$4 sm:$0xff]  }
 0x340   :  { %5529 = vmatpush1.bf16.msra.mxu0 %v9979_v7  ;;  %5811 = vmatpush1.bf16.msra.mxu1 %v9982_v40  ;;  %v10036_v7 = vld [vmem:[%s12810_s8 + $0x470] ss:$8 sps:$4 sm:$0xff]   ;;  %v10039_v40 = vld [vmem:[%s12809_s7 + $0x480] ss:$8 sps:$4 sm:$0xff]   ;;  %v10047_v53 = vld [vmem:[%s12809_s7 + $0x494] ss:$8 sps:$4 sm:$0xff]  }
 0x341   :  { %5530 = vmatprep.subr.bf16.mxu0 %v9987_v60  ;;  %5812 = vmatprep.subr.bf16.mxu1 %v9990_v51  ;;  %v10042_v4 = vld [vmem:[%s12810_s8 + $0x480] ss:$8 sps:$4 sm:$0xff]   ;;  %v10050_v60 = vld [vmem:[%s12810_s8 + $0x494] ss:$8 sps:$4 sm:$0xff]   ;;  %v10045_v51 = vld [vmem:[%s12809_s7 + $0x490] ss:$8 sps:$4 sm:$0xff]  }
 0x342   :  { %v10048_v44 = vld [vmem:[%s12810_s8 + $0x490] ss:$8 sps:$4 sm:$0xff]   ;;  %v10051_v15 = vld [vmem:[%s12809_s7 + $0x4a0] ss:$8 sps:$4 sm:$0xff]  }
 0x343   :  { %v10054_v47 = vld [vmem:[%s12810_s8 + $0x4a0] ss:$8 sps:$4 sm:$0xff]  }
 0x344   :  { %5531 = vmatpush1.bf16.msra.mxu0 %v9985_v58  ;;  %5813 = vmatpush1.bf16.msra.mxu1 %v9988_v54 }
 0x345   :  { %5532 = vmatprep.subr.bf16.mxu0 %v9993_v59  ;;  %5814 = vmatprep.subr.bf16.mxu1 %v9996_v6 }
 0x346   :  { %4940 = vmatmul.mubr.bf16.gmra.mrb[188].mxu0 %v11743_v9  ;;  %5222 = vmatmul.mubr.bf16.gmra.mrb[188].mxu1 %v11743_v9  ;;  %v10005_v9 = vld [vmem:[%s12809_s7 + $0x424] ss:$8 sps:$4 sm:$0xff]  }
 0x347   :  { %8379 = vmatprep.mubr.msk.bf16.mxu0 %vm3073_vm4, %v11782_v45  ;;  %8446 = vmatprep.mubr.msk.bf16.mxu1 %vm3073_vm4, %v11782_v45  ;;  %v10008_v45 = vld [vmem:[%s12810_s8 + $0x424] ss:$8 sps:$4 sm:$0xff]  }
 0x348   :  { %5533 = vmatpush1.bf16.msra.mxu0 %v9991_v61  ;;  %5815 = vmatpush1.bf16.msra.mxu1 %v9994_v62 }
 0x349   :  { %5534 = vmatprep.subr.bf16.mxu0 %v9999_v63  ;;  %5816 = vmatprep.subr.bf16.mxu1 %v10002_v48 }
 0x34c   :  { %5535 = vmatpush1.bf16.msra.mxu0 %v9997_v12  ;;  %5817 = vmatpush1.bf16.msra.mxu1 %v10000_v20 }
 0x34d   :  { %5536 = vmatprep.subr.bf16.mxu0 %v10005_v9  ;;  %5818 = vmatprep.subr.bf16.mxu1 %v10008_v45 }
 0x34e   :  { %4950 = vmatmul.mubr.bf16.gmra.mrb[192].mxu0 %v11779_v43  ;;  %5232 = vmatmul.mubr.bf16.gmra.mrb[192].mxu1 %v11779_v43  ;;  %v10017_v43 = vld [vmem:[%s12809_s7 + $0x444] ss:$8 sps:$4 sm:$0xff]  }
 0x34f   :  { %8380 = vmatprep.mubr.msk.bf16.mxu0 %vm3073_vm4, %v11818_v21  ;;  %8447 = vmatprep.mubr.msk.bf16.mxu1 %vm3073_vm4, %v11818_v21  ;;  %v10020_v21 = vld [vmem:[%s12810_s8 + $0x444] ss:$8 sps:$4 sm:$0xff]  }
 0x350   :  { %5537 = vmatpush1.bf16.msra.mxu0 %v10003_v25  ;;  %5819 = vmatpush1.bf16.msra.mxu1 %v10006_v13 }
 0x351   :  { %5538 = vmatprep.subr.bf16.mxu0 %v10011_v33  ;;  %5820 = vmatprep.subr.bf16.mxu1 %v10014_v36 }
 0x354   :  { %5539 = vmatpush1.bf16.msra.mxu0 %v10009_v16  ;;  %5821 = vmatpush1.bf16.msra.mxu1 %v10012_v55 }
 0x355   :  { %5540 = vmatprep.subr.bf16.mxu0 %v10017_v43  ;;  %5822 = vmatprep.subr.bf16.mxu1 %v10020_v21  ;;  %v10177_v43 = vmov 0  }
 0x356   :  { %4960 = vmatmul.mubr.bf16.gmra.mrb[196].mxu0 %v11815_v17  ;;  %5242 = vmatmul.mubr.bf16.gmra.mrb[196].mxu1 %v11815_v17  ;;  %v10029_v17 = vld [vmem:[%s12809_s7 + $0x464] ss:$8 sps:$4 sm:$0xff]  }
 0x357   :  { %8381 = vmatprep.mubr.msk.bf16.mxu0 %vm3073_vm4, %v11860_v52  ;;  %8448 = vmatprep.mubr.msk.bf16.mxu1 %vm3073_vm4, %v11860_v52  ;;  %v10032_v52 = vld [vmem:[%s12810_s8 + $0x464] ss:$8 sps:$4 sm:$0xff]  }
 0x358   :  { %5541 = vmatpush1.bf16.msra.mxu0 %v10015_v18  ;;  %5823 = vmatpush1.bf16.msra.mxu1 %v10018_v19 }
 0x359   :  { %5542 = vmatprep.subr.bf16.mxu0 %v10023_v23  ;;  %5824 = vmatprep.subr.bf16.mxu1 %v10026_v24 }
 0x35c   :  { %5543 = vmatpush1.bf16.msra.mxu0 %v10021_v26  ;;  %5825 = vmatpush1.bf16.msra.mxu1 %v10024_v28 }
 0x35d   :  { %5544 = vmatprep.subr.bf16.mxu0 %v10029_v17  ;;  %5826 = vmatprep.subr.bf16.mxu1 %v10032_v52 }
 0x35e   :  { %4970 = vmatmul.mubr.bf16.gmra.mrb[200].mxu0 %v11856_v46  ;;  %5252 = vmatmul.mubr.bf16.gmra.mrb[200].mxu1 %v11856_v46  ;;  %v10041_v46 = vld [vmem:[%s12809_s7 + $0x484] ss:$8 sps:$4 sm:$0xff]  }
 0x35f   :  { %8382 = vmatprep.mubr.msk.bf16.mxu0 %vm3073_vm4, %v11849_v2  ;;  %8449 = vmatprep.mubr.msk.bf16.mxu1 %vm3073_vm4, %v11849_v2  ;;  %v10044_v2 = vld [vmem:[%s12810_s8 + $0x484] ss:$8 sps:$4 sm:$0xff]  }
 0x360   :  { %5545 = vmatpush1.bf16.msra.mxu0 %v10027_v29  ;;  %5827 = vmatpush1.bf16.msra.mxu1 %v10030_v14 }
 0x361   :  { %5546 = vmatprep.subr.bf16.mxu0 %v10035_v31  ;;  %5828 = vmatprep.subr.bf16.mxu1 %v10038_v41  ;;  %v5959_v41 = vld [vmem:[%s12814_s9] sm:$0x3] }
 0x364   :  { %5547 = vmatpush1.bf16.msra.mxu0 %v10033_v34  ;;  %5829 = vmatpush1.bf16.msra.mxu1 %v10036_v7  ;;  %v6023_v34 = vld [vmem:[%s12815_s10] sm:$0x3]  ;;  %v12293_v7 = vrot.slane %v5959_v41, %v10486_v3 }
 0x365   :  { %5548 = vmatprep.subr.bf16.mxu0 %v10041_v46  ;;  %5830 = vmatprep.subr.bf16.mxu1 %v10044_v2  ;;  %v12296_v46 = vrot.slane %v6023_v34, %v10486_v3  ;;  %v12299_v2 = vrot.slane %v5959_v41, %v10491_v5 }
 0x366   :  { %4980 = vmatmul.mubr.bf16.gmra.mrb[216].mxu0 %v11841_v39  ;;  %5262 = vmatmul.mubr.bf16.gmra.mrb[216].mxu1 %v11841_v39  ;;  %v10053_v39 = vld [vmem:[%s12809_s7 + $0x4a4] ss:$8 sps:$4 sm:$0xff]  }
 0x367   :  { %8510 = vmatprep.mubr.msk.bf16.mxu0 %vm3073_vm4, %v11882_v50  ;;  %8577 = vmatprep.mubr.msk.bf16.mxu1 %vm3073_vm4, %v11882_v50  ;;  %v10056_v50 = vld [vmem:[%s12810_s8 + $0x4a4] ss:$8 sps:$4 sm:$0xff]  }
 0x368   :  { %5549 = vmatpush1.bf16.msra.mxu0 %v10039_v40  ;;  %5831 = vmatpush1.bf16.msra.mxu1 %v10042_v4  ;;  %v12302_v40 = vrot.slane %v6023_v34, %v10491_v5 }
 0x369   :  { %5550 = vmatprep.subr.bf16.mxu0 %v10047_v53  ;;  %5832 = vmatprep.subr.bf16.mxu1 %v10050_v60 }
 0x36c   :  { %5551 = vmatpush1.bf16.msra.mxu0 %v10045_v51  ;;  %5833 = vmatpush1.bf16.msra.mxu1 %v10048_v44 }
 0x36d   :  { %5552 = vmatprep.subr.bf16.mxu0 %v10053_v39  ;;  %5834 = vmatprep.subr.bf16.mxu1 %v10056_v50 }
 0x370   :  { %5553 = vmatpush1.bf16.msra.mxu0 %v10051_v15  ;;  %5835 = vmatpush1.bf16.msra.mxu1 %v10054_v47 }
 0x373   :  { %5557 = vmatmul.mubr.bf16.vlgmr.msra.gmra.mrb[180].mxu0 %v11876_v0  ;;  %5839 = vmatmul.mubr.bf16.vlgmr.msra.gmra.mrb[180].mxu1 %v11876_v0 }
 0x374   :  { %8511 = vmatprep.mubr.msk.bf16.mxu0 %vm3073_vm4, %v11916_v11  ;;  %8578 = vmatprep.mubr.msk.bf16.mxu1 %vm3073_vm4, %v11916_v11 }
 0x37b   :  { %5567 = vmatmul.mubr.bf16.gmra.mrb[184].mxu0 %v11910_v35  ;;  %5849 = vmatmul.mubr.bf16.gmra.mrb[184].mxu1 %v11910_v35 }
 0x37c   :  { %8512 = vmatprep.mubr.msk.bf16.mxu0 %vm3073_vm4, %v11950_v30  ;;  %8579 = vmatprep.mubr.msk.bf16.mxu1 %vm3073_vm4, %v11950_v30  ;;  %v2782_v30 = vpack.c.bf16 %v12060_v42, %v12060_v42 }
 0x383   :  { %5577 = vmatmul.mubr.bf16.gmra.mrb[188].mxu0 %v11944_v10  ;;  %5859 = vmatmul.mubr.bf16.gmra.mrb[188].mxu1 %v11944_v10  ;;  %v3189_v0 = vpop.f32.mrb[204].mxu0  ;;  %v3471_v37 = vpop.f32.mrb[204].mxu1  ;;  %v2783_v10 = vpack.c.bf16 %v12064_v8, %v12064_v8 }
 0x384   :  { %8513 = vmatprep.mubr.msk.bf16.mxu0 %vm3073_vm4, %v11984_v27  ;;  %8580 = vmatprep.mubr.msk.bf16.mxu1 %vm3073_vm4, %v11984_v27  ;;  %v3191_v11 = vpop.f32.mrb[205].mxu0  ;;  %v3473_v35 = vpop.f32.mrb[205].mxu1 }
 0x385   :  { %v3193_v49 = vpop.f32.mrb[206].mxu0  ;;  %v3475_v56 = vpop.f32.mrb[206].mxu1 }
 0x386   :  { %v3194_v58 = vpop.f32.mrb[207].mxu0  ;;  %v3476_v54 = vpop.f32.mrb[207].mxu1 }
 0x38b   :  { %5587 = vmatmul.mubr.bf16.gmra.mrb[192].mxu0 %v11978_v38  ;;  %5869 = vmatmul.mubr.bf16.gmra.mrb[192].mxu1 %v11978_v38 }
 0x38c   :  { %8514 = vmatprep.mubr.msk.bf16.mxu0 %vm3073_vm4, %v12012_v57  ;;  %8581 = vmatprep.mubr.msk.bf16.mxu1 %vm3073_vm4, %v12012_v57 }
 0x393   :  { %5597 = vmatmul.mubr.bf16.gmra.mrb[196].mxu0 %v12010_v1  ;;  %5879 = vmatmul.mubr.bf16.gmra.mrb[196].mxu1 %v12010_v1 }
 0x394   :  { %8515 = vmatprep.mubr.msk.bf16.mxu0 %vm3073_vm4, %v12046_v22  ;;  %8582 = vmatprep.mubr.msk.bf16.mxu1 %vm3073_vm4, %v12046_v22 }
 0x39b   :  { %5607 = vmatmul.mubr.bf16.gmra.mrb[200].mxu0 %v12044_v32  ;;  %5889 = vmatmul.mubr.bf16.gmra.mrb[200].mxu1 %v12044_v32 }
 0x39c   :  { %8516 = vmatprep.mubr.msk.bf16.mxu0 %vm3073_vm4, %v2783_v10  ;;  %8583 = vmatprep.mubr.msk.bf16.mxu1 %vm3073_vm4, %v2783_v10 }
 0x3a3   :  { %5617 = vmatmul.mubr.bf16.gmra.mrb[220].mxu0 %v2782_v30  ;;  %5899 = vmatmul.mubr.bf16.gmra.mrb[220].mxu1 %v2782_v30 }
 0x3a4   :  { %6204 = vmatprep.mubr.bf16.mxu0 %v10177_v43  ;;  %6312 = vmatprep.mubr.bf16.mxu1 %v10177_v43 }
 0x3bf   :  { %v3743_v38 = vpop.f32.mrb[208].mxu0  ;;  %v3994_v27 = vpop.f32.mrb[208].mxu1 }
 0x3c0   :  { %v3744_v1 = vadd.f32 %v3743_v38, %v3189_v0  ;;  %v3995_v57 = vadd.f32 %v3994_v27, %v3471_v37  ;;  %v3745_v22 = vpop.f32.mrb[209].mxu0  ;;  %v3996_v59 = vpop.f32.mrb[209].mxu1 }
 0x3c1   :  { %v3746_v8 = vadd.f32 %v3745_v22, %v3191_v11  ;;  %v3997_v6 = vadd.f32 %v3996_v59, %v3473_v35  ;;  %v3747_v61 = vpop.f32.mrb[210].mxu0  ;;  %v3998_v62 = vpop.f32.mrb[210].mxu1 }
 0x3c2   :  { %v3748_v32 = vpop.f32.mrb[211].mxu0  ;;  %v3999_v63 = vpop.f32.mrb[211].mxu1 }
 0x3fc   :  { %v4297_v48 = vpop.f32.mrb[212].mxu0  ;;  %v4579_v12 = vpop.f32.mrb[212].mxu1 }
 0x3fd   :  { %v4610_v20 = vadd.f32 %v4297_v48, %v3744_v1  ;;  %v4636_v9 = vadd.f32 %v4579_v12, %v3995_v57  ;;  %v4299_v45 = vpop.f32.mrb[213].mxu0  ;;  %v4581_v42 = vpop.f32.mrb[213].mxu1 }
 0x3fe   :  { %v4611_v25 = vadd.f32 %v4299_v45, %v3746_v8  ;;  %v4637_v13 = vadd.f32 %v4581_v42, %v3997_v6  ;;  %v4301_v33 = vpop.f32.mrb[214].mxu0  ;;  %v4583_v36 = vpop.f32.mrb[214].mxu1 }
 0x3ff   :  { %v4302_v16 = vpop.f32.mrb[215].mxu0  ;;  %v4584_v55 = vpop.f32.mrb[215].mxu1 }
 0x439   :  { %v4981_v21 = vpop.f32.mrb[216].mxu0  ;;  %v5263_v18 = vpop.f32.mrb[216].mxu1 }
 0x43a   :  { %v12278_v19 = vadd.f32 %v4981_v21, %v4610_v20  ;;  %v12280_v23 = vadd.f32 %v5263_v18, %v4636_v9  ;;  %v4983_v24 = vpop.f32.mrb[217].mxu0  ;;  %v5265_v26 = vpop.f32.mrb[217].mxu1 }
 0x43b   :  { %v12282_v28 = vadd.f32 %v4983_v24, %v4611_v25  ;;  %v12284_v17 = vadd.f32 %v5265_v26, %v4637_v13  ;;  %v4985_v52 = vpop.f32.mrb[218].mxu0  ;;  %v5267_v29 = vpop.f32.mrb[218].mxu1 }
 0x43c   :  { %v4986_v14 = vpop.f32.mrb[219].mxu0  ;;  %v5268_v31 = vpop.f32.mrb[219].mxu1 }
 0x446   :  { %v5558_v4 = vpop.f32.mrb[180].mxu0  ;;  %v5840_v53 = vpop.f32.mrb[180].mxu1 }
 0x447   :  { %v5971_v60 = vadd.f32 %v12293_v7, %v5558_v4  ;;  %v6035_v51 = vadd.f32 %v12296_v46, %v5840_v53  ;;  %v5560_v44 = vpop.f32.mrb[181].mxu0  ;;  %v5842_v39 = vpop.f32.mrb[181].mxu1 }
 0x448   :  { %v5972_v50 = vadd.f32 %v12299_v2, %v5560_v44  ;;  %v6036_v15 = vadd.f32 %v12302_v40, %v5842_v39  ;;  %v5562_v3 = vpop.f32.mrb[182].mxu0  ;;  %v5844_v47 = vpop.f32.mrb[182].mxu1 }
 0x449   :  { %v5997_v0 = vmax.f32 %v5971_v60, 0.0  ;;  %v6061_v37 = vmax.f32 %v6035_v51, 0.0  ;;  %v5973_v11 = vadd.f32 %v12293_v7, %v5562_v3  ;;  %v6037_v5 = vadd.f32 %v12296_v46, %v5844_v47  ;;  %v5564_v35 = vpop.f32.mrb[183].mxu0  ;;  %v5846_v49 = vpop.f32.mrb[183].mxu1 }
 0x44a   :  { %v5998_v56 = vmax.f32 %v5972_v50, 0.0  ;;  %v6062_v58 = vmax.f32 %v6036_v15, 0.0  ;;  %v5974_v54 = vadd.f32 %v12299_v2, %v5564_v35  ;;  %v6038_v10 = vadd.f32 %v12302_v40, %v5846_v49 }
 0x44b   :  { %v6087_v30 = vmax.f32 %v5997_v0, %v6061_v37  ;;  %v5999_v38 = vmax.f32 %v5973_v11, 0.0  ;;  %v6063_v27 = vmax.f32 %v6037_v5, 0.0 }
 0x44c   :  { %v6088_v1 = vmax.f32 %v5998_v56, %v6062_v58  ;;  %v6000_v57 = vmax.f32 %v5974_v54, 0.0  ;;  %v6064_v22 = vmax.f32 %v6038_v10, 0.0 }
 0x44d   :  { %v6089_v59 = vmax.f32 %v5999_v38, %v6063_v27 }
 0x44e   :  { %v6090_v8 = vmax.f32 %v6000_v57, %v6064_v22  ;;  %v5568_v6 = vpop.f32.mrb[184].mxu0  ;;  %v5850_v61 = vpop.f32.mrb[184].mxu1 }
 0x44f   :  { %v6113_v62 = vpack.c.bf16 %v6089_v59, %v6087_v30  ;;  %v5975_v32 = vadd.f32 %v12293_v7, %v5568_v6  ;;  %v6039_v63 = vadd.f32 %v12296_v46, %v5850_v61  ;;  %v5570_v48 = vpop.f32.mrb[185].mxu0  ;;  %v5852_v12 = vpop.f32.mrb[185].mxu1 }
 0x450   :  { %v5976_v20 = vadd.f32 %v12299_v2, %v5570_v48  ;;  %v6040_v9 = vadd.f32 %v12302_v40, %v5852_v12  ;;  %v5572_v45 = vpop.f32.mrb[186].mxu0  ;;  %v5854_v42 = vpop.f32.mrb[186].mxu1  ;;  %v6114_v25 = vpack.c.bf16 %v6090_v8, %v6088_v1 }
 0x451   :  { %v6001_v13 = vmax.f32 %v5975_v32, 0.0  ;;  %v6065_v33 = vmax.f32 %v6039_v63, 0.0  ;;  %v5977_v36 = vadd.f32 %v12293_v7, %v5572_v45  ;;  %v6041_v16 = vadd.f32 %v12296_v46, %v5854_v42  ;;  %v5574_v55 = vpop.f32.mrb[187].mxu0  ;;  %v5856_v21 = vpop.f32.mrb[187].mxu1 }
 0x452   :  { %v6002_v18 = vmax.f32 %v5976_v20, 0.0  ;;  %v6066_v24 = vmax.f32 %v6040_v9, 0.0  ;;  %v5978_v26 = vadd.f32 %v12299_v2, %v5574_v55  ;;  %v6042_v52 = vadd.f32 %v12302_v40, %v5856_v21  ;;  %6172 = vmatprep.subr.bf16.mxu0 %v6114_v25  ;;  %6280 = vmatprep.subr.bf16.mxu1 %v6114_v25 }
 0x453   :  { %v6091_v29 = vmax.f32 %v6001_v13, %v6065_v33  ;;  %v6003_v14 = vmax.f32 %v5977_v36, 0.0  ;;  %v6067_v31 = vmax.f32 %v6041_v16, 0.0  ;;  %6173 = vmatpush1.bf16.msra.mxu0 %v6113_v62  ;;  %6281 = vmatpush1.bf16.msra.mxu1 %v6113_v62 }
 0x454   :  { %v6092_v41 = vmax.f32 %v6002_v18, %v6066_v24  ;;  %v6004_v34 = vmax.f32 %v5978_v26, 0.0  ;;  %v6068_v4 = vmax.f32 %v6042_v52, 0.0 }
 0x455   :  { %v6093_v53 = vmax.f32 %v6003_v14, %v6067_v31 }
 0x456   :  { %v6094_v60 = vmax.f32 %v6004_v34, %v6068_v4  ;;  %v5578_v51 = vpop.f32.mrb[188].mxu0  ;;  %v5860_v44 = vpop.f32.mrb[188].mxu1 }
 0x457   :  { %v6115_v39 = vpack.c.bf16 %v6093_v53, %v6091_v29  ;;  %v5979_v50 = vadd.f32 %v12293_v7, %v5578_v51  ;;  %v6043_v15 = vadd.f32 %v12296_v46, %v5860_v44  ;;  %v5580_v3 = vpop.f32.mrb[189].mxu0  ;;  %v5862_v47 = vpop.f32.mrb[189].mxu1 }
 0x458   :  { %v5980_v0 = vadd.f32 %v12299_v2, %v5580_v3  ;;  %v6044_v37 = vadd.f32 %v12302_v40, %v5862_v47  ;;  %v5582_v11 = vpop.f32.mrb[190].mxu0  ;;  %v5864_v5 = vpop.f32.mrb[190].mxu1  ;;  %v6116_v35 = vpack.c.bf16 %v6094_v60, %v6092_v41 }
 0x459   :  { %v6005_v49 = vmax.f32 %v5979_v50, 0.0  ;;  %v6069_v56 = vmax.f32 %v6043_v15, 0.0  ;;  %v5981_v58 = vadd.f32 %v12293_v7, %v5582_v11  ;;  %v6045_v54 = vadd.f32 %v12296_v46, %v5864_v5  ;;  %v5584_v10 = vpop.f32.mrb[191].mxu0  ;;  %v5866_v30 = vpop.f32.mrb[191].mxu1 }
 0x45a   :  { %v6006_v38 = vmax.f32 %v5980_v0, 0.0  ;;  %v6070_v27 = vmax.f32 %v6044_v37, 0.0  ;;  %v5982_v1 = vadd.f32 %v12299_v2, %v5584_v10  ;;  %v6046_v57 = vadd.f32 %v12302_v40, %v5866_v30  ;;  %6174 = vmatprep.subr.bf16.mxu0 %v6116_v35  ;;  %6282 = vmatprep.subr.bf16.mxu1 %v6116_v35 }
 0x45b   :  { %v6095_v22 = vmax.f32 %v6005_v49, %v6069_v56  ;;  %v6007_v59 = vmax.f32 %v5981_v58, 0.0  ;;  %v6071_v8 = vmax.f32 %v6045_v54, 0.0  ;;  %6175 = vmatpush1.bf16.msra.mxu0 %v6115_v39  ;;  %6283 = vmatpush1.bf16.msra.mxu1 %v6115_v39 }
 0x45c   :  { %v6096_v6 = vmax.f32 %v6006_v38, %v6070_v27  ;;  %v6008_v61 = vmax.f32 %v5982_v1, 0.0  ;;  %v6072_v62 = vmax.f32 %v6046_v57, 0.0 }
 0x45d   :  { %v6097_v32 = vmax.f32 %v6007_v59, %v6071_v8 }
 0x45e   :  { %v6098_v63 = vmax.f32 %v6008_v61, %v6072_v62  ;;  %v5588_v48 = vpop.f32.mrb[192].mxu0  ;;  %v5870_v12 = vpop.f32.mrb[192].mxu1 }
 0x45f   :  { %v6117_v20 = vpack.c.bf16 %v6097_v32, %v6095_v22  ;;  %v5983_v9 = vadd.f32 %v12293_v7, %v5588_v48  ;;  %v6047_v45 = vadd.f32 %v12296_v46, %v5870_v12  ;;  %v5590_v42 = vpop.f32.mrb[193].mxu0  ;;  %v5872_v25 = vpop.f32.mrb[193].mxu1 }
 0x460   :  { %v5984_v13 = vadd.f32 %v12299_v2, %v5590_v42  ;;  %v6048_v33 = vadd.f32 %v12302_v40, %v5872_v25  ;;  %v5592_v36 = vpop.f32.mrb[194].mxu0  ;;  %v5874_v16 = vpop.f32.mrb[194].mxu1  ;;  %v6118_v55 = vpack.c.bf16 %v6098_v63, %v6096_v6 }
 0x461   :  { %v6009_v21 = vmax.f32 %v5983_v9, 0.0  ;;  %v6073_v18 = vmax.f32 %v6047_v45, 0.0  ;;  %v5985_v24 = vadd.f32 %v12293_v7, %v5592_v36  ;;  %v6049_v26 = vadd.f32 %v12296_v46, %v5874_v16  ;;  %v5594_v52 = vpop.f32.mrb[195].mxu0  ;;  %v5876_v29 = vpop.f32.mrb[195].mxu1 }
 0x462   :  { %v6010_v14 = vmax.f32 %v5984_v13, 0.0  ;;  %v6074_v31 = vmax.f32 %v6048_v33, 0.0  ;;  %v5986_v41 = vadd.f32 %v12299_v2, %v5594_v52  ;;  %v6050_v34 = vadd.f32 %v12302_v40, %v5876_v29  ;;  %6176 = vmatprep.subr.bf16.mxu0 %v6118_v55  ;;  %6284 = vmatprep.subr.bf16.mxu1 %v6118_v55 }
 0x463   :  { %v6099_v4 = vmax.f32 %v6009_v21, %v6073_v18  ;;  %v6011_v53 = vmax.f32 %v5985_v24, 0.0  ;;  %v6075_v60 = vmax.f32 %v6049_v26, 0.0  ;;  %6177 = vmatpush1.bf16.msra.mxu0 %v6117_v20  ;;  %6285 = vmatpush1.bf16.msra.mxu1 %v6117_v20 }
 0x464   :  { %v6100_v51 = vmax.f32 %v6010_v14, %v6074_v31  ;;  %v6012_v44 = vmax.f32 %v5986_v41, 0.0  ;;  %v6076_v39 = vmax.f32 %v6050_v34, 0.0 }
 0x465   :  { %v6101_v50 = vmax.f32 %v6011_v53, %v6075_v60 }
 0x466   :  { %v6102_v15 = vmax.f32 %v6012_v44, %v6076_v39  ;;  %v5598_v3 = vpop.f32.mrb[196].mxu0  ;;  %v5880_v47 = vpop.f32.mrb[196].mxu1 }
 0x467   :  { %v6119_v0 = vpack.c.bf16 %v6101_v50, %v6099_v4  ;;  %v5987_v37 = vadd.f32 %v12293_v7, %v5598_v3  ;;  %v6051_v11 = vadd.f32 %v12296_v46, %v5880_v47  ;;  %v5600_v5 = vpop.f32.mrb[197].mxu0  ;;  %v5882_v35 = vpop.f32.mrb[197].mxu1 }
 0x468   :  { %v5988_v49 = vadd.f32 %v12299_v2, %v5600_v5  ;;  %v6052_v56 = vadd.f32 %v12302_v40, %v5882_v35  ;;  %v5602_v58 = vpop.f32.mrb[198].mxu0  ;;  %v5884_v54 = vpop.f32.mrb[198].mxu1  ;;  %v6120_v10 = vpack.c.bf16 %v6102_v15, %v6100_v51 }
 0x469   :  { %v6013_v30 = vmax.f32 %v5987_v37, 0.0  ;;  %v6077_v38 = vmax.f32 %v6051_v11, 0.0  ;;  %v5989_v27 = vadd.f32 %v12293_v7, %v5602_v58  ;;  %v6053_v1 = vadd.f32 %v12296_v46, %v5884_v54  ;;  %v5604_v57 = vpop.f32.mrb[199].mxu0  ;;  %v5886_v22 = vpop.f32.mrb[199].mxu1 }
 0x46a   :  { %v6014_v59 = vmax.f32 %v5988_v49, 0.0  ;;  %v6078_v8 = vmax.f32 %v6052_v56, 0.0  ;;  %v5990_v6 = vadd.f32 %v12299_v2, %v5604_v57  ;;  %v6054_v61 = vadd.f32 %v12302_v40, %v5886_v22  ;;  %6178 = vmatprep.subr.bf16.mxu0 %v6120_v10  ;;  %6286 = vmatprep.subr.bf16.mxu1 %v6120_v10 }
 0x46b   :  { %v6103_v62 = vmax.f32 %v6013_v30, %v6077_v38  ;;  %v6015_v32 = vmax.f32 %v5989_v27, 0.0  ;;  %v6079_v63 = vmax.f32 %v6053_v1, 0.0  ;;  %6179 = vmatpush1.bf16.msra.mxu0 %v6119_v0  ;;  %6287 = vmatpush1.bf16.msra.mxu1 %v6119_v0 }
 0x46c   :  { %v6104_v48 = vmax.f32 %v6014_v59, %v6078_v8  ;;  %v6016_v12 = vmax.f32 %v5990_v6, 0.0  ;;  %v6080_v20 = vmax.f32 %v6054_v61, 0.0 }
 0x46d   :  { %v6105_v9 = vmax.f32 %v6015_v32, %v6079_v63 }
 0x46e   :  { %v6106_v45 = vmax.f32 %v6016_v12, %v6080_v20  ;;  %v5608_v42 = vpop.f32.mrb[200].mxu0  ;;  %v5890_v25 = vpop.f32.mrb[200].mxu1  ;;  %v10058_v20 = vld [vmem:[%s12828_s6] sm:$0xff]  }
 0x46f   :  { %v6121_v13 = vpack.c.bf16 %v6105_v9, %v6103_v62  ;;  %v5991_v33 = vadd.f32 %v12293_v7, %v5608_v42  ;;  %v6055_v36 = vadd.f32 %v12296_v46, %v5890_v25  ;;  %v5610_v16 = vpop.f32.mrb[201].mxu0  ;;  %v5892_v55 = vpop.f32.mrb[201].mxu1  ;;  %v10067_v9 = vld [vmem:[%s12813_s13] sm:$0xff]   ;;  %v10069_v42 = vld [vmem:[%s12813_s13 + $0x48] sm:$0xff]  }
 0x470   :  { %v5992_v21 = vadd.f32 %v12299_v2, %v5610_v16  ;;  %v6056_v18 = vadd.f32 %v12302_v40, %v5892_v55  ;;  %v5612_v24 = vpop.f32.mrb[202].mxu0  ;;  %v5894_v26 = vpop.f32.mrb[202].mxu1  ;;  %v6122_v52 = vpack.c.bf16 %v6106_v45, %v6104_v48  ;;  %v10057_v48 = vld [vmem:[%s12811_s11] sm:$0xff]   ;;  %v10070_v25 = vld [vmem:[%s12813_s13 + $0xc8] sm:$0xff]   ;;  %v10074_v16 = vld [vmem:[%s12813_s13 + $0xd0] sm:$0xff]  }
 0x471   :  { %v6017_v29 = vmax.f32 %v5991_v33, 0.0  ;;  %v6081_v14 = vmax.f32 %v6055_v36, 0.0  ;;  %v5993_v31 = vadd.f32 %v12293_v7, %v5612_v24  ;;  %v6057_v41 = vadd.f32 %v12296_v46, %v5894_v26  ;;  %v5614_v34 = vpop.f32.mrb[203].mxu0  ;;  %v5896_v4 = vpop.f32.mrb[203].mxu1  ;;  %v10068_v45 = vld [vmem:[%s12813_s13 + $0x80] sm:$0xff]   ;;  %v10072_v33 = vld [vmem:[%s12813_s13 + $0x88] sm:$0xff]  }
 0x472   :  { %v6018_v53 = vmax.f32 %v5992_v21, 0.0  ;;  %v6082_v60 = vmax.f32 %v6056_v18, 0.0  ;;  %v5994_v51 = vadd.f32 %v12299_v2, %v5614_v34  ;;  %v6058_v44 = vadd.f32 %v12302_v40, %v5896_v4  ;;  %6180 = vmatprep.subr.bf16.mxu0 %v6122_v52  ;;  %6288 = vmatprep.subr.bf16.mxu1 %v6122_v52  ;;  %v10073_v36 = vld [vmem:[%s12813_s13 + $0x50] sm:$0xff]   ;;  %v10059_v55 = vld [vmem:[%s12811_s11 + $0x8] sm:$0xff]   ;;  %v10077_v26 = vld [vmem:[%s12813_s13 + $0x58] sm:$0xff]  }
 0x473   :  { %v6107_v39 = vmax.f32 %v6017_v29, %v6081_v14  ;;  %v6019_v50 = vmax.f32 %v5993_v31, 0.0  ;;  %v6083_v15 = vmax.f32 %v6057_v41, 0.0  ;;  %6181 = vmatpush1.bf16.msra.mxu0 %v6121_v13  ;;  %6289 = vmatpush1.bf16.msra.mxu1 %v6121_v13  ;;  %v10071_v13 = vld [vmem:[%s12813_s13 + $0x8] sm:$0xff]   ;;  %v10075_v18 = vld [vmem:[%s12813_s13 + $0x10] sm:$0xff]   ;;  %v10078_v52 = vld [vmem:[%s12813_s13 + $0xd8] sm:$0xff]  }
 0x474   :  { %v6108_v3 = vmax.f32 %v6018_v53, %v6082_v60  ;;  %v6020_v47 = vmax.f32 %v5994_v51, 0.0  ;;  %v6084_v0 = vmax.f32 %v6058_v44, 0.0  ;;  %v10060_v21 = vld [vmem:[%s12828_s6 + $0x8] sm:$0xff]   ;;  %v10076_v24 = vld [vmem:[%s12813_s13 + $0x90] sm:$0xff]   ;;  %v10079_v29 = vld [vmem:[%s12813_s13 + $0x18] sm:$0xff]  }
 0x475   :  { %v6109_v37 = vmax.f32 %v6019_v50, %v6083_v15  ;;  %v10080_v14 = vld [vmem:[%s12813_s13 + $0x98] sm:$0xff]   ;;  %v10081_v31 = vld [vmem:[%s12813_s13 + $0x60] sm:$0xff]   ;;  %v10061_v34 = vld [vmem:[%s12811_s11 + $0x10] sm:$0xff]  }
 0x476   :  { %v6110_v11 = vmax.f32 %v6020_v47, %v6084_v0  ;;  %v5618_v5 = vpop.f32.mrb[220].mxu0  ;;  %v5900_v35 = vpop.f32.mrb[220].mxu1  ;;  %v10082_v41 = vld [vmem:[%s12813_s13 + $0xe0] sm:$0xff]   ;;  %v10062_v4 = vld [vmem:[%s12828_s6 + $0x10] sm:$0xff]   ;;  %v10085_v51 = vld [vmem:[%s12813_s13 + $0x68] sm:$0xff]  }
 0x477   :  { %v6123_v49 = vpack.c.bf16 %v6109_v37, %v6107_v39  ;;  %v5931_v56 = vadd.f32 %v5618_v5, %v12278_v19  ;;  %v5957_v58 = vadd.f32 %v5900_v35, %v12280_v23  ;;  %v5620_v54 = vpop.f32.mrb[221].mxu0  ;;  %v5902_v10 = vpop.f32.mrb[221].mxu1  ;;  %v10083_v53 = vld [vmem:[%s12813_s13 + $0x20] sm:$0xff]   ;;  %v10086_v44 = vld [vmem:[%s12813_s13 + $0xe8] sm:$0xff]   ;;  %v10063_v15 = vld [vmem:[%s12811_s11 + $0x18] ss:$0 sps:$4 sm:$0xff]  }
 0x478   :  { %v5932_v30 = vadd.f32 %v5620_v54, %v12282_v28  ;;  %v5958_v38 = vadd.f32 %v5902_v10, %v12284_v17  ;;  %v5622_v27 = vpop.f32.mrb[222].mxu0  ;;  %v5904_v1 = vpop.f32.mrb[222].mxu1  ;;  %v6124_v57 = vpack.c.bf16 %v6110_v11, %v6108_v3  ;;  %v10084_v60 = vld [vmem:[%s12813_s13 + $0xa0] sm:$0xff]   ;;  %v10087_v39 = vld [vmem:[%s12813_s13 + $0x28] sm:$0xff]   ;;  %v10089_v3 = vld [vmem:[%s12813_s13 + $0x70] sm:$0xff]  }
 0x479   :  { %v5995_v22 = vadd.f32 %v12293_v7, %v5931_v56  ;;  %v6059_v59 = vadd.f32 %v12296_v46, %v5957_v58  ;;  %v5623_v8 = vpop.f32.mrb[223].mxu0  ;;  %v5905_v6 = vpop.f32.mrb[223].mxu1  ;;  %v10065_v7 = vld [vmem:[%s12813_s13 + $0x40] sm:$0xff]   ;;  %v10088_v50 = vld [vmem:[%s12813_s13 + $0xa8] sm:$0xff]   ;;  %v10091_v47 = vld [vmem:[%s12813_s13 + $0x30] sm:$0xff]  }
 0x47a   :  { %v5996_v61 = vadd.f32 %v12299_v2, %v5932_v30  ;;  %v6060_v19 = vadd.f32 %v12302_v40, %v5958_v38  ;;  %6182 = vmatprep.subr.bf16.mxu0 %v6124_v57  ;;  %6290 = vmatprep.subr.bf16.mxu1 %v6124_v57  ;;  %v10066_v46 = vld [vmem:[%s12813_s13 + $0xc0] sm:$0xff]   ;;  %v10090_v0 = vld [vmem:[%s12813_s13 + $0xf0] sm:$0xff]   ;;  %v10093_v11 = vld [vmem:[%s12813_s13 + $0x78] sm:$0xff]  }
 0x47b   :  { %v6021_v23 = vmax.f32 %v5995_v22, 0.0  ;;  %v6085_v62 = vmax.f32 %v6059_v59, 0.0  ;;  %6183 = vmatpush1.bf16.msra.mxu0 %v6123_v49  ;;  %6291 = vmatpush1.bf16.msra.mxu1 %v6123_v49  ;;  %v10092_v37 = vld [vmem:[%s12813_s13 + $0xb0] sm:$0xff]   ;;  %v10095_v5 = vld [vmem:[%s12813_s13 + $0x38] sm:$0xff]   ;;  %v10099_v56 = vld [vmem:[%s12813_s13 + $0x1c0] sm:$0xff]  }
 0x47c   :  { %v6022_v28 = vmax.f32 %v5996_v61, 0.0  ;;  %v6086_v17 = vmax.f32 %v6060_v19, 0.0  ;;  %v10094_v35 = vld [vmem:[%s12813_s13 + $0xf8] sm:$0xff]   ;;  %v10097_v58 = vld [vmem:[%s12813_s13 + $0x140] sm:$0xff]  }
 0x47d   :  { %v6111_v32 = vmax.f32 %v6021_v23, %v6085_v62  ;;  %v10096_v49 = vld [vmem:[%s12813_s13 + $0xb8] sm:$0xff]   ;;  %v10100_v62 = vld [vmem:[%s12813_s13 + $0x180] sm:$0xff]  }
 0x47e   :  { %v6112_v63 = vmax.f32 %v6022_v28, %v6086_v17  ;;  %v10103_v28 = vld [vmem:[%s12813_s13 + $0x1c8] sm:$0xff]  }
 0x47f   :  { %v6125_v2 = vpack.c.bf16 %v6111_v32, %v6111_v32  ;;  %v10098_v32 = vld [vmem:[%s12813_s13 + $0x100] sm:$0xff]  }
 0x480   :  { %v6126_v40 = vpack.c.bf16 %v6112_v63, %v6112_v63 }
 0x481   :  { %v6167_v12 = vsel %vm2889_vm3, %v6125_v2, 0  ;;  %v10101_v2 = vld [vmem:[%s12813_s13 + $0x148] sm:$0xff]  }
 0x482   :  { %8588 = vmatprep.subr.msk.bf16.mxu0 %vm2889_vm3, %v6126_v40  ;;  %8597 = vmatprep.subr.msk.bf16.mxu1 %vm2889_vm3, %v6126_v40 }
 0x483   :  { %6185 = vmatpush1.bf16.msra.mxu0 %v6167_v12  ;;  %6293 = vmatpush1.bf16.msra.mxu1 %v6167_v12 }
 0x484   :  { %8932 = vmatprep.subr.bf16.mxu1 %v10065_v7  ;;  %8910 = vmatprep.subr.bf16.mxu0 %v10066_v46 }
 0x486   :  { %8589 = vmatmul.mubr.msk.bf16.vlgmr.msra.gmra.mrb[224].mxu0 %vm6152_vm5, %v10057_v48  ;;  %8598 = vmatmul.mubr.msk.bf16.vlgmr.msra.gmra.mrb[224].mxu1 %vm6152_vm5, %v10058_v20  ;;  %v10104_v20 = vld [vmem:[%s12813_s13 + $0x188] sm:$0xff]  }
 0x487   :  { %6214 = vmatprep.mubr.bf16.mxu0 %v10177_v43  ;;  %6322 = vmatprep.mubr.bf16.mxu1 %v10177_v43 }
 0x488   :  { %8933 = vmatpush3.bf16.msra.mxu1 %v10067_v9  ;;  %8911 = vmatpush3.bf16.msra.mxu0 %v10068_v45 }
 0x489   :  { %8934 = vmatprep.subr.bf16.mxu1 %v10069_v42  ;;  %8912 = vmatprep.subr.bf16.mxu0 %v10070_v25  ;;  %v10107_v25 = vld [vmem:[%s12813_s13 + $0x1d0] sm:$0xff]  }
 0x48c   :  { %8935 = vmatpush3.bf16.msra.mxu1 %v10071_v13  ;;  %8913 = vmatpush3.bf16.msra.mxu0 %v10072_v33 }
 0x48d   :  { %8936 = vmatprep.subr.bf16.mxu1 %v10073_v36  ;;  %8914 = vmatprep.subr.bf16.mxu0 %v10074_v16  ;;  %v10102_v16 = vld [vmem:[%s12813_s13 + $0x108] sm:$0xff]  }
 0x48e   :  { %8590 = vmatmul.mubr.msk.bf16.gmra.mrb[228].mxu0 %vm6152_vm5, %v10059_v55  ;;  %8599 = vmatmul.mubr.msk.bf16.gmra.mrb[228].mxu1 %vm6152_vm5, %v10060_v21  ;;  %v10105_v21 = vld [vmem:[%s12813_s13 + $0x150] sm:$0xff]  }
 0x48f   :  { %6224 = vmatprep.mubr.bf16.mxu0 %v10177_v43  ;;  %6332 = vmatprep.mubr.bf16.mxu1 %v10177_v43 }
 0x490   :  { %8937 = vmatpush3.bf16.msra.mxu1 %v10075_v18  ;;  %8915 = vmatpush3.bf16.msra.mxu0 %v10076_v24  ;;  %v10108_v24 = vld [vmem:[%s12813_s13 + $0x190] sm:$0xff]  }
 0x491   :  { %8938 = vmatprep.subr.bf16.mxu1 %v10077_v26  ;;  %8916 = vmatprep.subr.bf16.mxu0 %v10078_v52  ;;  %v10111_v52 = vld [vmem:[%s12813_s13 + $0x1d8] sm:$0xff]  }
 0x494   :  { %8939 = vmatpush3.bf16.msra.mxu1 %v10079_v29  ;;  %8917 = vmatpush3.bf16.msra.mxu0 %v10080_v14  ;;  %v10106_v29 = vld [vmem:[%s12813_s13 + $0x110] sm:$0xff]  }
 0x495   :  { %8940 = vmatprep.subr.bf16.mxu1 %v10081_v31  ;;  %8918 = vmatprep.subr.bf16.mxu0 %v10082_v41 }
 0x496   :  { %8591 = vmatmul.mubr.msk.bf16.gmra.mrb[232].mxu0 %vm6152_vm5, %v10061_v34  ;;  %8600 = vmatmul.mubr.msk.bf16.gmra.mrb[232].mxu1 %vm6152_vm5, %v10062_v4  ;;  %v10109_v34 = vld [vmem:[%s12813_s13 + $0x158] sm:$0xff]  }
 0x497   :  { %6234 = vmatprep.mubr.bf16.mxu0 %v10177_v43  ;;  %6342 = vmatprep.mubr.bf16.mxu1 %v10177_v43  ;;  %v10064_v43 = vld [vmem:[%s12828_s6 + $0x18] ss:$0 sps:$4 sm:$0xff]  }
 0x498   :  { %8941 = vmatpush3.bf16.msra.mxu1 %v10083_v53  ;;  %8919 = vmatpush3.bf16.msra.mxu0 %v10084_v60 }
 0x499   :  { %8942 = vmatprep.subr.bf16.mxu1 %v10085_v51  ;;  %8920 = vmatprep.subr.bf16.mxu0 %v10086_v44  ;;  %v10112_v51 = vld [vmem:[%s12813_s13 + $0x198] sm:$0xff]  }
 0x49c   :  { %8943 = vmatpush3.bf16.msra.mxu1 %v10087_v39  ;;  %8921 = vmatpush3.bf16.msra.mxu0 %v10088_v50 }
 0x49d   :  { %8944 = vmatprep.subr.bf16.mxu1 %v10089_v3  ;;  %8922 = vmatprep.subr.bf16.mxu0 %v10090_v0  ;;  %v10110_v0 = vld [vmem:[%s12813_s13 + $0x118] sm:$0xff]  }
 0x49e   :  { %8592 = vmatmul.mubr.msk.bf16.gmra.mrb[236].mxu0 %vm6152_vm5, %v10063_v15  ;;  %8601 = vmatmul.mubr.msk.bf16.gmra.mrb[236].mxu1 %vm6152_vm5, %v10064_v43  ;;  %v10115_v15 = vld [vmem:[%s12813_s13 + $0x1e0] sm:$0xff]  }
 0x4a0   :  { %8945 = vmatpush3.bf16.msra.mxu1 %v10091_v47  ;;  %8923 = vmatpush3.bf16.msra.mxu0 %v10092_v37 }
 0x4a1   :  { %8946 = vmatprep.subr.bf16.mxu1 %v10093_v11  ;;  %8924 = vmatprep.subr.bf16.mxu0 %v10094_v35  ;;  %v10113_v11 = vld [vmem:[%s12813_s13 + $0x160] sm:$0xff]  }
 0x4a2   :  { %v10116_v35 = vld [vmem:[%s12813_s13 + $0x1a0] sm:$0xff]  }
 0x4a4   :  { %8947 = vmatpush3.bf16.msra.mxu1 %v10095_v5  ;;  %8925 = vmatpush3.bf16.msra.mxu0 %v10096_v49 }
 0x4a5   :  { %8976 = vmatprep.subr.bf16.mxu1 %v10099_v56  ;;  %8954 = vmatprep.subr.bf16.mxu0 %v10097_v58  ;;  %v10119_v56 = vld [vmem:[%s12813_s13 + $0x1e8] sm:$0xff]   ;;  %v10114_v58 = vld [vmem:[%s12813_s13 + $0x120] sm:$0xff]  }
 0x559   :  { %v6206_v54 = vpop.f32.mrb[224].mxu0  ;;  %v6314_v10 = vpop.f32.mrb[224].mxu1 }
 0x55a   :  { %v6351_v30 = vmax.f32 %v6206_v54, %v6314_v10  ;;  %v6208_v38 = vpop.f32.mrb[225].mxu0  ;;  %v6316_v27 = vpop.f32.mrb[225].mxu1 }
 0x55b   :  { %v6352_v1 = vmax.f32 %v6208_v38, %v6316_v27  ;;  %v6210_v57 = vpop.f32.mrb[226].mxu0  ;;  %v6318_v22 = vpop.f32.mrb[226].mxu1 }
 0x55c   :  { %v6353_v59 = vmax.f32 %v6210_v57, %v6318_v22  ;;  %v6212_v8 = vpop.f32.mrb[227].mxu0  ;;  %v6320_v6 = vpop.f32.mrb[227].mxu1  ;;  %v10120_v57 = vld [vmem:[%s12813_s13 + $0x1a8] sm:$0xff]  }
 0x55d   :  { %v6354_v61 = vmax.f32 %v6212_v8, %v6320_v6  ;;  %v10123_v6 = vld [vmem:[%s12813_s13 + $0x1f0] sm:$0xff]  }
 0x55e   :  { %v6365_v19 = vpack.c.bf16 %v6353_v59, %v6351_v30  ;;  %v10117_v30 = vld [vmem:[%s12813_s13 + $0x168] sm:$0xff]  }
 0x55f   :  { %v6366_v23 = vpack.c.bf16 %v6354_v61, %v6352_v1 }
 0x560   :  { %v6440_v46 = vrot.slane %v6365_v19, 4 }
 0x561   :  { %6708 = vmatprep.mubr.bf16.mxu1 %v6366_v23  ;;  %v6441_v17 = vrot.slane %v6366_v23, 4  ;;  %v6216_v63 = vpop.f32.mrb[228].mxu0  ;;  %v6324_v7 = vpop.f32.mrb[228].mxu1  ;;  %v10118_v23 = vld [vmem:[%s12813_s13 + $0x128] sm:$0xff]  }
 0x562   :  { %6709 = vmatmul.mubr.bf16.vlgmr.msra.gmra.mrb[240].mxu1 %v6365_v19  ;;  %v6355_v40 = vmax.f32 %v6216_v63, %v6324_v7  ;;  %v6218_v48 = vpop.f32.mrb[229].mxu0  ;;  %v6326_v12 = vpop.f32.mrb[229].mxu1  ;;  %v10125_v63 = vld [vmem:[%s12813_s13 + $0x178] sm:$0xff]  }
 0x563   :  { %6572 = vmatprep.mubr.bf16.mxu0 %v6441_v17  ;;  %8977 = vmatpush3.bf16.msra.mxu1 %v10100_v62  ;;  %v6356_v9 = vmax.f32 %v6218_v48, %v6326_v12  ;;  %v6220_v45 = vpop.f32.mrb[230].mxu0  ;;  %v6328_v42 = vpop.f32.mrb[230].mxu1  ;;  %v10121_v62 = vld [vmem:[%s12813_s13 + $0x170] sm:$0xff]   ;;  %v10127_v17 = vld [vmem:[%s12813_s13 + $0x1f8] sm:$0xff]   ;;  %v10129_v48 = vld [vmem:[%s12813_s13 + $0x240] sm:$0xff]  }
 0x564   :  { %6573 = vmatmul.mubr.bf16.vlgmr.msra.gmra.mrb[240].mxu0 %v6440_v46  ;;  %8978 = vmatprep.subr.bf16.mxu1 %v10103_v28  ;;  %v6357_v13 = vmax.f32 %v6220_v45, %v6328_v42  ;;  %v6222_v33 = vpop.f32.mrb[231].mxu0  ;;  %v6330_v36 = vpop.f32.mrb[231].mxu1  ;;  %v10124_v28 = vld [vmem:[%s12813_s13 + $0x1b0] sm:$0xff]   ;;  %v10128_v7 = vld [vmem:[%s12813_s13 + $0x1b8] sm:$0xff]   ;;  %v10131_v46 = vld [vmem:[%s12813_s13 + $0x2c0] sm:$0xff]  }
 0x565   :  { %8955 = vmatpush3.bf16.msra.mxu0 %v10098_v32  ;;  %v6358_v55 = vmax.f32 %v6222_v33, %v6330_v36  ;;  %v10122_v32 = vld [vmem:[%s12813_s13 + $0x130] sm:$0xff]   ;;  %v10132_v12 = vld [vmem:[%s12813_s13 + $0x280] sm:$0xff]   ;;  %v10133_v42 = vld [vmem:[%s12813_s13 + $0x248] sm:$0xff]  }
 0x566   :  { %8956 = vmatprep.subr.bf16.mxu0 %v10101_v2  ;;  %v12527_v18 = vpack.c.bf16 %v6357_v13, %v6355_v40  ;;  %v10126_v2 = vld [vmem:[%s12813_s13 + $0x138] sm:$0xff]   ;;  %v10130_v45 = vld [vmem:[%s12813_s13 + $0x200] sm:$0xff]   ;;  %v10139_v13 = vld [vmem:[%s12813_s13 + $0x2d0] sm:$0xff]  }
 0x567   :  { %8979 = vmatpush3.bf16.msra.mxu1 %v10104_v20  ;;  %v6368_v26 = vpack.c.bf16 %v6358_v55, %v6356_v9  ;;  %v10135_v9 = vld [vmem:[%s12813_s13 + $0x2c8] sm:$0xff]   ;;  %v10137_v36 = vld [vmem:[%s12813_s13 + $0x250] sm:$0xff]   ;;  %v10143_v55 = vld [vmem:[%s12813_s13 + $0x2d8] sm:$0xff]  }
 0x568   :  { %8980 = vmatprep.subr.bf16.mxu1 %v10107_v25  ;;  %v6921_v40 = vrot.slane %v12527_v18, 4  ;;  %v10136_v25 = vld [vmem:[%s12813_s13 + $0x288] sm:$0xff]  }
 0x569   :  { %8957 = vmatpush3.bf16.msra.mxu0 %v10102_v16  ;;  %6877 = vmatprep.mubr.bf16.mxu0 %v6368_v26  ;;  %v6922_v14 = vrot.slane %v6368_v26, 4  ;;  %v6226_v31 = vpop.f32.mrb[232].mxu0  ;;  %v6334_v41 = vpop.f32.mrb[232].mxu1  ;;  %v10134_v33 = vld [vmem:[%s12813_s13 + $0x208] sm:$0xff]   ;;  %v10140_v16 = vld [vmem:[%s12813_s13 + $0x290] sm:$0xff]   ;;  %v10147_v26 = vld [vmem:[%s12813_s13 + $0x2e0] sm:$0xff]  }
 0x56a   :  { %8958 = vmatprep.subr.bf16.mxu0 %v10105_v21  ;;  %v6359_v4 = vmax.f32 %v6226_v31, %v6334_v41  ;;  %v6228_v53 = vpop.f32.mrb[233].mxu0  ;;  %v6336_v60 = vpop.f32.mrb[233].mxu1  ;;  %v10138_v21 = vld [vmem:[%s12813_s13 + $0x210] sm:$0xff]   ;;  %v10151_v31 = vld [vmem:[%s12813_s13 + $0x2e8] sm:$0xff]   ;;  %v10146_v41 = vld [vmem:[%s12813_s13 + $0x220] sm:$0xff]  }
 0x56b   :  { %8981 = vmatpush3.bf16.msra.mxu1 %v10108_v24  ;;  %7053 = vmatprep.mubr.bf16.mxu1 %v6922_v14  ;;  %v6360_v44 = vmax.f32 %v6228_v53, %v6336_v60  ;;  %v6230_v39 = vpop.f32.mrb[234].mxu0  ;;  %v6338_v50 = vpop.f32.mrb[234].mxu1  ;;  %v10144_v24 = vld [vmem:[%s12813_s13 + $0x298] sm:$0xff]   ;;  %v10148_v14 = vld [vmem:[%s12813_s13 + $0x2a0] sm:$0xff]   ;;  %v10155_v53 = vld [vmem:[%s12813_s13 + $0x2f0] sm:$0xff]  }
 0x56c   :  { %8982 = vmatprep.subr.bf16.mxu1 %v10111_v52  ;;  %v6361_v43 = vmax.f32 %v6230_v39, %v6338_v50  ;;  %v6232_v3 = vpop.f32.mrb[235].mxu0  ;;  %v6340_v47 = vpop.f32.mrb[235].mxu1  ;;  %v10142_v52 = vld [vmem:[%s12813_s13 + $0x218] sm:$0xff]   ;;  %v10150_v60 = vld [vmem:[%s12813_s13 + $0x228] sm:$0xff]   ;;  %v10154_v50 = vld [vmem:[%s12813_s13 + $0x230] sm:$0xff]  }
 0x56d   :  { %8959 = vmatpush3.bf16.msra.mxu0 %v10106_v29  ;;  %v6362_v37 = vmax.f32 %v6232_v3, %v6340_v47  ;;  %v10145_v29 = vld [vmem:[%s12813_s13 + $0x260] sm:$0xff]   ;;  %v10159_v39 = vld [vmem:[%s12813_s13 + $0x2f8] sm:$0xff]  }
 0x56e   :  { %8960 = vmatprep.subr.bf16.mxu0 %v10109_v34  ;;  %v12553_v5 = vpack.c.bf16 %v6361_v43, %v6359_v4  ;;  %v10149_v34 = vld [vmem:[%s12813_s13 + $0x268] sm:$0xff]   ;;  %v10160_v43 = vld [vmem:[%s12813_s13 + $0x2b8] sm:$0xff]  }
 0x56f   :  { %8983 = vmatpush3.bf16.msra.mxu1 %v10112_v51  ;;  %v6370_v49 = vpack.c.bf16 %v6362_v37, %v6360_v44  ;;  %v10152_v4 = vld [vmem:[%s12813_s13 + $0x2a8] sm:$0xff]   ;;  %v10153_v51 = vld [vmem:[%s12813_s13 + $0x270] sm:$0xff]   ;;  %v10158_v3 = vld [vmem:[%s12813_s13 + $0x238] sm:$0xff]  }
 0x570   :  { %8984 = vmatprep.subr.bf16.mxu1 %v10115_v15  ;;  %v10156_v44 = vld [vmem:[%s12813_s13 + $0x2b0] sm:$0xff]   ;;  %v10157_v15 = vld [vmem:[%s12813_s13 + $0x278] sm:$0xff]   ;;  %v7267_v47 = vrot.slane %v12553_v5, 4  ;;  %v10162_v37 = vld [vmem:[%s12813_s13 + $0x300] sm:$0xff]  }
 0x571   :  { %8961 = vmatpush3.bf16.msra.mxu0 %v10110_v0  ;;  %v6236_v54 = vpop.f32.mrb[236].mxu0  ;;  %v6344_v10 = vpop.f32.mrb[236].mxu1  ;;  %v7268_v20 = vrot.slane %v6370_v49, 4  ;;  %v10161_v0 = vld [vmem:[%s12813_s13 + $0x340] sm:$0xff]  }
 0x572   :  { %8962 = vmatprep.subr.bf16.mxu0 %v10113_v11  ;;  %v12567_v38 = vmax.f32 %v6236_v54, %v6344_v10  ;;  %v6238_v27 = vpop.f32.mrb[237].mxu0  ;;  %v6346_v1 = vpop.f32.mrb[237].mxu1  ;;  %v10168_v54 = vld [vmem:[%s12813_s13 + $0x318] sm:$0xff]   ;;  %v10169_v10 = vld [vmem:[%s12813_s13 + $0x360] sm:$0xff]  }
 0x573   :  { %8985 = vmatpush3.bf16.msra.mxu1 %v10116_v35  ;;  %v12572_v22 = vmax.f32 %v6238_v27, %v6346_v1  ;;  %v6240_v59 = vpop.f32.mrb[238].mxu0  ;;  %v6348_v8 = vpop.f32.mrb[238].mxu1  ;;  %v10163_v35 = vld [vmem:[%s12813_s13 + $0x348] sm:$0xff]  }
 0x574   :  { %8986 = vmatprep.subr.bf16.mxu1 %v10119_v56  ;;  %v6241_v61 = vpop.f32.mrb[239].mxu0  ;;  %v6349_v19 = vpop.f32.mrb[239].mxu1  ;;  %v10165_v56 = vld [vmem:[%s12813_s13 + $0x350] sm:$0xff]   ;;  %v10171_v27 = vld [vmem:[%s12813_s13 + $0x368] sm:$0xff]   ;;  %v10175_v59 = vld [vmem:[%s12813_s13 + $0x378] sm:$0xff]  }
 0x575   :  { %8963 = vmatpush3.bf16.msra.mxu0 %v10114_v58  ;;  %v6372_v11 = vpack.c.bf16 %v12572_v22, %v12572_v22  ;;  %v10166_v58 = vld [vmem:[%s12813_s13 + $0x310] sm:$0xff]   ;;  %v10172_v1 = vld [vmem:[%s12813_s13 + $0x328] sm:$0xff]   ;;  %v10176_v8 = vld [vmem:[%s12813_s13 + $0x338] sm:$0xff]   ;;  %v10178_v61 = vmov 0.0|0.0  }
 0x576   :  { %8964 = vmatprep.subr.bf16.mxu0 %v10117_v30  ;;  %v10170_v30 = vld [vmem:[%s12813_s13 + $0x320] sm:$0xff]   ;;  %v10174_v22 = vld [vmem:[%s12813_s13 + $0x330] sm:$0xff]  }
 0x577   :  { %8987 = vmatpush3.bf16.msra.mxu1 %v10120_v57  ;;  %v10173_v57 = vld [vmem:[%s12813_s13 + $0x370] sm:$0xff]   ;;  %v7587_v19 = vld [vmem:[%s12816_s15] sm:$0xff] }
 0x578   :  { %8988 = vmatprep.subr.bf16.mxu1 %v10123_v6  ;;  %v6371_v6 = vpack.c.bf16 %v12567_v38, %v12567_v38  ;;  %v7590_v38 = vld [vmem:[%s12816_s15 + $0x18] sm:$0xff] }
 0x579   :  { %8965 = vmatpush3.bf16.msra.mxu0 %v10118_v23  ;;  %v7588_v23 = vld [vmem:[%s12816_s15 + $0x8] sm:$0xff] }
 0x57a   :  { %8966 = vmatprep.subr.bf16.mxu0 %v10121_v62  ;;  %v7589_v62 = vld [vmem:[%s12816_s15 + $0x10] sm:$0xff] }
 0x57b   :  { %8989 = vmatpush3.bf16.msra.mxu1 %v10124_v28  ;;  %v9108_v28 = vpack.c.bf16 %v7588_v23, %v7587_v19  ;;  %v8907_v19 = vld [vmem:[%s12818_s16] ss:$0 sm:$0xff] }
 0x57c   :  { %8990 = vmatprep.subr.bf16.mxu1 %v10127_v17  ;;  %v9111_v17 = vpack.c.bf16 %v7590_v38, %v7589_v62 }
 0x57d   :  { %8967 = vmatpush3.bf16.msra.mxu0 %v10122_v32  ;;  %v7591_v32 = vld [vmem:[%s12816_s15 + $0x20] sm:$0xff] }
 0x57e   :  { %8968 = vmatprep.subr.bf16.mxu0 %v10125_v63  ;;  %v7592_v63 = vld [vmem:[%s12816_s15 + $0x28] sm:$0xff] }
 0x57f   :  { %8991 = vmatpush3.bf16.msra.mxu1 %v10128_v7  ;;  %v9114_v7 = vpack.c.bf16 %v7592_v63, %v7591_v32 }
 0x580   :  { %9020 = vmatprep.subr.bf16.mxu1 %v10131_v46  ;;  %v7593_v46 = vld [vmem:[%s12816_s15 + $0x30] sm:$0xff] }
 0x581   :  { %8969 = vmatpush3.bf16.msra.mxu0 %v10126_v2  ;;  %v7594_v2 = vld [vmem:[%s12816_s15 + $0x38] sm:$0xff] }
 0x582   :  { %8998 = vmatprep.subr.bf16.mxu0 %v10129_v48  ;;  %7054 = vmatmul.mubr.bf16.vlgmr.msra.gmra.mrb[244].mxu1 %v6921_v40  ;;  %v9117_v40 = vpack.c.bf16 %v7594_v2, %v7593_v46  ;;  %v7595_v48 = vld [vmem:[%s12816_s15 + $0x40] sm:$0xff] }
 0x583   :  { %9021 = vmatpush3.bf16.msra.mxu1 %v10132_v12  ;;  %7399 = vmatprep.mubr.bf16.mxu1 %v7268_v20  ;;  %v7596_v12 = vld [vmem:[%s12816_s15 + $0x48] sm:$0xff] }
 0x584   :  { %6878 = vmatmul.mubr.bf16.vlgmr.msra.gmra.mrb[244].mxu0 %v12527_v18  ;;  %9022 = vmatprep.subr.bf16.mxu1 %v10135_v9  ;;  %v10141_v18 = vld [vmem:[%s12813_s13 + $0x258] sm:$0xff]   ;;  %v9120_v20 = vpack.c.bf16 %v7596_v12, %v7595_v48  ;;  %v7597_v9 = vld [vmem:[%s12816_s15 + $0x50] sm:$0xff] }
 0x585   :  { %8999 = vmatpush3.bf16.msra.mxu0 %v10130_v45  ;;  %7223 = vmatprep.mubr.bf16.mxu0 %v6370_v49  ;;  %v10164_v49 = vld [vmem:[%s12813_s13 + $0x308] sm:$0xff]   ;;  %v7598_v45 = vld [vmem:[%s12816_s15 + $0x58] sm:$0xff] }
 0x586   :  { %9000 = vmatprep.subr.bf16.mxu0 %v10133_v42  ;;  %v9123_v42 = vpack.c.bf16 %v7598_v45, %v7597_v9 }
 0x587   :  { %9023 = vmatpush3.bf16.msra.mxu1 %v10136_v25  ;;  %v10179_v25 = vmov 0.0  }
 0x588   :  { %9024 = vmatprep.subr.bf16.mxu1 %v10139_v13  ;;  %v7599_v13 = vld [vmem:[%s12816_s15 + $0x60] sm:$0xf] }
 0x589   :  { %9001 = vmatpush3.bf16.msra.mxu0 %v10134_v33 }
 0x58a   :  { %9002 = vmatprep.subr.bf16.mxu0 %v10137_v36 }
 0x58b   :  { %9025 = vmatpush3.bf16.msra.mxu1 %v10140_v16 }
 0x58c   :  { %9026 = vmatprep.subr.bf16.mxu1 %v10143_v55 }
 0x58d   :  { %9003 = vmatpush3.bf16.msra.mxu0 %v10138_v21 }
 0x58e   :  { %9004 = vmatprep.subr.bf16.mxu0 %v10141_v18 }
 0x58f   :  { %9027 = vmatpush3.bf16.msra.mxu1 %v10144_v24 }
 0x590   :  { %9028 = vmatprep.subr.bf16.mxu1 %v10147_v26 }
 0x591   :  { %9005 = vmatpush3.bf16.msra.mxu0 %v10142_v52 }
 0x592   :  { %9006 = vmatprep.subr.bf16.mxu0 %v10145_v29 }
 0x593   :  { %9029 = vmatpush3.bf16.msra.mxu1 %v10148_v14 }
 0x594   :  { %9030 = vmatprep.subr.bf16.mxu1 %v10151_v31 }
 0x595   :  { %9007 = vmatpush3.bf16.msra.mxu0 %v10146_v41 }
 0x596   :  { %9008 = vmatprep.subr.bf16.mxu0 %v10149_v34 }
 0x597   :  { %9031 = vmatpush3.bf16.msra.mxu1 %v10152_v4 }
 0x598   :  { %9032 = vmatprep.subr.bf16.mxu1 %v10155_v53 }
 0x599   :  { %9009 = vmatpush3.bf16.msra.mxu0 %v10150_v60 }
 0x59a   :  { %9010 = vmatprep.subr.bf16.mxu0 %v10153_v51 }
 0x59b   :  { %9033 = vmatpush3.bf16.msra.mxu1 %v10156_v44 }
 0x59c   :  { %9034 = vmatprep.subr.bf16.mxu1 %v10159_v39 }
 0x59d   :  { %9011 = vmatpush3.bf16.msra.mxu0 %v10154_v50 }
 0x59e   :  { %9012 = vmatprep.subr.bf16.mxu0 %v10157_v15 }
 0x59f   :  { %9035 = vmatpush3.bf16.msra.mxu1 %v10160_v43 }
 0x5a0   :  { %9107 = vmatprep.subr.bf16.mxu1 %v10178_v61 }
 0x5a1   :  { %9013 = vmatpush3.bf16.msra.mxu0 %v10158_v3 }
 0x5a2   :  { %9042 = vmatprep.subr.bf16.mxu0 %v10161_v0  ;;  %7400 = vmatmul.mubr.bf16.vlgmr.msra.gmra.mrb[248].mxu1 %v7267_v47 }
 0x5a3   :  { %9109 = vmatpush3.bf16.msra.mxu1 %v9108_v28  ;;  %9104 = vmatprep.mubr.msk.f32.mxu1 %vm10180_vm6, %v10179_v25 }
 0x5a4   :  { %7224 = vmatmul.mubr.bf16.vlgmr.msra.gmra.mrb[248].mxu0 %v12553_v5  ;;  %v10167_v5 = vld [vmem:[%s12813_s13 + $0x358] sm:$0xff]   ;;  %9110 = vmatprep.subr.bf16.mxu1 %v10178_v61 }
 0x5a5   :  { %9043 = vmatpush3.bf16.msra.mxu0 %v10162_v37  ;;  %7569 = vmatprep.mubr.bf16.mxu0 %v6372_v11 }
 0x5a6   :  { %9044 = vmatprep.subr.bf16.mxu0 %v10163_v35 }
 0x5a7   :  { %9112 = vmatpush3.bf16.msra.mxu1 %v9111_v17 }
 0x5a8   :  { %9113 = vmatprep.subr.bf16.mxu1 %v10178_v61 }
 0x5a9   :  { %9045 = vmatpush3.bf16.msra.mxu0 %v10164_v49 }
 0x5aa   :  { %9046 = vmatprep.subr.bf16.mxu0 %v10165_v56 }
 0x5ab   :  { %9115 = vmatpush3.bf16.msra.mxu1 %v9114_v7 }
 0x5ac   :  { %9116 = vmatprep.subr.bf16.mxu1 %v10178_v61 }
 0x5ad   :  { %9047 = vmatpush3.bf16.msra.mxu0 %v10166_v58 }
 0x5ae   :  { %9048 = vmatprep.subr.bf16.mxu0 %v10167_v5 }
 0x5af   :  { %9118 = vmatpush3.bf16.msra.mxu1 %v9117_v40 }
 0x5b0   :  { %9119 = vmatprep.subr.bf16.mxu1 %v10178_v61 }
 0x5b1   :  { %9049 = vmatpush3.bf16.msra.mxu0 %v10168_v54 }
 0x5b2   :  { %9050 = vmatprep.subr.bf16.mxu0 %v10169_v10 }
 0x5b3   :  { %9121 = vmatpush3.bf16.msra.mxu1 %v9120_v20 }
 0x5b4   :  { %9122 = vmatprep.subr.bf16.mxu1 %v10178_v61 }
 0x5b5   :  { %9051 = vmatpush3.bf16.msra.mxu0 %v10170_v30 }
 0x5b6   :  { %9052 = vmatprep.subr.bf16.mxu0 %v10171_v27 }
 0x5b7   :  { %9124 = vmatpush3.bf16.msra.mxu1 %v9123_v42 }
 0x5b8   :  { %9102 = vmatprep.subr.mxu1 %v10179_v25 }
 0x5b9   :  { %9053 = vmatpush3.bf16.msra.mxu0 %v10172_v1 }
 0x5ba   :  { %9054 = vmatprep.subr.bf16.mxu0 %v10173_v57 }
 0x5bb   :  { %9103 = vmatpush3.msk.msra.mxu1 %vm2889_vm3, %v7599_v13 }
 0x5bd   :  { %9055 = vmatpush3.bf16.msra.mxu0 %v10174_v22  ;;  %v8906_v22 = vld [vmem:[%s12817_s14] ss:$0 sm:$0xff] }
 0x5be   :  { %9056 = vmatprep.subr.bf16.mxu0 %v10175_v59 }
 0x5c1   :  { %9057 = vmatpush3.bf16.msra.mxu0 %v10176_v8 }
 0x5c4   :  { %7570 = vmatmul.mubr.bf16.vlgmr.msra.gmra.mrb[252].mxu0 %v6371_v6 }
 0x635   :  { %v8948_v33 = vpop.f32.mrb[240].mxu1 }
 0x636   :  { %v8949_v36 = vpop.f32.mrb[241].mxu1 }
 0x637   :  { %v8950_v16 = vadd.f32 %v8949_v36, %v8948_v33  ;;  %v8926_v55 = vpop.f32.mrb[240].mxu0  ;;  %v8951_v21 = vpop.f32.mrb[242].mxu1 }
 0x638   :  { %v8927_v18 = vpop.f32.mrb[241].mxu0  ;;  %v8952_v24 = vpop.f32.mrb[243].mxu1 }
 0x639   :  { %v8928_v26 = vadd.f32 %v8927_v18, %v8926_v55  ;;  %v8929_v52 = vpop.f32.mrb[242].mxu0 }
 0x63a   :  { %v8930_v29 = vpop.f32.mrb[243].mxu0 }
 0x63b   :  { %v6711_v14 = vadd.f32 %v8950_v16, %v8928_v26 }
 0x655   :  { %v8992_v31 = vpop.f32.mrb[244].mxu1 }
 0x656   :  { %v8993_v41 = vpop.f32.mrb[245].mxu1 }
 0x657   :  { %v8970_v34 = vpop.f32.mrb[244].mxu0  ;;  %v8994_v4 = vadd.f32 %v8993_v41, %v8992_v31  ;;  %v8995_v53 = vpop.f32.mrb[246].mxu1 }
 0x658   :  { %v8971_v60 = vpop.f32.mrb[245].mxu0  ;;  %v8996_v51 = vpop.f32.mrb[247].mxu1 }
 0x659   :  { %v8972_v44 = vadd.f32 %v8971_v60, %v8970_v34  ;;  %v8973_v39 = vpop.f32.mrb[246].mxu0 }
 0x65a   :  { %v8974_v50 = vpop.f32.mrb[247].mxu0 }
 0x65b   :  { %v6885_v15 = vadd.f32 %v8972_v44, %v6711_v14 }
 0x65d   :  { %v7061_v43 = vadd.f32 %v8994_v4, %v6885_v15 }
 0x675   :  { %v9036_v3 = vpop.f32.mrb[248].mxu1 }
 0x676   :  { %v9037_v47 = vpop.f32.mrb[249].mxu1 }
 0x677   :  { %v9014_v0 = vpop.f32.mrb[248].mxu0  ;;  %v9038_v37 = vadd.f32 %v9037_v47, %v9036_v3  ;;  %v9039_v11 = vpop.f32.mrb[250].mxu1 }
 0x678   :  { %v9015_v35 = vpop.f32.mrb[249].mxu0  ;;  %v9040_v49 = vpop.f32.mrb[251].mxu1 }
 0x679   :  { %v9016_v56 = vadd.f32 %v9015_v35, %v9014_v0  ;;  %v9017_v58 = vpop.f32.mrb[250].mxu0 }
 0x67a   :  { %v9018_v5 = vpop.f32.mrb[251].mxu0 }
 0x67b   :  { %v7231_v54 = vadd.f32 %v9016_v56, %v7061_v43 }
 0x67d   :  { %v7407_v10 = vadd.f32 %v9038_v37, %v7231_v54 }
 0x697   :  { %v9058_v30 = vpop.f32.mrb[252].mxu0 }
 0x698   :  { %v9059_v27 = vpop.f32.mrb[253].mxu0 }
 0x699   :  { %v9060_v1 = vadd.f32 %v9059_v27, %v9058_v30  ;;  %v9061_v57 = vpop.f32.mrb[254].mxu0 }
 0x69a   :  { %v9062_v59 = vpop.f32.mrb[255].mxu0 }
 0x69b   :  { %v7577_v8 = vadd.f32 %v9060_v1, %v7407_v10 }
 0x69d   :  { %v7585_v6 = vadd.f32 %v8906_v22, %v7577_v8 }
 0x69f   :  { %v7586_v61 = vmax.f32 %v7585_v6, 0.0 }
 0x6a1   :  { %9105 = vmatmul.mubr.msk.f32.vlgmr.msra.gmra.mrb[252].mxu1 %vm7607_vm7, %v7586_v61 }
 0x774   :  { %v7680_v23 = vpop.f32.mrb[252].mxu1 }
 0x775   :  { %v7681_v62 = vadd.f32 %v8907_v19, %v7680_v23  ;;  %v9106_v28 = vpop.f32.mrb[253].mxu1 }
 0x777   :  { %7685 = vst.msk [vmem:[%s12819_s17] sm:$0xff] %vm7684_vm8, %v7681_v62 }

</bundles_post_ra>
